<compile_context>
chip_gen: v7x
topology: tpu7x:2x2x1
jax: 0.10.0
libtpu: 0.0.40
codegen_flags: <defaults>
</compile_context>

<pallas_src>
import jax
import jax.numpy as jnp
from jax.experimental import pallas as pl
from jax.experimental.pallas import tpu as pltpu

# ----------------------------- configuration -----------------------------
NUM_AGES = 10
NUM_GENDERS = 2
NUM_ETHNICITIES = 4
NUM_INSURANCES = 3
VOCAB = NUM_AGES + NUM_GENDERS + NUM_ETHNICITIES + NUM_INSURANCES + 2

HIDDEN = 64
NUM_LAYERS = 2
NUM_HEADS = 4
HEAD_DIM = HIDDEN // NUM_HEADS
INTERMEDIATE = 256
MAX_POS = 16
TYPE_VOCAB = 2
LN_EPS = 1e-12
ATTN_SCALE = 1.0 / (HEAD_DIM ** 0.5)

BATCH = 2
SEQ = 8

_VMEM = pl.BlockSpec(memory_space=pltpu.MemorySpace.VMEM)


# ------------------------------ in-kernel helpers --------------------------
def _layernorm(y, g, b):
    mu = jnp.mean(y, axis=-1, keepdims=True)
    var = jnp.mean(jnp.square(y - mu), axis=-1, keepdims=True)
    return (y - mu) * jax.lax.rsqrt(var + LN_EPS) * g + b


def _gelu_tanh(x):
    # TODO(synk): HF BERT uses exact erf-GELU; the tanh approximation is used
    # in-kernel (guaranteed Mosaic lowering via EUP tanh), rel. deviation ~1e-3.
    c = 0.7978845608028654  # sqrt(2/pi)
    return 0.5 * x * (1.0 + jnp.tanh(c * (x + 0.044715 * x * x * x)))


# ------------------------------ fused model kernel -------------------------
def _behrt_fused_kernel(
    emb_ref, mask_ref, emb_g_ref, emb_b_ref,
    wqkv_ref, bqkv_ref, wo_ref, bo_ref, ln1g_ref, ln1b_ref,
    wi_ref, bi_ref, wo2_ref, bo2_ref, ln2g_ref, ln2b_ref,
    age_ref, gen_ref, eth_ref, ins_ref,
    out_ref,
):
    B, S = mask_ref.shape
    H = HIDDEN

    # --- embedding LayerNorm (plain LN on summed embeddings) ---
    x = _layernorm(emb_ref[...], emb_g_ref[...], emb_b_ref[...])      # (B*S, H)

    # Additive key-side mask, broadcast once for all layers / heads
    # (broadcast_in_dim is not CSE'd by JAX, so hoist it out of the loops).
    mask3 = mask_ref[...][:, None, :]                                 # (B, 1, S)

    # --- encoder stack, statically unrolled; all weights stay in VMEM ---
    for l in range(NUM_LAYERS):
        # fused QKV projection: one MXU matmul (B*S, 3H)
        qkv = (jnp.dot(x, wqkv_ref[l], preferred_element_type=jnp.float32)
               + bqkv_ref[l])

        # Multi-head attention.  The output projection is accumulated per head
        # (ctx @ Wo == sum_h ctx_h @ Wo[head rows]); avoids minor-dim concat.
        w_o = wo_ref[l]                                               # (H, H)
        attn_acc = None
        for h in range(NUM_HEADS):
            lo = h * HEAD_DIM
            qh = qkv[:, lo:lo + HEAD_DIM].reshape(B, S, HEAD_DIM)
            kh = qkv[:, H + lo:H + lo + HEAD_DIM].reshape(B, S, HEAD_DIM)
            vh = qkv[:, 2 * H + lo:2 * H + lo + HEAD_DIM].reshape(B, S, HEAD_DIM)

            s = jnp.einsum("bqd,bkd->bqk", qh, kh,
                           preferred_element_type=jnp.float32) * ATTN_SCALE
            s = s + mask3                     # key-side mask, broadcast over queries
            m = jnp.max(s, axis=-1, keepdims=True)
            p = jnp.exp(s - m)
            p = p * pl.reciprocal(jnp.sum(p, axis=-1, keepdims=True), approx=True)
            ctx_h = jnp.einsum("bqk,bkd->bqd", p, vh,
                               preferred_element_type=jnp.float32)
            ctx_h = ctx_h.reshape(B * S, HEAD_DIM)

            part = jnp.dot(ctx_h, w_o[lo:lo + HEAD_DIM, :],
                           preferred_element_type=jnp.float32)
            attn_acc = part if attn_acc is None else attn_acc + part

        attn_out = attn_acc + bo_ref[l]
        h1 = _layernorm(attn_out + x, ln1g_ref[l], ln1b_ref[l])

        # FFN: matmul + GELU + matmul, all in VMEM
        inter = (jnp.dot(h1, wi_ref[l], preferred_element_type=jnp.float32)
                 + bi_ref[l])
        inter = _gelu_tanh(inter)
        ffn = (jnp.dot(inter, wo2_ref[l], preferred_element_type=jnp.float32)
               + bo2_ref[l])
        x = _layernorm(ffn + h1, ln2g_ref[l], ln2b_ref[l])

    # --- CLS token + demographic embedding fusion (same kernel) ---
    cls_tok = x.reshape(B, S, H)[:, 0, :]                             # (B, H)
    extra = (age_ref[...] + gen_ref[...] + eth_ref[...] + ins_ref[...]) * 0.25
    out_ref[...] = cls_tok + extra


# ------------------------------ parameters --------------------------------
def init_params(key):
    keys = iter(jax.random.split(key, 16))

    def nrm(shape):
        return jax.random.normal(next(keys), shape, jnp.float32) * 0.02

    return {
        # embedding tables (gathers done in XLA glue)
        "word_emb": nrm((VOCAB, HIDDEN)),
        "pos_emb": nrm((MAX_POS, HIDDEN)),
        "type_emb": nrm((TYPE_VOCAB, HIDDEN)),
        "emb_ln_g": jnp.ones((1, HIDDEN), jnp.float32),
        "emb_ln_b": jnp.zeros((1, HIDDEN), jnp.float32),
        "age_emb": nrm((NUM_AGES, HIDDEN)),
        "gender_emb": nrm((NUM_GENDERS, HIDDEN)),
        "eth_emb": nrm((NUM_ETHNICITIES, HIDDEN)),
        "ins_emb": nrm((NUM_INSURANCES, HIDDEN)),
        # encoder weights, stacked with a leading layer dim; QKV merged to (H, 3H)
        "wqkv": nrm((NUM_LAYERS, HIDDEN, 3 * HIDDEN)),
        "bqkv": jnp.zeros((NUM_LAYERS, 1, 3 * HIDDEN), jnp.float32),
        "wo": nrm((NUM_LAYERS, HIDDEN, HIDDEN)),
        "bo": jnp.zeros((NUM_LAYERS, 1, HIDDEN), jnp.float32),
        "ln1_g": jnp.ones((NUM_LAYERS, 1, HIDDEN), jnp.float32),
        "ln1_b": jnp.zeros((NUM_LAYERS, 1, HIDDEN), jnp.float32),
        "wi": nrm((NUM_LAYERS, HIDDEN, INTERMEDIATE)),
        "bi": jnp.zeros((NUM_LAYERS, 1, INTERMEDIATE), jnp.float32),
        "wo2": nrm((NUM_LAYERS, INTERMEDIATE, HIDDEN)),
        "bo2": jnp.zeros((NUM_LAYERS, 1, HIDDEN), jnp.float32),
        "ln2_g": jnp.ones((NUM_LAYERS, 1, HIDDEN), jnp.float32),
        "ln2_b": jnp.zeros((NUM_LAYERS, 1, HIDDEN), jnp.float32),
    }


# ------------------------------ forward pass -------------------------------
def behrt_demo_forward(
    params, input_ids, attention_mask, age_ids, gender_ids, ethnicity_ids, insurance_ids
):
    B, S = input_ids.shape
    assert S <= MAX_POS, "sequence length exceeds max_position_embeddings"

    # clamp demographic ids (matches torch.clamp in the module)
    age_ids = jnp.clip(age_ids, 0, NUM_AGES - 1)
    gender_ids = jnp.clip(gender_ids, 0, NUM_GENDERS - 1)
    ethnicity_ids = jnp.clip(ethnicity_ids, 0, NUM_ETHNICITIES - 1)
    insurance_ids = jnp.clip(insurance_ids, 0, NUM_INSURANCES - 1)

    # data-dependent gathers stay in XLA glue; everything else is one Pallas call
    word = jnp.take(params["word_emb"], input_ids, axis=0)            # (B,S,H)
    pos = params["pos_emb"][:S][None, :, :]                           # (1,S,H)
    tok = params["type_emb"][0][None, None, :]                        # token_type_ids = 0
    emb = (word + pos + tok).reshape(B * S, HIDDEN)

    # additive attention mask, computed once for all layers: (B, S) with 0 / -10000
    # (padded query rows are not masked, matching HF BERT; only the CLS row is used)
    mask_add = (1.0 - attention_mask.astype(jnp.float32)) * -10000.0

    age_e = jnp.take(params["age_emb"], age_ids, axis=0)
    gen_e = jnp.take(params["gender_emb"], gender_ids, axis=0)
    eth_e = jnp.take(params["eth_emb"], ethnicity_ids, axis=0)
    ins_e = jnp.take(params["ins_emb"], insurance_ids, axis=0)

    return pl.pallas_call(
        _behrt_fused_kernel,
        out_shape=jax.ShapeDtypeStruct((B, HIDDEN), jnp.float32),
        in_specs=[_VMEM] * 20,
        out_specs=_VMEM,
    )(
        emb, mask_add, params["emb_ln_g"], params["emb_ln_b"],
        params["wqkv"], params["bqkv"], params["wo"], params["bo"],
        params["ln1_g"], params["ln1_b"], params["wi"], params["bi"],
        params["wo2"], params["bo2"], params["ln2_g"], params["ln2_b"],
        age_e, gen_e, eth_e, ins_e,
    )


# ---------------------------------- main -----------------------------------
if __name__ == "__main__":
    root = jax.random.PRNGKey(0)
    pkey, dkey = jax.random.split(root)
    params = init_params(pkey)

    ks = jax.random.split(dkey, 5)
    input_ids = jax.random.randint(ks[0], (BATCH, SEQ), 0, VOCAB, dtype=jnp.int32)
    attention_mask = jnp.array(
        [[1, 1, 1, 1, 1, 1, 1, 1],
         [1, 1, 1, 1, 1, 1, 0, 0]], dtype=jnp.int32
    )
    age_ids = jax.random.randint(ks[1], (BATCH,), 0, NUM_AGES + 3, dtype=jnp.int32)
    gender_ids = jax.random.randint(ks[2], (BATCH,), 0, NUM_GENDERS, dtype=jnp.int32)
    ethnicity_ids = jax.random.randint(ks[3], (BATCH,), 0, NUM_ETHNICITIES, dtype=jnp.int32)
    insurance_ids = jax.random.randint(ks[4], (BATCH,), 0, NUM_INSURANCES, dtype=jnp.int32)

    fwd = jax.jit(behrt_demo_forward)
    demo_embedding = fwd(
        params, input_ids, attention_mask, age_ids, gender_ids, ethnicity_ids, insurance_ids
    )
    jax.block_until_ready(demo_embedding)
    assert demo_embedding.shape == (BATCH, HIDDEN)
    assert bool(jnp.all(jnp.isfinite(demo_embedding)))
    print("KERNEL_OK")
</pallas_src>

<mosaic_0001>
module attributes {stable_mosaic.version = 11 : i64} {
  func.func @_behrt_fused_kernel(%arg0: memref<16x64xf32, #tpu.memory_space<vmem>>, %arg1: memref<2x8xf32, #tpu.memory_space<vmem>>, %arg2: memref<1x64xf32, #tpu.memory_space<vmem>>, %arg3: memref<1x64xf32, #tpu.memory_space<vmem>>, %arg4: memref<2x64x192xf32, #tpu.memory_space<vmem>>, %arg5: memref<2x1x192xf32, #tpu.memory_space<vmem>>, %arg6: memref<2x64x64xf32, #tpu.memory_space<vmem>>, %arg7: memref<2x1x64xf32, #tpu.memory_space<vmem>>, %arg8: memref<2x1x64xf32, #tpu.memory_space<vmem>>, %arg9: memref<2x1x64xf32, #tpu.memory_space<vmem>>, %arg10: memref<2x64x256xf32, #tpu.memory_space<vmem>>, %arg11: memref<2x1x256xf32, #tpu.memory_space<vmem>>, %arg12: memref<2x256x64xf32, #tpu.memory_space<vmem>>, %arg13: memref<2x1x64xf32, #tpu.memory_space<vmem>>, %arg14: memref<2x1x64xf32, #tpu.memory_space<vmem>>, %arg15: memref<2x1x64xf32, #tpu.memory_space<vmem>>, %arg16: memref<2x64xf32, #tpu.memory_space<vmem>>, %arg17: memref<2x64xf32, #tpu.memory_space<vmem>>, %arg18: memref<2x64xf32, #tpu.memory_space<vmem>>, %arg19: memref<2x64xf32, #tpu.memory_space<vmem>>, %arg20: memref<2x64xf32, #tpu.memory_space<vmem>>) attributes {dimension_semantics = [], scalar_prefetch = 0 : i64, scratch_operands = 0 : i64, tpu.core_type = #tpu.core_type<tc>} {
    %c0 = arith.constant 0 : index
    %c0_0 = arith.constant 0 : index
    %0 = vector.load %arg0[%c0, %c0_0] : memref<16x64xf32, #tpu.memory_space<vmem>>, vector<16x64xf32>
    %c0_1 = arith.constant 0 : index
    %c0_2 = arith.constant 0 : index
    %1 = vector.load %arg2[%c0_1, %c0_2] : memref<1x64xf32, #tpu.memory_space<vmem>>, vector<1x64xf32>
    %c0_3 = arith.constant 0 : index
    %c0_4 = arith.constant 0 : index
    %2 = vector.load %arg3[%c0_3, %c0_4] : memref<1x64xf32, #tpu.memory_space<vmem>>, vector<1x64xf32>
    %cst = arith.constant dense<0.000000e+00> : vector<16xf32>
    %3 = vector.multi_reduction <add>, %0, %cst [1] : vector<16x64xf32> to vector<16xf32>
    %4 = vector.shape_cast %3 : vector<16xf32> to vector<16x1xf32>
    %cst_5 = arith.constant 6.400000e+01 : f32
    %5 = vector.broadcast %cst_5 : f32 to vector<16x1xf32>
    %6 = arith.divf %4, %5 : vector<16x1xf32>
    %7 = vector.broadcast %6 : vector<16x1xf32> to vector<16x64xf32>
    %8 = arith.subf %0, %7 : vector<16x64xf32>
    %9 = arith.mulf %8, %8 : vector<16x64xf32>
    %cst_6 = arith.constant dense<0.000000e+00> : vector<16xf32>
    %10 = vector.multi_reduction <add>, %9, %cst_6 [1] : vector<16x64xf32> to vector<16xf32>
    %11 = vector.shape_cast %10 : vector<16xf32> to vector<16x1xf32>
    %cst_7 = arith.constant 6.400000e+01 : f32
    %12 = vector.broadcast %cst_7 : f32 to vector<16x1xf32>
    %13 = arith.divf %11, %12 : vector<16x1xf32>
    %14 = vector.broadcast %6 : vector<16x1xf32> to vector<16x64xf32>
    %15 = arith.subf %0, %14 : vector<16x64xf32>
    %cst_8 = arith.constant 9.99999996E-13 : f32
    %16 = vector.broadcast %cst_8 : f32 to vector<16x1xf32>
    %17 = arith.addf %13, %16 : vector<16x1xf32>
    %18 = math.rsqrt %17 : vector<16x1xf32>
    %19 = vector.broadcast %18 : vector<16x1xf32> to vector<16x64xf32>
    %20 = arith.mulf %15, %19 : vector<16x64xf32>
    %21 = vector.broadcast %1 : vector<1x64xf32> to vector<16x64xf32>
    %22 = arith.mulf %20, %21 : vector<16x64xf32>
    %23 = vector.broadcast %2 : vector<1x64xf32> to vector<16x64xf32>
    %24 = arith.addf %22, %23 : vector<16x64xf32>
    %c0_9 = arith.constant 0 : index
    %c0_10 = arith.constant 0 : index
    %25 = vector.load %arg1[%c0_9, %c0_10] : memref<2x8xf32, #tpu.memory_space<vmem>>, vector<2x8xf32>
    %26 = vector.shape_cast %25 : vector<2x8xf32> to vector<2x1x8xf32>
    %c0_11 = arith.constant 0 : index
    %c0_12 = arith.constant 0 : index
    %c0_13 = arith.constant 0 : index
    %27 = vector.load %arg4[%c0_11, %c0_12, %c0_13] : memref<2x64x192xf32, #tpu.memory_space<vmem>>, vector<1x64x192xf32>
    %28 = vector.shape_cast %27 : vector<1x64x192xf32> to vector<64x192xf32>
    %cst_14 = arith.constant dense<0.000000e+00> : vector<16x192xf32>
    %29 = tpu.matmul %24, %28, %cst_14 {dimension_numbers = #tpu.dot_dimension_numbers<[1], [0], [0], [1], [0, 0, 1, 1], [], []>} : vector<16x64xf32>, vector<64x192xf32>, vector<16x192xf32> -> vector<16x192xf32>
    %c0_15 = arith.constant 0 : index
    %c0_16 = arith.constant 0 : index
    %c0_17 = arith.constant 0 : index
    %30 = vector.load %arg5[%c0_15, %c0_16, %c0_17] : memref<2x1x192xf32, #tpu.memory_space<vmem>>, vector<1x1x192xf32>
    %31 = vector.shape_cast %30 : vector<1x1x192xf32> to vector<1x192xf32>
    %32 = vector.broadcast %31 : vector<1x192xf32> to vector<16x192xf32>
    %33 = arith.addf %29, %32 : vector<16x192xf32>
    %c0_18 = arith.constant 0 : index
    %c0_19 = arith.constant 0 : index
    %c0_20 = arith.constant 0 : index
    %34 = vector.load %arg6[%c0_18, %c0_19, %c0_20] : memref<2x64x64xf32, #tpu.memory_space<vmem>>, vector<1x64x64xf32>
    %35 = vector.shape_cast %34 : vector<1x64x64xf32> to vector<64x64xf32>
    %36 = vector.extract_strided_slice %33 {offsets = [0, 0], sizes = [16, 16], strides = [1, 1]} : vector<16x192xf32> to vector<16x16xf32>
    %37 = vector.shape_cast %36 : vector<16x16xf32> to vector<2x8x16xf32>
    %38 = vector.extract_strided_slice %33 {offsets = [0, 64], sizes = [16, 16], strides = [1, 1]} : vector<16x192xf32> to vector<16x16xf32>
    %39 = vector.shape_cast %38 : vector<16x16xf32> to vector<2x8x16xf32>
    %40 = vector.extract_strided_slice %33 {offsets = [0, 128], sizes = [16, 16], strides = [1, 1]} : vector<16x192xf32> to vector<16x16xf32>
    %41 = vector.shape_cast %40 : vector<16x16xf32> to vector<2x8x16xf32>
    "tpu.trace_start"() <{level = 10 : i32, message = "bqd,bkd->bqk"}> : () -> ()
    %cst_21 = arith.constant dense<0.000000e+00> : vector<2x8x8xf32>
    %42 = tpu.matmul %37, %39, %cst_21 {dimension_numbers = #tpu.dot_dimension_numbers<[2], [2], [1], [1], [0, 0, 0, 1, 1, 1], [0], [0]>} : vector<2x8x16xf32>, vector<2x8x16xf32>, vector<2x8x8xf32> -> vector<2x8x8xf32>
    "tpu.trace_stop"() : () -> ()
    %cst_22 = arith.constant 2.500000e-01 : f32
    %43 = vector.broadcast %cst_22 : f32 to vector<2x8x8xf32>
    %44 = arith.mulf %42, %43 : vector<2x8x8xf32>
    %45 = vector.broadcast %26 : vector<2x1x8xf32> to vector<2x8x8xf32>
    %46 = arith.addf %44, %45 : vector<2x8x8xf32>
    %cst_23 = arith.constant dense<0xFF800000> : vector<2x8xf32>
    %47 = vector.multi_reduction <maximumf>, %46, %cst_23 [2] : vector<2x8x8xf32> to vector<2x8xf32>
    %48 = vector.shape_cast %47 : vector<2x8xf32> to vector<2x8x1xf32>
    %49 = vector.broadcast %48 : vector<2x8x1xf32> to vector<2x8x8xf32>
    %50 = arith.subf %46, %49 : vector<2x8x8xf32>
    %51 = math.exp %50 : vector<2x8x8xf32>
    %cst_24 = arith.constant dense<0.000000e+00> : vector<2x8xf32>
    %52 = vector.multi_reduction <add>, %51, %cst_24 [2] : vector<2x8x8xf32> to vector<2x8xf32>
    %53 = vector.shape_cast %52 : vector<2x8xf32> to vector<2x8x1xf32>
    %54 = tpu.reciprocal %53 {approx = true} : vector<2x8x1xf32> -> vector<2x8x1xf32>
    %55 = vector.broadcast %54 : vector<2x8x1xf32> to vector<2x8x8xf32>
    %56 = arith.mulf %51, %55 : vector<2x8x8xf32>
    "tpu.trace_start"() <{level = 10 : i32, message = "bqk,bkd->bqd"}> : () -> ()
    %cst_25 = arith.constant dense<0.000000e+00> : vector<2x8x16xf32>
    %57 = tpu.matmul %56, %41, %cst_25 {dimension_numbers = #tpu.dot_dimension_numbers<[2], [1], [1], [2], [0, 0, 0, 1, 1, 2], [0], [0]>} : vector<2x8x8xf32>, vector<2x8x16xf32>, vector<2x8x16xf32> -> vector<2x8x16xf32>
    "tpu.trace_stop"() : () -> ()
    %58 = vector.shape_cast %57 : vector<2x8x16xf32> to vector<16x16xf32>
    %59 = vector.extract_strided_slice %35 {offsets = [0, 0], sizes = [16, 64], strides = [1, 1]} : vector<64x64xf32> to vector<16x64xf32>
    %cst_26 = arith.constant dense<0.000000e+00> : vector<16x64xf32>
    %60 = tpu.matmul %58, %59, %cst_26 {dimension_numbers = #tpu.dot_dimension_numbers<[1], [0], [0], [1], [0, 0, 1, 1], [], []>} : vector<16x16xf32>, vector<16x64xf32>, vector<16x64xf32> -> vector<16x64xf32>
    %61 = vector.extract_strided_slice %33 {offsets = [0, 16], sizes = [16, 16], strides = [1, 1]} : vector<16x192xf32> to vector<16x16xf32>
    %62 = vector.shape_cast %61 : vector<16x16xf32> to vector<2x8x16xf32>
    %63 = vector.extract_strided_slice %33 {offsets = [0, 80], sizes = [16, 16], strides = [1, 1]} : vector<16x192xf32> to vector<16x16xf32>
    %64 = vector.shape_cast %63 : vector<16x16xf32> to vector<2x8x16xf32>
    %65 = vector.extract_strided_slice %33 {offsets = [0, 144], sizes = [16, 16], strides = [1, 1]} : vector<16x192xf32> to vector<16x16xf32>
    %66 = vector.shape_cast %65 : vector<16x16xf32> to vector<2x8x16xf32>
    "tpu.trace_start"() <{level = 10 : i32, message = "bqd,bkd->bqk"}> : () -> ()
    %cst_27 = arith.constant dense<0.000000e+00> : vector<2x8x8xf32>
    %67 = tpu.matmul %62, %64, %cst_27 {dimension_numbers = #tpu.dot_dimension_numbers<[2], [2], [1], [1], [0, 0, 0, 1, 1, 1], [0], [0]>} : vector<2x8x16xf32>, vector<2x8x16xf32>, vector<2x8x8xf32> -> vector<2x8x8xf32>
    "tpu.trace_stop"() : () -> ()
    %cst_28 = arith.constant 2.500000e-01 : f32
    %68 = vector.broadcast %cst_28 : f32 to vector<2x8x8xf32>
    %69 = arith.mulf %67, %68 : vector<2x8x8xf32>
    %70 = vector.broadcast %26 : vector<2x1x8xf32> to vector<2x8x8xf32>
    %71 = arith.addf %69, %70 : vector<2x8x8xf32>
    %cst_29 = arith.constant dense<0xFF800000> : vector<2x8xf32>
    %72 = vector.multi_reduction <maximumf>, %71, %cst_29 [2] : vector<2x8x8xf32> to vector<2x8xf32>
    %73 = vector.shape_cast %72 : vector<2x8xf32> to vector<2x8x1xf32>
    %74 = vector.broadcast %73 : vector<2x8x1xf32> to vector<2x8x8xf32>
    %75 = arith.subf %71, %74 : vector<2x8x8xf32>
    %76 = math.exp %75 : vector<2x8x8xf32>
    %cst_30 = arith.constant dense<0.000000e+00> : vector<2x8xf32>
    %77 = vector.multi_reduction <add>, %76, %cst_30 [2] : vector<2x8x8xf32> to vector<2x8xf32>
    %78 = vector.shape_cast %77 : vector<2x8xf32> to vector<2x8x1xf32>
    %79 = tpu.reciprocal %78 {approx = true} : vector<2x8x1xf32> -> vector<2x8x1xf32>
    %80 = vector.broadcast %79 : vector<2x8x1xf32> to vector<2x8x8xf32>
    %81 = arith.mulf %76, %80 : vector<2x8x8xf32>
    "tpu.trace_start"() <{level = 10 : i32, message = "bqk,bkd->bqd"}> : () -> ()
    %cst_31 = arith.constant dense<0.000000e+00> : vector<2x8x16xf32>
    %82 = tpu.matmul %81, %66, %cst_31 {dimension_numbers = #tpu.dot_dimension_numbers<[2], [1], [1], [2], [0, 0, 0, 1, 1, 2], [0], [0]>} : vector<2x8x8xf32>, vector<2x8x16xf32>, vector<2x8x16xf32> -> vector<2x8x16xf32>
    "tpu.trace_stop"() : () -> ()
    %83 = vector.shape_cast %82 : vector<2x8x16xf32> to vector<16x16xf32>
    %84 = vector.extract_strided_slice %35 {offsets = [16, 0], sizes = [16, 64], strides = [1, 1]} : vector<64x64xf32> to vector<16x64xf32>
    %cst_32 = arith.constant dense<0.000000e+00> : vector<16x64xf32>
    %85 = tpu.matmul %83, %84, %cst_32 {dimension_numbers = #tpu.dot_dimension_numbers<[1], [0], [0], [1], [0, 0, 1, 1], [], []>} : vector<16x16xf32>, vector<16x64xf32>, vector<16x64xf32> -> vector<16x64xf32>
    %86 = arith.addf %60, %85 : vector<16x64xf32>
    %87 = vector.extract_strided_slice %33 {offsets = [0, 32], sizes = [16, 16], strides = [1, 1]} : vector<16x192xf32> to vector<16x16xf32>
    %88 = vector.shape_cast %87 : vector<16x16xf32> to vector<2x8x16xf32>
    %89 = vector.extract_strided_slice %33 {offsets = [0, 96], sizes = [16, 16], strides = [1, 1]} : vector<16x192xf32> to vector<16x16xf32>
    %90 = vector.shape_cast %89 : vector<16x16xf32> to vector<2x8x16xf32>
    %91 = vector.extract_strided_slice %33 {offsets = [0, 160], sizes = [16, 16], strides = [1, 1]} : vector<16x192xf32> to vector<16x16xf32>
    %92 = vector.shape_cast %91 : vector<16x16xf32> to vector<2x8x16xf32>
    "tpu.trace_start"() <{level = 10 : i32, message = "bqd,bkd->bqk"}> : () -> ()
    %cst_33 = arith.constant dense<0.000000e+00> : vector<2x8x8xf32>
    %93 = tpu.matmul %88, %90, %cst_33 {dimension_numbers = #tpu.dot_dimension_numbers<[2], [2], [1], [1], [0, 0, 0, 1, 1, 1], [0], [0]>} : vector<2x8x16xf32>, vector<2x8x16xf32>, vector<2x8x8xf32> -> vector<2x8x8xf32>
    "tpu.trace_stop"() : () -> ()
    %cst_34 = arith.constant 2.500000e-01 : f32
    %94 = vector.broadcast %cst_34 : f32 to vector<2x8x8xf32>
    %95 = arith.mulf %93, %94 : vector<2x8x8xf32>
    %96 = vector.broadcast %26 : vector<2x1x8xf32> to vector<2x8x8xf32>
    %97 = arith.addf %95, %96 : vector<2x8x8xf32>
    %cst_35 = arith.constant dense<0xFF800000> : vector<2x8xf32>
    %98 = vector.multi_reduction <maximumf>, %97, %cst_35 [2] : vector<2x8x8xf32> to vector<2x8xf32>
    %99 = vector.shape_cast %98 : vector<2x8xf32> to vector<2x8x1xf32>
    %100 = vector.broadcast %99 : vector<2x8x1xf32> to vector<2x8x8xf32>
    %101 = arith.subf %97, %100 : vector<2x8x8xf32>
    %102 = math.exp %101 : vector<2x8x8xf32>
    %cst_36 = arith.constant dense<0.000000e+00> : vector<2x8xf32>
    %103 = vector.multi_reduction <add>, %102, %cst_36 [2] : vector<2x8x8xf32> to vector<2x8xf32>
    %104 = vector.shape_cast %103 : vector<2x8xf32> to vector<2x8x1xf32>
    %105 = tpu.reciprocal %104 {approx = true} : vector<2x8x1xf32> -> vector<2x8x1xf32>
    %106 = vector.broadcast %105 : vector<2x8x1xf32> to vector<2x8x8xf32>
    %107 = arith.mulf %102, %106 : vector<2x8x8xf32>
    "tpu.trace_start"() <{level = 10 : i32, message = "bqk,bkd->bqd"}> : () -> ()
    %cst_37 = arith.constant dense<0.000000e+00> : vector<2x8x16xf32>
    %108 = tpu.matmul %107, %92, %cst_37 {dimension_numbers = #tpu.dot_dimension_numbers<[2], [1], [1], [2], [0, 0, 0, 1, 1, 2], [0], [0]>} : vector<2x8x8xf32>, vector<2x8x16xf32>, vector<2x8x16xf32> -> vector<2x8x16xf32>
    "tpu.trace_stop"() : () -> ()
    %109 = vector.shape_cast %108 : vector<2x8x16xf32> to vector<16x16xf32>
    %110 = vector.extract_strided_slice %35 {offsets = [32, 0], sizes = [16, 64], strides = [1, 1]} : vector<64x64xf32> to vector<16x64xf32>
    %cst_38 = arith.constant dense<0.000000e+00> : vector<16x64xf32>
    %111 = tpu.matmul %109, %110, %cst_38 {dimension_numbers = #tpu.dot_dimension_numbers<[1], [0], [0], [1], [0, 0, 1, 1], [], []>} : vector<16x16xf32>, vector<16x64xf32>, vector<16x64xf32> -> vector<16x64xf32>
    %112 = arith.addf %86, %111 : vector<16x64xf32>
    %113 = vector.extract_strided_slice %33 {offsets = [0, 48], sizes = [16, 16], strides = [1, 1]} : vector<16x192xf32> to vector<16x16xf32>
    %114 = vector.shape_cast %113 : vector<16x16xf32> to vector<2x8x16xf32>
    %115 = vector.extract_strided_slice %33 {offsets = [0, 112], sizes = [16, 16], strides = [1, 1]} : vector<16x192xf32> to vector<16x16xf32>
    %116 = vector.shape_cast %115 : vector<16x16xf32> to vector<2x8x16xf32>
    %117 = vector.extract_strided_slice %33 {offsets = [0, 176], sizes = [16, 16], strides = [1, 1]} : vector<16x192xf32> to vector<16x16xf32>
    %118 = vector.shape_cast %117 : vector<16x16xf32> to vector<2x8x16xf32>
    "tpu.trace_start"() <{level = 10 : i32, message = "bqd,bkd->bqk"}> : () -> ()
    %cst_39 = arith.constant dense<0.000000e+00> : vector<2x8x8xf32>
    %119 = tpu.matmul %114, %116, %cst_39 {dimension_numbers = #tpu.dot_dimension_numbers<[2], [2], [1], [1], [0, 0, 0, 1, 1, 1], [0], [0]>} : vector<2x8x16xf32>, vector<2x8x16xf32>, vector<2x8x8xf32> -> vector<2x8x8xf32>
    "tpu.trace_stop"() : () -> ()
    %cst_40 = arith.constant 2.500000e-01 : f32
    %120 = vector.broadcast %cst_40 : f32 to vector<2x8x8xf32>
    %121 = arith.mulf %119, %120 : vector<2x8x8xf32>
    %122 = vector.broadcast %26 : vector<2x1x8xf32> to vector<2x8x8xf32>
    %123 = arith.addf %121, %122 : vector<2x8x8xf32>
    %cst_41 = arith.constant dense<0xFF800000> : vector<2x8xf32>
    %124 = vector.multi_reduction <maximumf>, %123, %cst_41 [2] : vector<2x8x8xf32> to vector<2x8xf32>
    %125 = vector.shape_cast %124 : vector<2x8xf32> to vector<2x8x1xf32>
    %126 = vector.broadcast %125 : vector<2x8x1xf32> to vector<2x8x8xf32>
    %127 = arith.subf %123, %126 : vector<2x8x8xf32>
    %128 = math.exp %127 : vector<2x8x8xf32>
    %cst_42 = arith.constant dense<0.000000e+00> : vector<2x8xf32>
    %129 = vector.multi_reduction <add>, %128, %cst_42 [2] : vector<2x8x8xf32> to vector<2x8xf32>
    %130 = vector.shape_cast %129 : vector<2x8xf32> to vector<2x8x1xf32>
    %131 = tpu.reciprocal %130 {approx = true} : vector<2x8x1xf32> -> vector<2x8x1xf32>
    %132 = vector.broadcast %131 : vector<2x8x1xf32> to vector<2x8x8xf32>
    %133 = arith.mulf %128, %132 : vector<2x8x8xf32>
    "tpu.trace_start"() <{level = 10 : i32, message = "bqk,bkd->bqd"}> : () -> ()
    %cst_43 = arith.constant dense<0.000000e+00> : vector<2x8x16xf32>
    %134 = tpu.matmul %133, %118, %cst_43 {dimension_numbers = #tpu.dot_dimension_numbers<[2], [1], [1], [2], [0, 0, 0, 1, 1, 2], [0], [0]>} : vector<2x8x8xf32>, vector<2x8x16xf32>, vector<2x8x16xf32> -> vector<2x8x16xf32>
    "tpu.trace_stop"() : () -> ()
    %135 = vector.shape_cast %134 : vector<2x8x16xf32> to vector<16x16xf32>
    %136 = vector.extract_strided_slice %35 {offsets = [48, 0], sizes = [16, 64], strides = [1, 1]} : vector<64x64xf32> to vector<16x64xf32>
    %cst_44 = arith.constant dense<0.000000e+00> : vector<16x64xf32>
    %137 = tpu.matmul %135, %136, %cst_44 {dimension_numbers = #tpu.dot_dimension_numbers<[1], [0], [0], [1], [0, 0, 1, 1], [], []>} : vector<16x16xf32>, vector<16x64xf32>, vector<16x64xf32> -> vector<16x64xf32>
    %138 = arith.addf %112, %137 : vector<16x64xf32>
    %c0_45 = arith.constant 0 : index
    %c0_46 = arith.constant 0 : index
    %c0_47 = arith.constant 0 : index
    %139 = vector.load %arg7[%c0_45, %c0_46, %c0_47] : memref<2x1x64xf32, #tpu.memory_space<vmem>>, vector<1x1x64xf32>
    %140 = vector.shape_cast %139 : vector<1x1x64xf32> to vector<1x64xf32>
    %141 = vector.broadcast %140 : vector<1x64xf32> to vector<16x64xf32>
    %142 = arith.addf %138, %141 : vector<16x64xf32>
    %143 = arith.addf %142, %24 : vector<16x64xf32>
    %c0_48 = arith.constant 0 : index
    %c0_49 = arith.constant 0 : index
    %c0_50 = arith.constant 0 : index
    %144 = vector.load %arg8[%c0_48, %c0_49, %c0_50] : memref<2x1x64xf32, #tpu.memory_space<vmem>>, vector<1x1x64xf32>
    %145 = vector.shape_cast %144 : vector<1x1x64xf32> to vector<1x64xf32>
    %c0_51 = arith.constant 0 : index
    %c0_52 = arith.constant 0 : index
    %c0_53 = arith.constant 0 : index
    %146 = vector.load %arg9[%c0_51, %c0_52, %c0_53] : memref<2x1x64xf32, #tpu.memory_space<vmem>>, vector<1x1x64xf32>
    %147 = vector.shape_cast %146 : vector<1x1x64xf32> to vector<1x64xf32>
    %cst_54 = arith.constant dense<0.000000e+00> : vector<16xf32>
    %148 = vector.multi_reduction <add>, %143, %cst_54 [1] : vector<16x64xf32> to vector<16xf32>
    %149 = vector.shape_cast %148 : vector<16xf32> to vector<16x1xf32>
    %cst_55 = arith.constant 6.400000e+01 : f32
    %150 = vector.broadcast %cst_55 : f32 to vector<16x1xf32>
    %151 = arith.divf %149, %150 : vector<16x1xf32>
    %152 = vector.broadcast %151 : vector<16x1xf32> to vector<16x64xf32>
    %153 = arith.subf %143, %152 : vector<16x64xf32>
    %154 = arith.mulf %153, %153 : vector<16x64xf32>
    %cst_56 = arith.constant dense<0.000000e+00> : vector<16xf32>
    %155 = vector.multi_reduction <add>, %154, %cst_56 [1] : vector<16x64xf32> to vector<16xf32>
    %156 = vector.shape_cast %155 : vector<16xf32> to vector<16x1xf32>
    %cst_57 = arith.constant 6.400000e+01 : f32
    %157 = vector.broadcast %cst_57 : f32 to vector<16x1xf32>
    %158 = arith.divf %156, %157 : vector<16x1xf32>
    %159 = vector.broadcast %151 : vector<16x1xf32> to vector<16x64xf32>
    %160 = arith.subf %143, %159 : vector<16x64xf32>
    %cst_58 = arith.constant 9.99999996E-13 : f32
    %161 = vector.broadcast %cst_58 : f32 to vector<16x1xf32>
    %162 = arith.addf %158, %161 : vector<16x1xf32>
    %163 = math.rsqrt %162 : vector<16x1xf32>
    %164 = vector.broadcast %163 : vector<16x1xf32> to vector<16x64xf32>
    %165 = arith.mulf %160, %164 : vector<16x64xf32>
    %166 = vector.broadcast %145 : vector<1x64xf32> to vector<16x64xf32>
    %167 = arith.mulf %165, %166 : vector<16x64xf32>
    %168 = vector.broadcast %147 : vector<1x64xf32> to vector<16x64xf32>
    %169 = arith.addf %167, %168 : vector<16x64xf32>
    %c0_59 = arith.constant 0 : index
    %c0_60 = arith.constant 0 : index
    %c0_61 = arith.constant 0 : index
    %170 = vector.load %arg10[%c0_59, %c0_60, %c0_61] : memref<2x64x256xf32, #tpu.memory_space<vmem>>, vector<1x64x256xf32>
    %171 = vector.shape_cast %170 : vector<1x64x256xf32> to vector<64x256xf32>
    %cst_62 = arith.constant dense<0.000000e+00> : vector<16x256xf32>
    %172 = tpu.matmul %169, %171, %cst_62 {dimension_numbers = #tpu.dot_dimension_numbers<[1], [0], [0], [1], [0, 0, 1, 1], [], []>} : vector<16x64xf32>, vector<64x256xf32>, vector<16x256xf32> -> vector<16x256xf32>
    %c0_63 = arith.constant 0 : index
    %c0_64 = arith.constant 0 : index
    %c0_65 = arith.constant 0 : index
    %173 = vector.load %arg11[%c0_63, %c0_64, %c0_65] : memref<2x1x256xf32, #tpu.memory_space<vmem>>, vector<1x1x256xf32>
    %174 = vector.shape_cast %173 : vector<1x1x256xf32> to vector<1x256xf32>
    %175 = vector.broadcast %174 : vector<1x256xf32> to vector<16x256xf32>
    %176 = arith.addf %172, %175 : vector<16x256xf32>
    %cst_66 = arith.constant 5.000000e-01 : f32
    %177 = vector.broadcast %cst_66 : f32 to vector<16x256xf32>
    %178 = arith.mulf %177, %176 : vector<16x256xf32>
    %cst_67 = arith.constant 4.471500e-02 : f32
    %179 = vector.broadcast %cst_67 : f32 to vector<16x256xf32>
    %180 = arith.mulf %179, %176 : vector<16x256xf32>
    %181 = arith.mulf %180, %176 : vector<16x256xf32>
    %182 = arith.mulf %181, %176 : vector<16x256xf32>
    %183 = arith.addf %176, %182 : vector<16x256xf32>
    %cst_68 = arith.constant 0.797884583 : f32
    %184 = vector.broadcast %cst_68 : f32 to vector<16x256xf32>
    %185 = arith.mulf %184, %183 : vector<16x256xf32>
    %186 = math.tanh %185 : vector<16x256xf32>
    %cst_69 = arith.constant 1.000000e+00 : f32
    %187 = vector.broadcast %cst_69 : f32 to vector<16x256xf32>
    %188 = arith.addf %187, %186 : vector<16x256xf32>
    %189 = arith.mulf %178, %188 : vector<16x256xf32>
    %c0_70 = arith.constant 0 : index
    %c0_71 = arith.constant 0 : index
    %c0_72 = arith.constant 0 : index
    %190 = vector.load %arg12[%c0_70, %c0_71, %c0_72] : memref<2x256x64xf32, #tpu.memory_space<vmem>>, vector<1x256x64xf32>
    %191 = vector.shape_cast %190 : vector<1x256x64xf32> to vector<256x64xf32>
    %cst_73 = arith.constant dense<0.000000e+00> : vector<16x64xf32>
    %192 = tpu.matmul %189, %191, %cst_73 {dimension_numbers = #tpu.dot_dimension_numbers<[1], [0], [0], [1], [0, 0, 1, 1], [], []>} : vector<16x256xf32>, vector<256x64xf32>, vector<16x64xf32> -> vector<16x64xf32>
    %c0_74 = arith.constant 0 : index
    %c0_75 = arith.constant 0 : index
    %c0_76 = arith.constant 0 : index
    %193 = vector.load %arg13[%c0_74, %c0_75, %c0_76] : memref<2x1x64xf32, #tpu.memory_space<vmem>>, vector<1x1x64xf32>
    %194 = vector.shape_cast %193 : vector<1x1x64xf32> to vector<1x64xf32>
    %195 = vector.broadcast %194 : vector<1x64xf32> to vector<16x64xf32>
    %196 = arith.addf %192, %195 : vector<16x64xf32>
    %197 = arith.addf %196, %169 : vector<16x64xf32>
    %c0_77 = arith.constant 0 : index
    %c0_78 = arith.constant 0 : index
    %c0_79 = arith.constant 0 : index
    %198 = vector.load %arg14[%c0_77, %c0_78, %c0_79] : memref<2x1x64xf32, #tpu.memory_space<vmem>>, vector<1x1x64xf32>
    %199 = vector.shape_cast %198 : vector<1x1x64xf32> to vector<1x64xf32>
    %c0_80 = arith.constant 0 : index
    %c0_81 = arith.constant 0 : index
    %c0_82 = arith.constant 0 : index
    %200 = vector.load %arg15[%c0_80, %c0_81, %c0_82] : memref<2x1x64xf32, #tpu.memory_space<vmem>>, vector<1x1x64xf32>
    %201 = vector.shape_cast %200 : vector<1x1x64xf32> to vector<1x64xf32>
    %cst_83 = arith.constant dense<0.000000e+00> : vector<16xf32>
    %202 = vector.multi_reduction <add>, %197, %cst_83 [1] : vector<16x64xf32> to vector<16xf32>
    %203 = vector.shape_cast %202 : vector<16xf32> to vector<16x1xf32>
    %cst_84 = arith.constant 6.400000e+01 : f32
    %204 = vector.broadcast %cst_84 : f32 to vector<16x1xf32>
    %205 = arith.divf %203, %204 : vector<16x1xf32>
    %206 = vector.broadcast %205 : vector<16x1xf32> to vector<16x64xf32>
    %207 = arith.subf %197, %206 : vector<16x64xf32>
    %208 = arith.mulf %207, %207 : vector<16x64xf32>
    %cst_85 = arith.constant dense<0.000000e+00> : vector<16xf32>
    %209 = vector.multi_reduction <add>, %208, %cst_85 [1] : vector<16x64xf32> to vector<16xf32>
    %210 = vector.shape_cast %209 : vector<16xf32> to vector<16x1xf32>
    %cst_86 = arith.constant 6.400000e+01 : f32
    %211 = vector.broadcast %cst_86 : f32 to vector<16x1xf32>
    %212 = arith.divf %210, %211 : vector<16x1xf32>
    %213 = vector.broadcast %205 : vector<16x1xf32> to vector<16x64xf32>
    %214 = arith.subf %197, %213 : vector<16x64xf32>
    %cst_87 = arith.constant 9.99999996E-13 : f32
    %215 = vector.broadcast %cst_87 : f32 to vector<16x1xf32>
    %216 = arith.addf %212, %215 : vector<16x1xf32>
    %217 = math.rsqrt %216 : vector<16x1xf32>
    %218 = vector.broadcast %217 : vector<16x1xf32> to vector<16x64xf32>
    %219 = arith.mulf %214, %218 : vector<16x64xf32>
    %220 = vector.broadcast %199 : vector<1x64xf32> to vector<16x64xf32>
    %221 = arith.mulf %219, %220 : vector<16x64xf32>
    %222 = vector.broadcast %201 : vector<1x64xf32> to vector<16x64xf32>
    %223 = arith.addf %221, %222 : vector<16x64xf32>
    %c1 = arith.constant 1 : index
    %c0_88 = arith.constant 0 : index
    %c0_89 = arith.constant 0 : index
    %224 = vector.load %arg4[%c1, %c0_88, %c0_89] : memref<2x64x192xf32, #tpu.memory_space<vmem>>, vector<1x64x192xf32>
    %225 = vector.shape_cast %224 : vector<1x64x192xf32> to vector<64x192xf32>
    %cst_90 = arith.constant dense<0.000000e+00> : vector<16x192xf32>
    %226 = tpu.matmul %223, %225, %cst_90 {dimension_numbers = #tpu.dot_dimension_numbers<[1], [0], [0], [1], [0, 0, 1, 1], [], []>} : vector<16x64xf32>, vector<64x192xf32>, vector<16x192xf32> -> vector<16x192xf32>
    %c1_91 = arith.constant 1 : index
    %c0_92 = arith.constant 0 : index
    %c0_93 = arith.constant 0 : index
    %227 = vector.load %arg5[%c1_91, %c0_92, %c0_93] : memref<2x1x192xf32, #tpu.memory_space<vmem>>, vector<1x1x192xf32>
    %228 = vector.shape_cast %227 : vector<1x1x192xf32> to vector<1x192xf32>
    %229 = vector.broadcast %228 : vector<1x192xf32> to vector<16x192xf32>
    %230 = arith.addf %226, %229 : vector<16x192xf32>
    %c1_94 = arith.constant 1 : index
    %c0_95 = arith.constant 0 : index
    %c0_96 = arith.constant 0 : index
    %231 = vector.load %arg6[%c1_94, %c0_95, %c0_96] : memref<2x64x64xf32, #tpu.memory_space<vmem>>, vector<1x64x64xf32>
    %232 = vector.shape_cast %231 : vector<1x64x64xf32> to vector<64x64xf32>
    %233 = vector.extract_strided_slice %230 {offsets = [0, 0], sizes = [16, 16], strides = [1, 1]} : vector<16x192xf32> to vector<16x16xf32>
    %234 = vector.shape_cast %233 : vector<16x16xf32> to vector<2x8x16xf32>
    %235 = vector.extract_strided_slice %230 {offsets = [0, 64], sizes = [16, 16], strides = [1, 1]} : vector<16x192xf32> to vector<16x16xf32>
    %236 = vector.shape_cast %235 : vector<16x16xf32> to vector<2x8x16xf32>
    %237 = vector.extract_strided_slice %230 {offsets = [0, 128], sizes = [16, 16], strides = [1, 1]} : vector<16x192xf32> to vector<16x16xf32>
    %238 = vector.shape_cast %237 : vector<16x16xf32> to vector<2x8x16xf32>
    "tpu.trace_start"() <{level = 10 : i32, message = "bqd,bkd->bqk"}> : () -> ()
    %cst_97 = arith.constant dense<0.000000e+00> : vector<2x8x8xf32>
    %239 = tpu.matmul %234, %236, %cst_97 {dimension_numbers = #tpu.dot_dimension_numbers<[2], [2], [1], [1], [0, 0, 0, 1, 1, 1], [0], [0]>} : vector<2x8x16xf32>, vector<2x8x16xf32>, vector<2x8x8xf32> -> vector<2x8x8xf32>
    "tpu.trace_stop"() : () -> ()
    %cst_98 = arith.constant 2.500000e-01 : f32
    %240 = vector.broadcast %cst_98 : f32 to vector<2x8x8xf32>
    %241 = arith.mulf %239, %240 : vector<2x8x8xf32>
    %242 = vector.broadcast %26 : vector<2x1x8xf32> to vector<2x8x8xf32>
    %243 = arith.addf %241, %242 : vector<2x8x8xf32>
    %cst_99 = arith.constant dense<0xFF800000> : vector<2x8xf32>
    %244 = vector.multi_reduction <maximumf>, %243, %cst_99 [2] : vector<2x8x8xf32> to vector<2x8xf32>
    %245 = vector.shape_cast %244 : vector<2x8xf32> to vector<2x8x1xf32>
    %246 = vector.broadcast %245 : vector<2x8x1xf32> to vector<2x8x8xf32>
    %247 = arith.subf %243, %246 : vector<2x8x8xf32>
    %248 = math.exp %247 : vector<2x8x8xf32>
    %cst_100 = arith.constant dense<0.000000e+00> : vector<2x8xf32>
    %249 = vector.multi_reduction <add>, %248, %cst_100 [2] : vector<2x8x8xf32> to vector<2x8xf32>
    %250 = vector.shape_cast %249 : vector<2x8xf32> to vector<2x8x1xf32>
    %251 = tpu.reciprocal %250 {approx = true} : vector<2x8x1xf32> -> vector<2x8x1xf32>
    %252 = vector.broadcast %251 : vector<2x8x1xf32> to vector<2x8x8xf32>
    %253 = arith.mulf %248, %252 : vector<2x8x8xf32>
    "tpu.trace_start"() <{level = 10 : i32, message = "bqk,bkd->bqd"}> : () -> ()
    %cst_101 = arith.constant dense<0.000000e+00> : vector<2x8x16xf32>
    %254 = tpu.matmul %253, %238, %cst_101 {dimension_numbers = #tpu.dot_dimension_numbers<[2], [1], [1], [2], [0, 0, 0, 1, 1, 2], [0], [0]>} : vector<2x8x8xf32>, vector<2x8x16xf32>, vector<2x8x16xf32> -> vector<2x8x16xf32>
    "tpu.trace_stop"() : () -> ()
    %255 = vector.shape_cast %254 : vector<2x8x16xf32> to vector<16x16xf32>
    %256 = vector.extract_strided_slice %232 {offsets = [0, 0], sizes = [16, 64], strides = [1, 1]} : vector<64x64xf32> to vector<16x64xf32>
    %cst_102 = arith.constant dense<0.000000e+00> : vector<16x64xf32>
    %257 = tpu.matmul %255, %256, %cst_102 {dimension_numbers = #tpu.dot_dimension_numbers<[1], [0], [0], [1], [0, 0, 1, 1], [], []>} : vector<16x16xf32>, vector<16x64xf32>, vector<16x64xf32> -> vector<16x64xf32>
    %258 = vector.extract_strided_slice %230 {offsets = [0, 16], sizes = [16, 16], strides = [1, 1]} : vector<16x192xf32> to vector<16x16xf32>
    %259 = vector.shape_cast %258 : vector<16x16xf32> to vector<2x8x16xf32>
    %260 = vector.extract_strided_slice %230 {offsets = [0, 80], sizes = [16, 16], strides = [1, 1]} : vector<16x192xf32> to vector<16x16xf32>
    %261 = vector.shape_cast %260 : vector<16x16xf32> to vector<2x8x16xf32>
    %262 = vector.extract_strided_slice %230 {offsets = [0, 144], sizes = [16, 16], strides = [1, 1]} : vector<16x192xf32> to vector<16x16xf32>
    %263 = vector.shape_cast %262 : vector<16x16xf32> to vector<2x8x16xf32>
    "tpu.trace_start"() <{level = 10 : i32, message = "bqd,bkd->bqk"}> : () -> ()
    %cst_103 = arith.constant dense<0.000000e+00> : vector<2x8x8xf32>
    %264 = tpu.matmul %259, %261, %cst_103 {dimension_numbers = #tpu.dot_dimension_numbers<[2], [2], [1], [1], [0, 0, 0, 1, 1, 1], [0], [0]>} : vector<2x8x16xf32>, vector<2x8x16xf32>, vector<2x8x8xf32> -> vector<2x8x8xf32>
    "tpu.trace_stop"() : () -> ()
    %cst_104 = arith.constant 2.500000e-01 : f32
    %265 = vector.broadcast %cst_104 : f32 to vector<2x8x8xf32>
    %266 = arith.mulf %264, %265 : vector<2x8x8xf32>
    %267 = vector.broadcast %26 : vector<2x1x8xf32> to vector<2x8x8xf32>
    %268 = arith.addf %266, %267 : vector<2x8x8xf32>
    %cst_105 = arith.constant dense<0xFF800000> : vector<2x8xf32>
    %269 = vector.multi_reduction <maximumf>, %268, %cst_105 [2] : vector<2x8x8xf32> to vector<2x8xf32>
    %270 = vector.shape_cast %269 : vector<2x8xf32> to vector<2x8x1xf32>
    %271 = vector.broadcast %270 : vector<2x8x1xf32> to vector<2x8x8xf32>
    %272 = arith.subf %268, %271 : vector<2x8x8xf32>
    %273 = math.exp %272 : vector<2x8x8xf32>
    %cst_106 = arith.constant dense<0.000000e+00> : vector<2x8xf32>
    %274 = vector.multi_reduction <add>, %273, %cst_106 [2] : vector<2x8x8xf32> to vector<2x8xf32>
    %275 = vector.shape_cast %274 : vector<2x8xf32> to vector<2x8x1xf32>
    %276 = tpu.reciprocal %275 {approx = true} : vector<2x8x1xf32> -> vector<2x8x1xf32>
    %277 = vector.broadcast %276 : vector<2x8x1xf32> to vector<2x8x8xf32>
    %278 = arith.mulf %273, %277 : vector<2x8x8xf32>
    "tpu.trace_start"() <{level = 10 : i32, message = "bqk,bkd->bqd"}> : () -> ()
    %cst_107 = arith.constant dense<0.000000e+00> : vector<2x8x16xf32>
    %279 = tpu.matmul %278, %263, %cst_107 {dimension_numbers = #tpu.dot_dimension_numbers<[2], [1], [1], [2], [0, 0, 0, 1, 1, 2], [0], [0]>} : vector<2x8x8xf32>, vector<2x8x16xf32>, vector<2x8x16xf32> -> vector<2x8x16xf32>
    "tpu.trace_stop"() : () -> ()
    %280 = vector.shape_cast %279 : vector<2x8x16xf32> to vector<16x16xf32>
    %281 = vector.extract_strided_slice %232 {offsets = [16, 0], sizes = [16, 64], strides = [1, 1]} : vector<64x64xf32> to vector<16x64xf32>
    %cst_108 = arith.constant dense<0.000000e+00> : vector<16x64xf32>
    %282 = tpu.matmul %280, %281, %cst_108 {dimension_numbers = #tpu.dot_dimension_numbers<[1], [0], [0], [1], [0, 0, 1, 1], [], []>} : vector<16x16xf32>, vector<16x64xf32>, vector<16x64xf32> -> vector<16x64xf32>
    %283 = arith.addf %257, %282 : vector<16x64xf32>
    %284 = vector.extract_strided_slice %230 {offsets = [0, 32], sizes = [16, 16], strides = [1, 1]} : vector<16x192xf32> to vector<16x16xf32>
    %285 = vector.shape_cast %284 : vector<16x16xf32> to vector<2x8x16xf32>
    %286 = vector.extract_strided_slice %230 {offsets = [0, 96], sizes = [16, 16], strides = [1, 1]} : vector<16x192xf32> to vector<16x16xf32>
    %287 = vector.shape_cast %286 : vector<16x16xf32> to vector<2x8x16xf32>
    %288 = vector.extract_strided_slice %230 {offsets = [0, 160], sizes = [16, 16], strides = [1, 1]} : vector<16x192xf32> to vector<16x16xf32>
    %289 = vector.shape_cast %288 : vector<16x16xf32> to vector<2x8x16xf32>
    "tpu.trace_start"() <{level = 10 : i32, message = "bqd,bkd->bqk"}> : () -> ()
    %cst_109 = arith.constant dense<0.000000e+00> : vector<2x8x8xf32>
    %290 = tpu.matmul %285, %287, %cst_109 {dimension_numbers = #tpu.dot_dimension_numbers<[2], [2], [1], [1], [0, 0, 0, 1, 1, 1], [0], [0]>} : vector<2x8x16xf32>, vector<2x8x16xf32>, vector<2x8x8xf32> -> vector<2x8x8xf32>
    "tpu.trace_stop"() : () -> ()
    %cst_110 = arith.constant 2.500000e-01 : f32
    %291 = vector.broadcast %cst_110 : f32 to vector<2x8x8xf32>
    %292 = arith.mulf %290, %291 : vector<2x8x8xf32>
    %293 = vector.broadcast %26 : vector<2x1x8xf32> to vector<2x8x8xf32>
    %294 = arith.addf %292, %293 : vector<2x8x8xf32>
    %cst_111 = arith.constant dense<0xFF800000> : vector<2x8xf32>
    %295 = vector.multi_reduction <maximumf>, %294, %cst_111 [2] : vector<2x8x8xf32> to vector<2x8xf32>
    %296 = vector.shape_cast %295 : vector<2x8xf32> to vector<2x8x1xf32>
    %297 = vector.broadcast %296 : vector<2x8x1xf32> to vector<2x8x8xf32>
    %298 = arith.subf %294, %297 : vector<2x8x8xf32>
    %299 = math.exp %298 : vector<2x8x8xf32>
    %cst_112 = arith.constant dense<0.000000e+00> : vector<2x8xf32>
    %300 = vector.multi_reduction <add>, %299, %cst_112 [2] : vector<2x8x8xf32> to vector<2x8xf32>
    %301 = vector.shape_cast %300 : vector<2x8xf32> to vector<2x8x1xf32>
    %302 = tpu.reciprocal %301 {approx = true} : vector<2x8x1xf32> -> vector<2x8x1xf32>
    %303 = vector.broadcast %302 : vector<2x8x1xf32> to vector<2x8x8xf32>
    %304 = arith.mulf %299, %303 : vector<2x8x8xf32>
    "tpu.trace_start"() <{level = 10 : i32, message = "bqk,bkd->bqd"}> : () -> ()
    %cst_113 = arith.constant dense<0.000000e+00> : vector<2x8x16xf32>
    %305 = tpu.matmul %304, %289, %cst_113 {dimension_numbers = #tpu.dot_dimension_numbers<[2], [1], [1], [2], [0, 0, 0, 1, 1, 2], [0], [0]>} : vector<2x8x8xf32>, vector<2x8x16xf32>, vector<2x8x16xf32> -> vector<2x8x16xf32>
    "tpu.trace_stop"() : () -> ()
    %306 = vector.shape_cast %305 : vector<2x8x16xf32> to vector<16x16xf32>
    %307 = vector.extract_strided_slice %232 {offsets = [32, 0], sizes = [16, 64], strides = [1, 1]} : vector<64x64xf32> to vector<16x64xf32>
    %cst_114 = arith.constant dense<0.000000e+00> : vector<16x64xf32>
    %308 = tpu.matmul %306, %307, %cst_114 {dimension_numbers = #tpu.dot_dimension_numbers<[1], [0], [0], [1], [0, 0, 1, 1], [], []>} : vector<16x16xf32>, vector<16x64xf32>, vector<16x64xf32> -> vector<16x64xf32>
    %309 = arith.addf %283, %308 : vector<16x64xf32>
    %310 = vector.extract_strided_slice %230 {offsets = [0, 48], sizes = [16, 16], strides = [1, 1]} : vector<16x192xf32> to vector<16x16xf32>
    %311 = vector.shape_cast %310 : vector<16x16xf32> to vector<2x8x16xf32>
    %312 = vector.extract_strided_slice %230 {offsets = [0, 112], sizes = [16, 16], strides = [1, 1]} : vector<16x192xf32> to vector<16x16xf32>
    %313 = vector.shape_cast %312 : vector<16x16xf32> to vector<2x8x16xf32>
    %314 = vector.extract_strided_slice %230 {offsets = [0, 176], sizes = [16, 16], strides = [1, 1]} : vector<16x192xf32> to vector<16x16xf32>
    %315 = vector.shape_cast %314 : vector<16x16xf32> to vector<2x8x16xf32>
    "tpu.trace_start"() <{level = 10 : i32, message = "bqd,bkd->bqk"}> : () -> ()
    %cst_115 = arith.constant dense<0.000000e+00> : vector<2x8x8xf32>
    %316 = tpu.matmul %311, %313, %cst_115 {dimension_numbers = #tpu.dot_dimension_numbers<[2], [2], [1], [1], [0, 0, 0, 1, 1, 1], [0], [0]>} : vector<2x8x16xf32>, vector<2x8x16xf32>, vector<2x8x8xf32> -> vector<2x8x8xf32>
    "tpu.trace_stop"() : () -> ()
    %cst_116 = arith.constant 2.500000e-01 : f32
    %317 = vector.broadcast %cst_116 : f32 to vector<2x8x8xf32>
    %318 = arith.mulf %316, %317 : vector<2x8x8xf32>
    %319 = vector.broadcast %26 : vector<2x1x8xf32> to vector<2x8x8xf32>
    %320 = arith.addf %318, %319 : vector<2x8x8xf32>
    %cst_117 = arith.constant dense<0xFF800000> : vector<2x8xf32>
    %321 = vector.multi_reduction <maximumf>, %320, %cst_117 [2] : vector<2x8x8xf32> to vector<2x8xf32>
    %322 = vector.shape_cast %321 : vector<2x8xf32> to vector<2x8x1xf32>
    %323 = vector.broadcast %322 : vector<2x8x1xf32> to vector<2x8x8xf32>
    %324 = arith.subf %320, %323 : vector<2x8x8xf32>
    %325 = math.exp %324 : vector<2x8x8xf32>
    %cst_118 = arith.constant dense<0.000000e+00> : vector<2x8xf32>
    %326 = vector.multi_reduction <add>, %325, %cst_118 [2] : vector<2x8x8xf32> to vector<2x8xf32>
    %327 = vector.shape_cast %326 : vector<2x8xf32> to vector<2x8x1xf32>
    %328 = tpu.reciprocal %327 {approx = true} : vector<2x8x1xf32> -> vector<2x8x1xf32>
    %329 = vector.broadcast %328 : vector<2x8x1xf32> to vector<2x8x8xf32>
    %330 = arith.mulf %325, %329 : vector<2x8x8xf32>
    "tpu.trace_start"() <{level = 10 : i32, message = "bqk,bkd->bqd"}> : () -> ()
    %cst_119 = arith.constant dense<0.000000e+00> : vector<2x8x16xf32>
    %331 = tpu.matmul %330, %315, %cst_119 {dimension_numbers = #tpu.dot_dimension_numbers<[2], [1], [1], [2], [0, 0, 0, 1, 1, 2], [0], [0]>} : vector<2x8x8xf32>, vector<2x8x16xf32>, vector<2x8x16xf32> -> vector<2x8x16xf32>
    "tpu.trace_stop"() : () -> ()
    %332 = vector.shape_cast %331 : vector<2x8x16xf32> to vector<16x16xf32>
    %333 = vector.extract_strided_slice %232 {offsets = [48, 0], sizes = [16, 64], strides = [1, 1]} : vector<64x64xf32> to vector<16x64xf32>
    %cst_120 = arith.constant dense<0.000000e+00> : vector<16x64xf32>
    %334 = tpu.matmul %332, %333, %cst_120 {dimension_numbers = #tpu.dot_dimension_numbers<[1], [0], [0], [1], [0, 0, 1, 1], [], []>} : vector<16x16xf32>, vector<16x64xf32>, vector<16x64xf32> -> vector<16x64xf32>
    %335 = arith.addf %309, %334 : vector<16x64xf32>
    %c1_121 = arith.constant 1 : index
    %c0_122 = arith.constant 0 : index
    %c0_123 = arith.constant 0 : index
    %336 = vector.load %arg7[%c1_121, %c0_122, %c0_123] : memref<2x1x64xf32, #tpu.memory_space<vmem>>, vector<1x1x64xf32>
    %337 = vector.shape_cast %336 : vector<1x1x64xf32> to vector<1x64xf32>
    %338 = vector.broadcast %337 : vector<1x64xf32> to vector<16x64xf32>
    %339 = arith.addf %335, %338 : vector<16x64xf32>
    %340 = arith.addf %339, %223 : vector<16x64xf32>
    %c1_124 = arith.constant 1 : index
    %c0_125 = arith.constant 0 : index
    %c0_126 = arith.constant 0 : index
    %341 = vector.load %arg8[%c1_124, %c0_125, %c0_126] : memref<2x1x64xf32, #tpu.memory_space<vmem>>, vector<1x1x64xf32>
    %342 = vector.shape_cast %341 : vector<1x1x64xf32> to vector<1x64xf32>
    %c1_127 = arith.constant 1 : index
    %c0_128 = arith.constant 0 : index
    %c0_129 = arith.constant 0 : index
    %343 = vector.load %arg9[%c1_127, %c0_128, %c0_129] : memref<2x1x64xf32, #tpu.memory_space<vmem>>, vector<1x1x64xf32>
    %344 = vector.shape_cast %343 : vector<1x1x64xf32> to vector<1x64xf32>
    %cst_130 = arith.constant dense<0.000000e+00> : vector<16xf32>
    %345 = vector.multi_reduction <add>, %340, %cst_130 [1] : vector<16x64xf32> to vector<16xf32>
    %346 = vector.shape_cast %345 : vector<16xf32> to vector<16x1xf32>
    %cst_131 = arith.constant 6.400000e+01 : f32
    %347 = vector.broadcast %cst_131 : f32 to vector<16x1xf32>
    %348 = arith.divf %346, %347 : vector<16x1xf32>
    %349 = vector.broadcast %348 : vector<16x1xf32> to vector<16x64xf32>
    %350 = arith.subf %340, %349 : vector<16x64xf32>
    %351 = arith.mulf %350, %350 : vector<16x64xf32>
    %cst_132 = arith.constant dense<0.000000e+00> : vector<16xf32>
    %352 = vector.multi_reduction <add>, %351, %cst_132 [1] : vector<16x64xf32> to vector<16xf32>
    %353 = vector.shape_cast %352 : vector<16xf32> to vector<16x1xf32>
    %cst_133 = arith.constant 6.400000e+01 : f32
    %354 = vector.broadcast %cst_133 : f32 to vector<16x1xf32>
    %355 = arith.divf %353, %354 : vector<16x1xf32>
    %356 = vector.broadcast %348 : vector<16x1xf32> to vector<16x64xf32>
    %357 = arith.subf %340, %356 : vector<16x64xf32>
    %cst_134 = arith.constant 9.99999996E-13 : f32
    %358 = vector.broadcast %cst_134 : f32 to vector<16x1xf32>
    %359 = arith.addf %355, %358 : vector<16x1xf32>
    %360 = math.rsqrt %359 : vector<16x1xf32>
    %361 = vector.broadcast %360 : vector<16x1xf32> to vector<16x64xf32>
    %362 = arith.mulf %357, %361 : vector<16x64xf32>
    %363 = vector.broadcast %342 : vector<1x64xf32> to vector<16x64xf32>
    %364 = arith.mulf %362, %363 : vector<16x64xf32>
    %365 = vector.broadcast %344 : vector<1x64xf32> to vector<16x64xf32>
    %366 = arith.addf %364, %365 : vector<16x64xf32>
    %c1_135 = arith.constant 1 : index
    %c0_136 = arith.constant 0 : index
    %c0_137 = arith.constant 0 : index
    %367 = vector.load %arg10[%c1_135, %c0_136, %c0_137] : memref<2x64x256xf32, #tpu.memory_space<vmem>>, vector<1x64x256xf32>
    %368 = vector.shape_cast %367 : vector<1x64x256xf32> to vector<64x256xf32>
    %cst_138 = arith.constant dense<0.000000e+00> : vector<16x256xf32>
    %369 = tpu.matmul %366, %368, %cst_138 {dimension_numbers = #tpu.dot_dimension_numbers<[1], [0], [0], [1], [0, 0, 1, 1], [], []>} : vector<16x64xf32>, vector<64x256xf32>, vector<16x256xf32> -> vector<16x256xf32>
    %c1_139 = arith.constant 1 : index
    %c0_140 = arith.constant 0 : index
    %c0_141 = arith.constant 0 : index
    %370 = vector.load %arg11[%c1_139, %c0_140, %c0_141] : memref<2x1x256xf32, #tpu.memory_space<vmem>>, vector<1x1x256xf32>
    %371 = vector.shape_cast %370 : vector<1x1x256xf32> to vector<1x256xf32>
    %372 = vector.broadcast %371 : vector<1x256xf32> to vector<16x256xf32>
    %373 = arith.addf %369, %372 : vector<16x256xf32>
    %cst_142 = arith.constant 5.000000e-01 : f32
    %374 = vector.broadcast %cst_142 : f32 to vector<16x256xf32>
    %375 = arith.mulf %374, %373 : vector<16x256xf32>
    %cst_143 = arith.constant 4.471500e-02 : f32
    %376 = vector.broadcast %cst_143 : f32 to vector<16x256xf32>
    %377 = arith.mulf %376, %373 : vector<16x256xf32>
    %378 = arith.mulf %377, %373 : vector<16x256xf32>
    %379 = arith.mulf %378, %373 : vector<16x256xf32>
    %380 = arith.addf %373, %379 : vector<16x256xf32>
    %cst_144 = arith.constant 0.797884583 : f32
    %381 = vector.broadcast %cst_144 : f32 to vector<16x256xf32>
    %382 = arith.mulf %381, %380 : vector<16x256xf32>
    %383 = math.tanh %382 : vector<16x256xf32>
    %cst_145 = arith.constant 1.000000e+00 : f32
    %384 = vector.broadcast %cst_145 : f32 to vector<16x256xf32>
    %385 = arith.addf %384, %383 : vector<16x256xf32>
    %386 = arith.mulf %375, %385 : vector<16x256xf32>
    %c1_146 = arith.constant 1 : index
    %c0_147 = arith.constant 0 : index
    %c0_148 = arith.constant 0 : index
    %387 = vector.load %arg12[%c1_146, %c0_147, %c0_148] : memref<2x256x64xf32, #tpu.memory_space<vmem>>, vector<1x256x64xf32>
    %388 = vector.shape_cast %387 : vector<1x256x64xf32> to vector<256x64xf32>
    %cst_149 = arith.constant dense<0.000000e+00> : vector<16x64xf32>
    %389 = tpu.matmul %386, %388, %cst_149 {dimension_numbers = #tpu.dot_dimension_numbers<[1], [0], [0], [1], [0, 0, 1, 1], [], []>} : vector<16x256xf32>, vector<256x64xf32>, vector<16x64xf32> -> vector<16x64xf32>
    %c1_150 = arith.constant 1 : index
    %c0_151 = arith.constant 0 : index
    %c0_152 = arith.constant 0 : index
    %390 = vector.load %arg13[%c1_150, %c0_151, %c0_152] : memref<2x1x64xf32, #tpu.memory_space<vmem>>, vector<1x1x64xf32>
    %391 = vector.shape_cast %390 : vector<1x1x64xf32> to vector<1x64xf32>
    %392 = vector.broadcast %391 : vector<1x64xf32> to vector<16x64xf32>
    %393 = arith.addf %389, %392 : vector<16x64xf32>
    %394 = arith.addf %393, %366 : vector<16x64xf32>
    %c1_153 = arith.constant 1 : index
    %c0_154 = arith.constant 0 : index
    %c0_155 = arith.constant 0 : index
    %395 = vector.load %arg14[%c1_153, %c0_154, %c0_155] : memref<2x1x64xf32, #tpu.memory_space<vmem>>, vector<1x1x64xf32>
    %396 = vector.shape_cast %395 : vector<1x1x64xf32> to vector<1x64xf32>
    %c1_156 = arith.constant 1 : index
    %c0_157 = arith.constant 0 : index
    %c0_158 = arith.constant 0 : index
    %397 = vector.load %arg15[%c1_156, %c0_157, %c0_158] : memref<2x1x64xf32, #tpu.memory_space<vmem>>, vector<1x1x64xf32>
    %398 = vector.shape_cast %397 : vector<1x1x64xf32> to vector<1x64xf32>
    %cst_159 = arith.constant dense<0.000000e+00> : vector<16xf32>
    %399 = vector.multi_reduction <add>, %394, %cst_159 [1] : vector<16x64xf32> to vector<16xf32>
    %400 = vector.shape_cast %399 : vector<16xf32> to vector<16x1xf32>
    %cst_160 = arith.constant 6.400000e+01 : f32
    %401 = vector.broadcast %cst_160 : f32 to vector<16x1xf32>
    %402 = arith.divf %400, %401 : vector<16x1xf32>
    %403 = vector.broadcast %402 : vector<16x1xf32> to vector<16x64xf32>
    %404 = arith.subf %394, %403 : vector<16x64xf32>
    %405 = arith.mulf %404, %404 : vector<16x64xf32>
    %cst_161 = arith.constant dense<0.000000e+00> : vector<16xf32>
    %406 = vector.multi_reduction <add>, %405, %cst_161 [1] : vector<16x64xf32> to vector<16xf32>
    %407 = vector.shape_cast %406 : vector<16xf32> to vector<16x1xf32>
    %cst_162 = arith.constant 6.400000e+01 : f32
    %408 = vector.broadcast %cst_162 : f32 to vector<16x1xf32>
    %409 = arith.divf %407, %408 : vector<16x1xf32>
    %410 = vector.broadcast %402 : vector<16x1xf32> to vector<16x64xf32>
    %411 = arith.subf %394, %410 : vector<16x64xf32>
    %cst_163 = arith.constant 9.99999996E-13 : f32
    %412 = vector.broadcast %cst_163 : f32 to vector<16x1xf32>
    %413 = arith.addf %409, %412 : vector<16x1xf32>
    %414 = math.rsqrt %413 : vector<16x1xf32>
    %415 = vector.broadcast %414 : vector<16x1xf32> to vector<16x64xf32>
    %416 = arith.mulf %411, %415 : vector<16x64xf32>
    %417 = vector.broadcast %396 : vector<1x64xf32> to vector<16x64xf32>
    %418 = arith.mulf %416, %417 : vector<16x64xf32>
    %419 = vector.broadcast %398 : vector<1x64xf32> to vector<16x64xf32>
    %420 = arith.addf %418, %419 : vector<16x64xf32>
    %421 = vector.shape_cast %420 : vector<16x64xf32> to vector<2x8x64xf32>
    %422 = vector.extract_strided_slice %421 {offsets = [0, 0, 0], sizes = [2, 1, 64], strides = [1, 1, 1]} : vector<2x8x64xf32> to vector<2x1x64xf32>
    %423 = vector.shape_cast %422 : vector<2x1x64xf32> to vector<2x64xf32>
    %c0_164 = arith.constant 0 : index
    %c0_165 = arith.constant 0 : index
    %424 = vector.load %arg16[%c0_164, %c0_165] : memref<2x64xf32, #tpu.memory_space<vmem>>, vector<2x64xf32>
    %c0_166 = arith.constant 0 : index
    %c0_167 = arith.constant 0 : index
    %425 = vector.load %arg17[%c0_166, %c0_167] : memref<2x64xf32, #tpu.memory_space<vmem>>, vector<2x64xf32>
    %426 = arith.addf %424, %425 : vector<2x64xf32>
    %c0_168 = arith.constant 0 : index
    %c0_169 = arith.constant 0 : index
    %427 = vector.load %arg18[%c0_168, %c0_169] : memref<2x64xf32, #tpu.memory_space<vmem>>, vector<2x64xf32>
    %428 = arith.addf %426, %427 : vector<2x64xf32>
    %c0_170 = arith.constant 0 : index
    %c0_171 = arith.constant 0 : index
    %429 = vector.load %arg19[%c0_170, %c0_171] : memref<2x64xf32, #tpu.memory_space<vmem>>, vector<2x64xf32>
    %430 = arith.addf %428, %429 : vector<2x64xf32>
    %cst_172 = arith.constant 2.500000e-01 : f32
    %431 = vector.broadcast %cst_172 : f32 to vector<2x64xf32>
    %432 = arith.mulf %430, %431 : vector<2x64xf32>
    %433 = arith.addf %423, %432 : vector<2x64xf32>
    %c0_173 = arith.constant 0 : index
    %c0_174 = arith.constant 0 : index
    %434 = vector.load %arg20[%c0_173, %c0_174] : memref<2x64xf32, #tpu.memory_space<vmem>>, vector<2x64xf32>
    tpu.vector_store %arg20[%c0_173, %c0_174], %433 {strides = array<i32>} : memref<2x64xf32, #tpu.memory_space<vmem>>, vector<2x64xf32>,
    return
  }
}

</mosaic_0001>

<bundles_post_ra>
// kernel: behrt_demo_forward.1
= control target key start
LH: loop header
LB: loop body
LE: loop exit
PB: predicated region body
PF: predicated region fallthrough
CT: control target
= control target key end

     0   :  { %s6386_s0 = inlined_call_operand.vmem [shape: f32[16,64], index: 0, kind: input, shape index: {}]   ;;  %s6387_s1 = inlined_call_operand.vmem [shape: f32[2,8], index: 1, kind: input, shape index: {}]   ;;  %s6388_s2 = inlined_call_operand.vmem [shape: f32[1,64], index: 2, kind: input, shape index: {}]   ;;  %s6389_s3 = inlined_call_operand.vmem [shape: f32[1,64], index: 3, kind: input, shape index: {}]   ;;  %s6390_s4 = inlined_call_operand.vmem [shape: f32[2,64,192], index: 4, kind: input, shape index: {}]   ;;  %s6391_s5 = inlined_call_operand.vmem [shape: f32[2,1,192], index: 5, kind: input, shape index: {}]   ;;  %s6392_s6 = inlined_call_operand.vmem [shape: f32[2,64,64], index: 6, kind: input, shape index: {}]   ;;  %s6393_s7 = inlined_call_operand.vmem [shape: f32[2,1,64], index: 7, kind: input, shape index: {}]   ;;  %s6394_s8 = inlined_call_operand.vmem [shape: f32[2,1,64], index: 8, kind: input, shape index: {}]   ;;  %s6395_s9 = inlined_call_operand.vmem [shape: f32[2,1,64], index: 9, kind: input, shape index: {}]   ;;  %s6396_s10 = inlined_call_operand.vmem [shape: f32[2,64,256], index: 10, kind: input, shape index: {}]   ;;  %s6397_s11 = inlined_call_operand.vmem [shape: f32[2,1,256], index: 11, kind: input, shape index: {}]   ;;  %s6398_s12 = inlined_call_operand.vmem [shape: f32[2,256,64], index: 12, kind: input, shape index: {}]   ;;  %s6399_s13 = inlined_call_operand.vmem [shape: f32[2,1,64], index: 13, kind: input, shape index: {}]   ;;  %s6400_s14 = inlined_call_operand.vmem [shape: f32[2,1,64], index: 14, kind: input, shape index: {}]   ;;  %s6401_s15 = inlined_call_operand.vmem [shape: f32[2,1,64], index: 15, kind: input, shape index: {}]   ;;  %s6402_s16 = inlined_call_operand.vmem [shape: f32[2,64], index: 16, kind: input, shape index: {}]   ;;  %s6403_s17 = inlined_call_operand.vmem [shape: f32[2,64], index: 17, kind: input, shape index: {}]   ;;  %s6404_s18 = inlined_call_operand.vmem [shape: f32[2,64], index: 18, kind: input, shape index: {}]   ;;  %s6405_s19 = inlined_call_operand.vmem [shape: f32[2,64], index: 19, kind: input, shape index: {}]   ;;  %s6406_s20 = inlined_call_operand.hbm [shape: f32[2,64], index: 20, kind: output, shape index: {}]  }
   0x1   :  { %6415 = sst [smem:[#allocation5_spill]] %s6386_s0 }
   0x2   :  { %6416 = sst [smem:[#allocation6_spill]] %s6387_s1 }
   0x3   :  { %6417 = sst [smem:[#allocation7_spill]] %s6388_s2 }
   0x4   :  { %6418 = sst [smem:[#allocation8_spill]] %s6389_s3 }
   0x5   :  { %6419 = sst [smem:[#allocation9_spill]] %s6390_s4 }
   0x6   :  { %s6420_s23 = sld [smem:[#allocation5_spill]]  ;;  %vm70_vm0 = vcmask 523264  }
   0xc   :  { %v66_v0 = vld [vmem:[%s6420_s23] sm:$0xff]  ;;  %v67_v1 = vld [vmem:[%s6420_s23 + $0x8] sm:$0xff] }
   0xd   :  { %25 = vsyncpa [#allocation3], 0  ;;  %v71_v2 = vsel %vm70_vm0, %v66_v0, 0.0  ;;  %v74_v3 = vsel %vm70_vm0, %v67_v1, 0.0  ;;  %s6421_s26 = sld [smem:[#allocation9_spill]]  ;;  %v5338_v33 = vmov 0.0   ;;  %v127_v55 = vlaneseq }
   0xe   :  { %72 = vadd.xlane.f32.xlu0 %v71_v2  ;;  %236 = vmatprep.mubr.f32.mxu0 %v5338_v33  ;;  %s6422_s30 = sld [smem:[#allocation7_spill]]  ;;  %s6423_s1 = sld [smem:[#allocation8_spill]]  ;;  %vm5339_vm1 = vmmov 0   ;;  %v154_v58 = vld [vmem:[%s6391_s5] sm:$0x3]  ;;  %vm260_vm2 = vcmask 130048  }
   0xf   :  { %4825 = vmatprep.subr.mxu1 %v5338_v33  ;;  %v128_v56 = vshrl.u32 %v127_v55, 7  ;;  %4827 = vmatprep.mubr.msk.f32.mxu1 %vm5339_vm1, %v5338_v33  ;;  %s5340_s24 = smov 64   ;;  %s5341_s2 = smov 48   ;;  %vm426_vm3 = vcmask 64512   ;;  %vm4457_vm4 = vcmask 1041409   ;;  %vm4460_vm5 = vcmask 517120  }
  0x10   :  { %s5342_s25 = smov 112   ;;  %s6424_s28 = sld [smem:[#allocation6_spill]] }
  0x11   :  { %v5534_v57 = vsub.s32 0, %v128_v56  ;;  %v5539_v59 = vsub.s32 1, %v128_v56  ;;  %s5344_s4 = smov 32   ;;  %s6413_s29 = smov 96  }
  0x12   :  { %75 = vadd.xlane.f32.xlu0 %v74_v3  ;;  %s6409_s0 = smov 80  }
  0x13   :  { %v139_v14 = vld [vmem:[%s6421_s26 + $0x8] sm:$0xff]  ;;  %v141_v15 = vld [vmem:[%s6421_s26 + $0x18] sm:$0xff]  ;;  %v138_v17 = vld [vmem:[%s6421_s26] sm:$0xff]  ;;  %v159_v60 = vrot.slane %v154_v58, %v5534_v57  ;;  %v163_v61 = vrot.slane %v154_v58, %v5539_v59 }
  0x14   :  { %v5031_v16 = vpack.c.bf16 %v141_v15, %v139_v14  ;;  %v140_v18 = vld [vmem:[%s6421_s26 + $0x10] sm:$0xff]  ;;  %v143_v20 = vld [vmem:[%s6421_s26 + $0x28] sm:$0xff]  ;;  %v145_v21 = vld [vmem:[%s6421_s26 + $0x38] sm:$0xff] }
  0x15   :  { %v5033_v19 = vpack.c.bf16 %v140_v18, %v138_v17  ;;  %v5035_v22 = vpack.c.bf16 %v145_v21, %v143_v20  ;;  %v142_v23 = vld [vmem:[%s6421_s26 + $0x20] sm:$0xff]  ;;  %v144_v24 = vld [vmem:[%s6421_s26 + $0x30] sm:$0xff]  ;;  %v147_v26 = vld [vmem:[%s6421_s26 + $0x48] sm:$0xff] }
  0x16   :  { %5032 = vmatprep.subr.bf16.mxu0 %v5031_v16  ;;  %v5037_v25 = vpack.c.bf16 %v144_v24, %v142_v23  ;;  %v149_v27 = vld [vmem:[%s6421_s26 + $0x58] sm:$0xff]  ;;  %v146_v28 = vld [vmem:[%s6421_s26 + $0x40] sm:$0xff]  ;;  %v148_v30 = vld [vmem:[%s6421_s26 + $0x50] sm:$0xff] }
  0x17   :  { %5034 = vmatpush1.bf16.msra.mxu0 %v5033_v19  ;;  %v5039_v29 = vpack.c.bf16 %v149_v27, %v147_v26  ;;  %v151_v31 = vld [vmem:[%s6421_s26 + $0x68] sm:$0xff]  ;;  %v153_v32 = vld [vmem:[%s6421_s26 + $0x78] sm:$0xff]  ;;  %v5041_v34 = vpack.c.bf16 %v148_v30, %v146_v28  ;;  %v150_v36 = vld [vmem:[%s6421_s26 + $0x60] sm:$0xff] }
  0x18   :  { %5036 = vmatprep.subr.bf16.mxu0 %v5035_v22  ;;  %v5043_v35 = vpack.c.bf16 %v153_v32, %v151_v31  ;;  %v152_v37 = vld [vmem:[%s6421_s26 + $0x70] sm:$0xff]  ;;  %v4476_v46 = vld [vmem:[%s6422_s30] ss:$0 sm:$0xff]  ;;  %s6411_s30 = smov 16  }
  0x19   :  { %v5045_v38 = vpack.c.bf16 %v152_v37, %v150_v36  ;;  %v4477_v48 = vld [vmem:[%s6423_s1] ss:$0 sm:$0xff] }
  0x1a   :  { %v4478_v14 = vld.sshfl [vmem:[%s6424_s28] sm:$0x11 pattern:$0x75316420] }
  0x1b   :  { %5038 = vmatpush1.bf16.msra.mxu0 %v5037_v25  ;;  %v123_v15 = vcombine.high %v4478_v14, %v4478_v14 }
  0x1c   :  { %5040 = vmatprep.subr.bf16.mxu0 %v5039_v29 }
  0x1f   :  { %5042 = vmatpush1.bf16.msra.mxu0 %v5041_v34 }
  0x20   :  { %5044 = vmatprep.subr.bf16.mxu0 %v5043_v35 }
  0x23   :  { %5046 = vmatpush1.bf16.msra.mxu0 %v5045_v38 }
  0x24   :  { %4815 = vmatprep.subr.mxu0 %v5338_v33 }
  0x9b   :  { %v73_v4 = vpop.xlane.xlu0 %72 }
  0x9c   :  { %v78_v5 = vmul.f32 0.015625, %v73_v4 }
  0x9e   :  { %v80_v6 = vsub.f32 %v66_v0, %v78_v5 }
  0x9f   :  { %v76_v7 = vpop.xlane.xlu0 %75 }
  0xa0   :  { %v79_v8 = vmul.f32 0.015625, %v76_v7  ;;  %v82_v9 = vmul.f32 %v80_v6, %v80_v6 }
  0xa2   :  { %v81_v10 = vsub.f32 %v67_v1, %v79_v8  ;;  %v84_v11 = vsel %vm70_vm0, %v82_v9, 0.0 }
  0xa3   :  { %85 = vadd.xlane.f32.xlu1 %v84_v11 }
  0xa4   :  { %v83_v12 = vmul.f32 %v81_v10, %v81_v10 }
  0xa6   :  { %v87_v13 = vsel %vm70_vm0, %v83_v12, 0.0 }
  0xa7   :  { %88 = vadd.xlane.f32.xlu1 %v87_v13 }
 0x130   :  { %v86_v39 = vpop.xlane.xlu1 %85 }
 0x131   :  { %v90_v40 = vmul.f32 0.015625, %v86_v39 }
 0x133   :  { %v92_v41 = vadd.f32 1e-12, %v90_v40 }
 0x134   :  { %v89_v42 = vpop.xlane.xlu1 %88 }
 0x135   :  { %5214 = vrsqrt.f32 %v92_v41  ;;  %v91_v43 = vmul.f32 0.015625, %v89_v42 }
 0x137   :  { %v93_v44 = vadd.f32 1e-12, %v91_v43 }
 0x139   :  { %5216 = vrsqrt.f32 %v93_v44 }
 0x13f   :  { %v5215_v45 = vpop.eup %5214 }
 0x140   :  { %v96_v47 = vmul.f32 %v5215_v45, %v80_v6 }
 0x142   :  { %v104_v49 = vmul.f32 %v4476_v46, %v96_v47 }
 0x143   :  { %v5217_v50 = vpop.eup %5216 }
 0x144   :  { %v5521_v51 = vadd.f32 %v4477_v48, %v104_v49  ;;  %v97_v52 = vmul.f32 %v5217_v50, %v81_v10  ;;  %v5343_v10 = vmov 1966171168  }
 0x145   :  { %v125_v11 = vunpack.c.l.s4 %v5343_v10 }
 0x146   :  { %4479 = vmatmul.mubr.msk.f32.vlgmr.msra.gmra.mrb[0].mxu0 %vm70_vm0, %v5521_v51  ;;  %v105_v53 = vmul.f32 %v4476_v46, %v97_v52 }
 0x147   :  { %242 = vmatprep.mubr.f32.mxu0 %v5338_v33  ;;  %v126_v12 = vunpack.c.0.s8 %v125_v11 }
 0x148   :  { %v5526_v54 = vadd.f32 %v4477_v48, %v105_v53 }
 0x149   :  { %v129_v13 = vsub.s32 %v126_v12, %v128_v56 }
 0x14a   :  { %4480 = vmatmul.mubr.msk.f32.gmra.mrb[2].mxu0 %vm70_vm0, %v5526_v54 }
 0x14b   :  { %4817 = vmatprep.mubr.msk.f32.mxu0 %vm5339_vm1, %v5338_v33  ;;  %v130_v16 = vrot.slane %v4478_v14, %v129_v13  ;;  %v137_v17 = vrot.slane %v123_v15, %v129_v13 }
 0x14d   :  { %v5582_v18 = vrot.slane %v130_v16, %v5534_v57  ;;  %v5585_v22 = vrot.slane %v137_v17, %v5534_v57 }
 0x219   :  { %v238_v62 = vpop.f32.mrb[0].mxu0 }
 0x21a   :  { %v5543_v63 = vadd.f32 %v238_v62, %v159_v60  ;;  %v240_v0 = vpop.f32.mrb[1].mxu0 }
 0x21b   :  { %v5545_v1 = vadd.f32 %v240_v0, %v163_v61 }
 0x21c   :  { %258 = vrot.lane.b32.xlu0 %v5543_v63, %s5340_s24 }
 0x21d   :  { %v244_v2 = vpop.f32.mrb[2].mxu0  ;;  %4826 = vmatpush3.msra.mxu1 %v5545_v1 }
 0x21e   :  { %v5550_v3 = vadd.f32 %v244_v2, %v159_v60  ;;  %v246_v4 = vpop.f32.mrb[3].mxu0  ;;  %4830 = vmatprep.subr.mxu1 %v5338_v33 }
 0x21f   :  { %v5553_v5 = vadd.f32 %v246_v4, %v163_v61 }
 0x220   :  { %336 = vrot.lane.b32.xlu1 %v5550_v3, %s5340_s24 }
 0x224   :  { %675 = vrot.lane.b32.xlu1 %v5550_v3, %s5341_s2 }
 0x228   :  { %673 = vrot.lane.b32.xlu1 %v5550_v3, %s5342_s25 }
 0x28e   :  { %v259_v6 = vpop.permute.xlu0 %258 }
 0x28f   :  { %4816 = vmatpush3.xpose.msk.msra.mxu0 %vm260_vm2, %v259_v6 }
 0x290   :  { %4820 = vmatprep.subr.mxu0 %v5338_v33 }
 0x292   :  { %v337_v7 = vpop.permute.xlu1 %336  ;;  %4818 = vmatmul.mubr.msk.f32.vlgmr.msra.gmra.mrb[4].mxu0 %vm260_vm2, %v5543_v63 }
 0x293   :  { %4821 = vmatpush3.xpose.msk.msra.mxu0 %vm260_vm2, %v337_v7  ;;  %4822 = vmatprep.mubr.msk.f32.mxu0 %vm5339_vm1, %v5338_v33 }
 0x294   :  { %4840 = vmatprep.subr.mxu0 %v5338_v33 }
 0x296   :  { %v676_v8 = vpop.permute.xlu1 %675  ;;  %4823 = vmatmul.mubr.msk.f32.vlgmr.msra.gmra.mrb[6].mxu0 %vm260_vm2, %v5550_v3 }
 0x297   :  { %4841 = vmatpush3.xpose.msk.msra.mxu0 %vm260_vm2, %v676_v8  ;;  %4842 = vmatprep.mubr.msk.f32.mxu0 %vm5339_vm1, %v5338_v33 }
 0x298   :  { %4850 = vmatprep.subr.mxu0 %v5338_v33 }
 0x29a   :  { %v674_v9 = vpop.permute.xlu1 %673 }
 0x29b   :  { %4843 = vmatmul.mubr.msk.f32.vlgmr.msra.gmra.mrb[8].mxu0 %vm260_vm2, %v674_v9 }
 0x29c   :  { %4852 = vmatprep.mubr.msk.f32.mxu0 %vm5339_vm1, %v5338_v33 }
 0x365   :  { %v331_v19 = vpop.f32.mrb[4].mxu0 }
 0x366   :  { %v412_v20 = vmul.f32 0.25, %v331_v19  ;;  %v4819_v21 = vpop.f32.mrb[5].mxu0 }
 0x368   :  { %v424_v23 = vadd.f32 %v5582_v18, %v412_v20 }
 0x369   :  { %v408_v24 = vpop.f32.mrb[6].mxu0 }
 0x36a   :  { %v413_v25 = vmul.f32 0.25, %v408_v24  ;;  %v4824_v26 = vpop.f32.mrb[7].mxu0  ;;  %v427_v27 = vsel %vm426_vm3, %v424_v23, -inf }
 0x36b   :  { %428 = vmax.xlane.f32.xlu0 %v427_v27 }
 0x36c   :  { %v425_v28 = vadd.f32 %v5585_v22, %v413_v25 }
 0x36e   :  { %v747_v29 = vpop.f32.mrb[8].mxu0  ;;  %v430_v30 = vsel %vm426_vm3, %v425_v28, -inf }
 0x36f   :  { %431 = vmax.xlane.f32.xlu1 %v430_v30  ;;  %v4844_v31 = vpop.f32.mrb[9].mxu0  ;;  %v752_v32 = vmul.f32 0.25, %v747_v29 }
 0x371   :  { %v754_v34 = vadd.f32 %v752_v32, %v5585_v22 }
 0x373   :  { %v758_v35 = vsel %vm426_vm3, %v754_v34, -inf }
 0x380   :  { %595 = vrot.lane.b32.xlu1 %v5543_v63, %s5342_s25 }
 0x3a4   :  { %759 = vmax.xlane.f32.xlu1 %v758_v35 }
 0x3b5   :  { %1095 = vrot.lane.b32.xlu1 %v5543_v63, %s5344_s4 }
 0x3b9   :  { %1093 = vrot.lane.b32.xlu1 %v5543_v63, %s6413_s29 }
 0x3bd   :  { %1173 = vrot.lane.b32.xlu1 %v5550_v3, %s5344_s4 }
 0x3f8   :  { %v429_v36 = vpop.xlane.xlu0 %428 }
 0x3f9   :  { %v433_v37 = vsub.f32 %v424_v23, %v429_v36 }
 0x3fb   :  { %v435_v38 = vmul.f32 1.442695, %v433_v37 }
 0x3fc   :  { %v432_v39 = vpop.xlane.xlu1 %431 }
 0x3fd   :  { %5218 = vpow2.f32 %v435_v38  ;;  %v434_v40 = vsub.f32 %v425_v28, %v432_v39 }
 0x3ff   :  { %v437_v41 = vmul.f32 1.442695, %v434_v40 }
 0x400   :  { %v596_v46 = vpop.permute.xlu1 %595 }
 0x401   :  { %5220 = vpow2.f32 %v437_v41 }
 0x407   :  { %v5219_v42 = vpop.eup %5218 }
 0x408   :  { %v439_v43 = vsel %vm426_vm3, %v5219_v42, 0.0 }
 0x409   :  { %440 = vadd.xlane.f32.xlu0 %v439_v43 }
 0x40b   :  { %v5221_v44 = vpop.eup %5220 }
 0x40c   :  { %v442_v45 = vsel %vm426_vm3, %v5221_v44, 0.0 }
 0x40d   :  { %443 = vadd.xlane.f32.xlu0 %v442_v45 }
 0x423   :  { %597 = vrot.lane.b32.xlu0 %v5543_v63, %s5341_s2 }
 0x431   :  { %v760_v47 = vpop.xlane.xlu1 %759 }
 0x432   :  { %v762_v48 = vsub.f32 %v754_v34, %v760_v47 }
 0x434   :  { %v765_v49 = vmul.f32 1.442695, %v762_v48 }
 0x435   :  { %v1096_v4 = vpop.permute.xlu1 %1095 }
 0x436   :  { %5222 = vpow2.f32 %v765_v49 }
 0x439   :  { %v1094_v7 = vpop.permute.xlu1 %1093 }
 0x43d   :  { %v1174_v9 = vpop.permute.xlu1 %1173 }
 0x440   :  { %v5223_v50 = vpop.eup %5222 }
 0x441   :  { %v770_v52 = vsel %vm426_vm3, %v5223_v50, 0.0 }
 0x442   :  { %771 = vadd.xlane.f32.xlu0 %v770_v52 }
 0x458   :  { %855 = vrot.lane.b32.xlu0 %v5553_v5, %s5342_s25 }
 0x45c   :  { %1171 = vrot.lane.b32.xlu0 %v5550_v3, %s6413_s29 }
 0x496   :  { %v441_v53 = vpop.xlane.xlu0 %440 }
 0x497   :  { %5224 = vrcp.f32 %v441_v53 }
 0x49a   :  { %v444_v55 = vpop.xlane.xlu0 %443 }
 0x49b   :  { %5226 = vrcp.f32 %v444_v55 }
 0x49e   :  { %v598_v62 = vpop.permute.xlu0 %597 }
 0x4a1   :  { %v5225_v56 = vpop.eup %5224 }
 0x4a2   :  { %v447_v58 = vmul.f32 %v5225_v56, %v5219_v42 }
 0x4a4   :  { %4828 = vmatmul.mubr.msk.f32.vlgmr.msra.gmra.mrb[0].mxu1 %vm426_vm3, %v447_v58 }
 0x4a5   :  { %v5227_v60 = vpop.eup %5226  ;;  %4831 = vmatpush3.msra.mxu1 %v5553_v5  ;;  %4832 = vmatprep.mubr.msk.f32.mxu1 %vm5339_vm1, %v5338_v33 }
 0x4a6   :  { %v448_v61 = vmul.f32 %v5227_v60, %v5221_v44  ;;  %4835 = vmatprep.subr.mxu1 %v5338_v33 }
 0x4a8   :  { %4833 = vmatmul.mubr.msk.f32.vlgmr.msra.gmra.mrb[2].mxu1 %vm426_vm3, %v448_v61 }
 0x4a9   :  { %4837 = vmatprep.mubr.msk.f32.mxu1 %vm5339_vm1, %v5338_v33 }
 0x4ac   :  { %4836 = vmatpush3.xpose.msk.msra.mxu1 %vm260_vm2, %v598_v62 }
 0x4ad   :  { %4845 = vmatprep.subr.mxu1 %v5338_v33 }
 0x4af   :  { %4838 = vmatmul.mubr.msk.f32.vlgmr.msra.gmra.mrb[4].mxu1 %vm260_vm2, %v596_v46 }
 0x4b0   :  { %4847 = vmatprep.mubr.msk.f32.mxu1 %vm5339_vm1, %v5338_v33 }
 0x4cf   :  { %v772_v0 = vpop.xlane.xlu0 %771 }
 0x4d0   :  { %5228 = vrcp.f32 %v772_v0 }
 0x4d3   :  { %v856_v2 = vpop.permute.xlu0 %855 }
 0x4d4   :  { %4851 = vmatpush3.msra.mxu0 %v856_v2 }
 0x4d5   :  { %4869 = vmatprep.subr.mxu0 %v5338_v33 }
 0x4d7   :  { %v1172_v10 = vpop.permute.xlu0 %1171 }
 0x4da   :  { %v5229_v6 = vpop.eup %5228 }
 0x4db   :  { %v776_v8 = vmul.f32 %v5229_v6, %v5223_v50  ;;  %v252_v50 = vld [vmem:[%s6392_s6 + $0x18] sm:$0xff] }
 0x4dd   :  { %4853 = vmatmul.mubr.msk.f32.vlgmr.msra.gmra.mrb[10].mxu0 %vm426_vm3, %v776_v8  ;;  %v250_v8 = vld [vmem:[%s6392_s6 + $0x8] sm:$0xff] }
 0x4de   :  { %4870 = vmatpush3.xpose.msk.msra.mxu0 %vm260_vm2, %v1096_v4  ;;  %4871 = vmatprep.mubr.msk.f32.mxu0 %vm5339_vm1, %v5338_v33 }
 0x4df   :  { %4874 = vmatprep.subr.mxu0 %v5338_v33 }
 0x4e1   :  { %4872 = vmatmul.mubr.msk.f32.vlgmr.msra.gmra.mrb[12].mxu0 %vm260_vm2, %v1094_v7  ;;  %v249_v7 = vld [vmem:[%s6392_s6] sm:$0xff] }
 0x4e2   :  { %4875 = vmatpush3.xpose.msk.msra.mxu0 %vm260_vm2, %v1174_v9  ;;  %4876 = vmatprep.mubr.msk.f32.mxu0 %vm5339_vm1, %v5338_v33  ;;  %v5051_v9 = vpack.c.bf16 %v250_v8, %v249_v7 }
 0x4e3   :  { %4884 = vmatprep.subr.mxu0 %v5338_v33 }
 0x4e5   :  { %4877 = vmatmul.mubr.msk.f32.vlgmr.msra.gmra.mrb[14].mxu0 %vm260_vm2, %v1172_v10 }
 0x4e6   :  { %4886 = vmatprep.mubr.msk.f32.mxu0 %vm5339_vm1, %v5338_v33 }
 0x577   :  { %v5637_v11 = vpop.f32.mrb[0].mxu1 }
 0x578   :  { %v4829_v12 = vpop.f32.mrb[1].mxu1 }
 0x57b   :  { %v5639_v13 = vpop.f32.mrb[2].mxu1 }
 0x57c   :  { %v4834_v14 = vpop.f32.mrb[3].mxu1 }
 0x582   :  { %v669_v15 = vpop.f32.mrb[4].mxu1 }
 0x583   :  { %v751_v16 = vmul.f32 0.25, %v669_v15  ;;  %v4839_v17 = vpop.f32.mrb[5].mxu1 }
 0x585   :  { %v753_v19 = vadd.f32 %v751_v16, %v5582_v18 }
 0x587   :  { %v755_v20 = vsel %vm426_vm3, %v753_v19, -inf }
 0x588   :  { %756 = vmax.xlane.f32.xlu1 %v755_v20 }
 0x5b0   :  { %v5643_v21 = vpop.f32.mrb[10].mxu0 }
 0x5b1   :  { %v4854_v23 = vpop.f32.mrb[11].mxu0 }
 0x5b4   :  { %v1167_v24 = vpop.f32.mrb[12].mxu0 }
 0x5b5   :  { %v1249_v25 = vmul.f32 0.25, %v1167_v24  ;;  %v4873_v26 = vpop.f32.mrb[13].mxu0 }
 0x5b7   :  { %v1251_v27 = vadd.f32 %v1249_v25, %v5582_v18  ;;  %v254_v25 = vld [vmem:[%s6392_s6 + $0x28] sm:$0xff] }
 0x5b8   :  { %v1245_v28 = vpop.f32.mrb[14].mxu0 }
 0x5b9   :  { %v1250_v29 = vmul.f32 0.25, %v1245_v28  ;;  %v4878_v30 = vpop.f32.mrb[15].mxu0  ;;  %v1253_v31 = vsel %vm426_vm3, %v1251_v27, -inf }
 0x5ba   :  { %1254 = vmax.xlane.f32.xlu1 %v1253_v31 }
 0x5bb   :  { %v1252_v32 = vadd.f32 %v1250_v29, %v5585_v22 }
 0x5bd   :  { %v1256_v34 = vsel %vm426_vm3, %v1252_v32, -inf }
 0x5be   :  { %1257 = vmax.xlane.f32.xlu1 %v1256_v34 }
 0x615   :  { %v757_v35 = vpop.xlane.xlu1 %756 }
 0x616   :  { %v761_v36 = vsub.f32 %v753_v19, %v757_v35 }
 0x618   :  { %v763_v37 = vmul.f32 1.442695, %v761_v36 }
 0x61a   :  { %5230 = vpow2.f32 %v763_v37 }
 0x624   :  { %v5231_v38 = vpop.eup %5230 }
 0x625   :  { %v767_v39 = vsel %vm426_vm3, %v5231_v38, 0.0 }
 0x626   :  { %768 = vadd.xlane.f32.xlu0 %v767_v39 }
 0x63c   :  { %778 = vrot.lane.b32.xlu0 %v5545_v1, %s5342_s25 }
 0x640   :  { %1351 = vrot.lane.b32.xlu0 %v5553_v5, %s6413_s29 }
 0x644   :  { %1512 = vrot.lane.b32.xlu0 %v5543_v63, %s6411_s30 }
 0x647   :  { %v1255_v40 = vpop.xlane.xlu1 %1254 }
 0x648   :  { %1590 = vrot.lane.b32.xlu0 %v5550_v3, %s6411_s30  ;;  %v1259_v41 = vsub.f32 %v1251_v27, %v1255_v40 }
 0x64a   :  { %v1261_v42 = vmul.f32 1.442695, %v1259_v41 }
 0x64b   :  { %v1258_v43 = vpop.xlane.xlu1 %1257 }
 0x64c   :  { %5232 = vpow2.f32 %v1261_v42  ;;  %1510 = vrot.lane.b32.xlu0 %v5543_v63, %s6409_s0  ;;  %v1260_v44 = vsub.f32 %v1252_v32, %v1258_v43  ;;  %v251_v63 = vld [vmem:[%s6392_s6 + $0x10] sm:$0xff] }
 0x64d   :  { %v5047_v53 = vpack.c.bf16 %v252_v50, %v251_v63 }
 0x64e   :  { %v1263_v45 = vmul.f32 1.442695, %v1260_v44 }
 0x650   :  { %5234 = vpow2.f32 %v1263_v45 }
 0x656   :  { %v5233_v46 = vpop.eup %5232 }
 0x657   :  { %v1265_v47 = vsel %vm426_vm3, %v5233_v46, 0.0 }
 0x658   :  { %1266 = vadd.xlane.f32.xlu1 %v1265_v47 }
 0x65a   :  { %v5235_v48 = vpop.eup %5234 }
 0x65b   :  { %v1268_v49 = vsel %vm426_vm3, %v5235_v48, 0.0 }
 0x65c   :  { %1269 = vadd.xlane.f32.xlu1 %v1268_v49 }
 0x66d   :  { %1275 = vrot.lane.b32.xlu1 %v5545_v1, %s6413_s29 }
 0x671   :  { %1588 = vrot.lane.b32.xlu1 %v5550_v3, %s6409_s0 }
 0x6b3   :  { %v769_v52 = vpop.xlane.xlu0 %768 }
 0x6b4   :  { %5236 = vrcp.f32 %v769_v52 }
 0x6b7   :  { %v779_v55 = vpop.permute.xlu0 %778 }
 0x6b8   :  { %4846 = vmatpush3.msra.mxu1 %v779_v55 }
 0x6b9   :  { %5048 = vmatprep.subr.bf16.mxu1 %v5047_v53 }
 0x6bb   :  { %v1352_v56 = vpop.permute.xlu0 %1351 }
 0x6bc   :  { %4885 = vmatpush3.msra.mxu0 %v1352_v56 }
 0x6bd   :  { %4896 = vmatprep.subr.mxu0 %v5338_v33 }
 0x6be   :  { %v5237_v58 = vpop.eup %5236 }
 0x6bf   :  { %v775_v3 = vmul.f32 %v5237_v58, %v5231_v38  ;;  %v1513_v62 = vpop.permute.xlu0 %1512 }
 0x6c1   :  { %4848 = vmatmul.mubr.msk.f32.vlgmr.msra.gmra.mrb[6].mxu1 %vm426_vm3, %v775_v3 }
 0x6c2   :  { %5050 = vmatpush3.bf16.msra.mxu1 %v5047_v53  ;;  %v256_v53 = vld [vmem:[%s6392_s6 + $0x38] sm:$0xff] }
 0x6c3   :  { %v1591_v2 = vpop.permute.xlu0 %1590  ;;  %5052 = vmatprep.subr.bf16.mxu1 %v5051_v9 }
 0x6c7   :  { %v1511_v6 = vpop.permute.xlu0 %1510 }
 0x6e5   :  { %v1267_v60 = vpop.xlane.xlu1 %1266 }
 0x6e9   :  { %v1270_v61 = vpop.xlane.xlu1 %1269 }
 0x6ea   :  { %5238 = vrcp.f32 %v1270_v61  ;;  %v4513_v61 = vld [vmem:[%s6393_s7] ss:$0 sm:$0xff] }
 0x6eb   :  { %5240 = vrcp.f32 %v1267_v60 }
 0x6ed   :  { %v1276_v15 = vpop.permute.xlu1 %1275 }
 0x6f1   :  { %v1589_v35 = vpop.permute.xlu1 %1588 }
 0x6f4   :  { %v5239_v0 = vpop.eup %5238 }
 0x6f5   :  { %v1274_v4 = vmul.f32 %v5239_v0, %v5235_v48  ;;  %v5241_v14 = vpop.eup %5240 }
 0x6f6   :  { %v1273_v16 = vmul.f32 %v5241_v14, %v5233_v46 }
 0x6f7   :  { %4887 = vmatmul.mubr.msk.f32.vlgmr.msra.gmra.mrb[16].mxu0 %vm426_vm3, %v1274_v4 }
 0x6f8   :  { %4897 = vmatpush3.xpose.msk.msra.mxu0 %vm260_vm2, %v1513_v62  ;;  %4898 = vmatprep.mubr.msk.f32.mxu0 %vm5339_vm1, %v5338_v33 }
 0x6f9   :  { %4906 = vmatprep.subr.mxu0 %v5338_v33 }
 0x6fb   :  { %4899 = vmatmul.mubr.msk.f32.vlgmr.msra.gmra.mrb[18].mxu0 %vm260_vm2, %v1511_v6 }
 0x6fc   :  { %4908 = vmatprep.mubr.msk.f32.mxu0 %vm5339_vm1, %v5338_v33 }
 0x794   :  { %v850_v10 = vpop.f32.mrb[6].mxu1 }
 0x795   :  { %v4849_v12 = vpop.f32.mrb[7].mxu1  ;;  %4859 = vmatprep.mubr.msk.f32.mxu1 %vm260_vm2, %v850_v10 }
 0x796   :  { %4860 = vmatmul.mubr.msk.f32.vlgmr.msra.gmra.mrb[8].mxu1 %vm260_vm2, %v5643_v21 }
 0x797   :  { %4866 = vmatprep.mubr.msk.f32.mxu1 %vm260_vm2, %v5637_v11  ;;  %5054 = vmatpush3.bf16.msra.mxu1 %v5051_v9 }
 0x798   :  { %4879 = vmatprep.subr.mxu1 %v5338_v33 }
 0x79e   :  { %4867 = vmatmul.mubr.msk.f32.vlgmr.msra.gmra.mrb[8].mxu1 %vm260_vm2, %v5639_v13  ;;  %v253_v13 = vld [vmem:[%s6392_s6 + $0x20] sm:$0xff] }
 0x79f   :  { %4880 = vmatpush3.msra.mxu1 %v1276_v15  ;;  %4881 = vmatprep.mubr.msk.f32.mxu1 %vm5339_vm1, %v5338_v33  ;;  %v5055_v26 = vpack.c.bf16 %v254_v25, %v253_v13  ;;  %v1984_v13 = vld [vmem:[%s6396_s10 + $0x10] sm:$0xff] }
 0x7a1   :  { %5056 = vmatprep.subr.bf16.mxu1 %v5055_v26 }
 0x7a2   :  { %4882 = vmatmul.mubr.msk.f32.vlgmr.msra.gmra.mrb[10].mxu1 %vm426_vm3, %v1273_v16 }
 0x7a3   :  { %5058 = vmatpush3.bf16.msra.mxu1 %v5055_v26  ;;  %v1987_v26 = vld [vmem:[%s6396_s10 + $0x28] sm:$0xff] }
 0x7a4   :  { %4901 = vmatprep.subr.mxu1 %v5338_v33 }
 0x7ca   :  { %v1423_v17 = vpop.f32.mrb[16].mxu0 }
 0x7cb   :  { %v4888_v19 = vpop.f32.mrb[17].mxu0 }
 0x7ce   :  { %v1584_v20 = vpop.f32.mrb[18].mxu0 }
 0x7cf   :  { %v1666_v21 = vmul.f32 0.25, %v1584_v20  ;;  %v4900_v11 = vpop.f32.mrb[19].mxu0 }
 0x7d0   :  { %v1985_v11 = vld [vmem:[%s6396_s10 + $0x18] sm:$0xff] }
 0x7d1   :  { %v1668_v23 = vadd.f32 %v1666_v21, %v5582_v18 }
 0x7d3   :  { %v1670_v24 = vsel %vm426_vm3, %v1668_v23, -inf }
 0x7d4   :  { %1671 = vmax.xlane.f32.xlu0 %v1670_v24  ;;  %v1982_v24 = vld [vmem:[%s6396_s10] sm:$0xff] }
 0x7d5   :  { %v5065_v25 = vpack.c.bf16 %v1984_v13, %v1982_v24  ;;  %v2136_v24 = vld [vmem:[%s6398_s12 + $0x38] sm:$0xff] }
 0x861   :  { %v1672_v27 = vpop.xlane.xlu0 %1671 }
 0x862   :  { %v1676_v28 = vsub.f32 %v1668_v23, %v1672_v27  ;;  %v1989_v27 = vld [vmem:[%s6396_s10 + $0x38] sm:$0xff] }
 0x864   :  { %v1678_v29 = vmul.f32 1.442695, %v1676_v28  ;;  %v5067_v28 = vpack.c.bf16 %v1989_v27, %v1987_v26  ;;  %v2154_v26 = vld [vmem:[%s6398_s12 + $0xc8] sm:$0xff]  ;;  %v2137_v27 = vld [vmem:[%s6398_s12 + $0x40] sm:$0xff] }
 0x866   :  { %5242 = vpow2.f32 %v1678_v29  ;;  %v1986_v29 = vld [vmem:[%s6396_s10 + $0x20] sm:$0xff] }
 0x870   :  { %v5243_v30 = vpop.eup %5242 }
 0x871   :  { %v1682_v31 = vsel %vm426_vm3, %v5243_v30, 0.0 }
 0x872   :  { %1683 = vadd.xlane.f32.xlu0 %v1682_v31 }
 0x875   :  { %v1347_v32 = vpop.f32.mrb[10].mxu1 }
 0x876   :  { %v4883_v34 = vpop.f32.mrb[11].mxu1  ;;  %4893 = vmatprep.mubr.msk.f32.mxu1 %vm260_vm2, %v1347_v32  ;;  %v1991_v32 = vld [vmem:[%s6396_s10 + $0x48] sm:$0xff] }
 0x877   :  { %4894 = vmatmul.mubr.msk.f32.vlgmr.msra.gmra.mrb[8].mxu1 %vm260_vm2, %v1423_v17  ;;  %v1993_v34 = vld [vmem:[%s6396_s10 + $0x58] sm:$0xff] }
 0x878   :  { %4902 = vmatpush3.xpose.msk.msra.mxu1 %vm260_vm2, %v1591_v2  ;;  %4903 = vmatprep.mubr.msk.f32.mxu1 %vm5339_vm1, %v5338_v33 }
 0x879   :  { %4911 = vmatprep.subr.mxu1 %v5338_v33 }
 0x87b   :  { %4904 = vmatmul.mubr.msk.f32.vlgmr.msra.gmra.mrb[12].mxu1 %vm260_vm2, %v1589_v35  ;;  %v5071_v35 = vpack.c.bf16 %v1993_v34, %v1991_v32 }
 0x87c   :  { %4913 = vmatprep.mubr.msk.f32.mxu1 %vm5339_vm1, %v5338_v33 }
 0x8ff   :  { %v1684_v47 = vpop.xlane.xlu0 %1683 }
 0x94e   :  { %v1662_v36 = vpop.f32.mrb[12].mxu1 }
 0x94f   :  { %v1667_v37 = vmul.f32 0.25, %v1662_v36  ;;  %v4905_v38 = vpop.f32.mrb[13].mxu1  ;;  %v1990_v36 = vld [vmem:[%s6396_s10 + $0x40] sm:$0xff] }
 0x951   :  { %v1669_v39 = vadd.f32 %v1667_v37, %v5585_v22  ;;  %v1992_v37 = vld [vmem:[%s6396_s10 + $0x50] sm:$0xff] }
 0x952   :  { %v5073_v38 = vpack.c.bf16 %v1992_v37, %v1990_v36  ;;  %v2140_v36 = vld [vmem:[%s6398_s12 + $0x58] sm:$0xff]  ;;  %v2157_v37 = vld [vmem:[%s6398_s12 + $0xe0] sm:$0xff] }
 0x953   :  { %v1673_v40 = vsel %vm426_vm3, %v1669_v39, -inf }
 0x954   :  { %1674 = vmax.xlane.f32.xlu1 %v1673_v40  ;;  %v1997_v40 = vld [vmem:[%s6396_s10 + $0x78] sm:$0xff] }
 0x965   :  { %1768 = vrot.lane.b32.xlu1 %v5553_v5, %s6409_s0 }
 0x9e1   :  { %v1675_v41 = vpop.xlane.xlu1 %1674 }
 0x9e2   :  { %v1677_v42 = vsub.f32 %v1669_v39, %v1675_v41  ;;  %v1995_v39 = vld [vmem:[%s6396_s10 + $0x68] sm:$0xff]  ;;  %v1994_v41 = vld [vmem:[%s6396_s10 + $0x60] sm:$0xff] }
 0x9e4   :  { %v1680_v43 = vmul.f32 1.442695, %v1677_v42  ;;  %v5075_v42 = vpack.c.bf16 %v1997_v40, %v1995_v39 }
 0x9e5   :  { %v1769_v44 = vpop.permute.xlu1 %1768 }
 0x9e6   :  { %5244 = vpow2.f32 %v1680_v43  ;;  %4912 = vmatpush3.msra.mxu1 %v1769_v44  ;;  %v1996_v43 = vld [vmem:[%s6396_s10 + $0x70] sm:$0xff] }
 0x9e7   :  { %5246 = vrcp.f32 %v1684_v47  ;;  %v5077_v44 = vpack.c.bf16 %v1996_v43, %v1994_v41  ;;  %v2129_v47 = vld [vmem:[%s6398_s12] sm:$0xff]  ;;  %v2159_v43 = vld [vmem:[%s6398_s12 + $0xf0] sm:$0xff] }
 0x9e8   :  { %v2141_v41 = vld [vmem:[%s6398_s12 + $0x60] sm:$0xff] }
 0x9f0   :  { %v5245_v45 = vpop.eup %5244 }
 0x9f1   :  { %v1685_v46 = vsel %vm426_vm3, %v5245_v45, 0.0  ;;  %v5247_v49 = vpop.eup %5246 }
 0x9f2   :  { %1686 = vadd.xlane.f32.xlu0 %v1685_v46  ;;  %v1690_v63 = vmul.f32 %v5247_v49, %v5243_v30  ;;  %v1988_v30 = vld [vmem:[%s6396_s10 + $0x30] sm:$0xff]  ;;  %v2146_v46 = vld [vmem:[%s6398_s12 + $0x88] sm:$0xff] }
 0x9f3   :  { %v5069_v31 = vpack.c.bf16 %v1988_v30, %v1986_v29  ;;  %v2130_v49 = vld [vmem:[%s6398_s12 + $0x8] sm:$0xff]  ;;  %v2155_v30 = vld [vmem:[%s6398_s12 + $0xd0] sm:$0xff] }
 0x9f4   :  { %v2138_v29 = vld [vmem:[%s6398_s12 + $0x48] sm:$0xff] }
 0x9f5   :  { %v5097_v32 = vpack.c.bf16 %v2138_v29, %v2137_v27 }
 0xa08   :  { %1692 = vrot.lane.b32.xlu0 %v5545_v1, %s6409_s0  ;;  %v255_v1 = vld [vmem:[%s6392_s6 + $0x30] sm:$0xff] }
 0xa09   :  { %v5059_v55 = vpack.c.bf16 %v256_v53, %v255_v1 }
 0xa0b   :  { %5060 = vmatprep.subr.bf16.mxu1 %v5059_v55 }
 0xa7f   :  { %v1687_v48 = vpop.xlane.xlu0 %1686 }
 0xa80   :  { %5248 = vrcp.f32 %v1687_v48 }
 0xa83   :  { %v1693_v5 = vpop.permute.xlu0 %1692 }
 0xa84   :  { %4907 = vmatpush3.msra.mxu0 %v1693_v5 }
 0xa85   :  { %4909 = vmatmul.mubr.msk.f32.vlgmr.msra.gmra.mrb[20].mxu0 %vm426_vm3, %v1690_v63  ;;  %v5081_v63 = vpack.c.bf16 %v2130_v49, %v2129_v47  ;;  %v2143_v47 = vld [vmem:[%s6398_s12 + $0x70] sm:$0xff] }
 0xa86   :  { %2080 = vmatprep.mubr.f32.mxu0 %v5338_v33 }
 0xa8a   :  { %v5249_v50 = vpop.eup %5248 }
 0xa8b   :  { %v1691_v52 = vmul.f32 %v5249_v50, %v5245_v45  ;;  %v2145_v45 = vld [vmem:[%s6398_s12 + $0x80] sm:$0xff] }
 0xa8c   :  { %v5079_v48 = vpack.c.bf16 %v2146_v46, %v2145_v45 }
 0xa8d   :  { %4914 = vmatmul.mubr.msk.f32.vlgmr.msra.gmra.mrb[14].mxu1 %vm426_vm3, %v1691_v52 }
 0xa8e   :  { %5062 = vmatpush3.bf16.msra.mxu1 %v5059_v55 }
 0xa8f   :  { %5080 = vmatprep.subr.bf16.mxu1 %v5079_v48  ;;  %v2144_v48 = vld [vmem:[%s6398_s12 + $0x78] sm:$0xff] }
 0xa90   :  { %v5109_v49 = vpack.c.bf16 %v2144_v48, %v2143_v47 }
 0xb58   :  { %v1764_v56 = vpop.f32.mrb[20].mxu0 }
 0xb59   :  { %v4910_v58 = vpop.f32.mrb[21].mxu0  ;;  %4920 = vmatprep.mubr.msk.f32.mxu1 %vm260_vm2, %v1764_v56 }
 0xb60   :  { %v1840_v3 = vpop.f32.mrb[14].mxu1 }
 0xb61   :  { %v4915_v60 = vpop.f32.mrb[15].mxu1  ;;  %4921 = vmatmul.mubr.msk.f32.vlgmr.msra.gmra.mrb[8].mxu1 %vm260_vm2, %v1840_v3  ;;  %v4514_v3 = vld [vmem:[%s6394_s8] ss:$0 sm:$0xff] }
 0xb62   :  { %5082 = vmatpush3.bf16.msra.mxu1 %v5081_v63  ;;  %v1998_v63 = vld [vmem:[%s6397_s11] sm:$0x3] }
 0xc34   :  { %v4922_v62 = vpop.f32.mrb[8].mxu1 }
 0xc35   :  { %v1935_v0 = vadd.f32 %v4922_v62, %v4513_v61  ;;  %v1916_v2 = vpop.f32.mrb[9].mxu1  ;;  %v4515_v62 = vld [vmem:[%s6395_s9] ss:$0 sm:$0xff] }
 0xc36   :  { %v1934_v4 = vadd.f32 %v4513_v61, %v1916_v2 }
 0xc37   :  { %v1937_v6 = vadd.f32 %v1935_v0, %v5526_v54 }
 0xc38   :  { %v1936_v7 = vadd.f32 %v1934_v4, %v5521_v51  ;;  %v1983_v51 = vld [vmem:[%s6396_s10 + $0x8] sm:$0xff] }
 0xc39   :  { %v1943_v8 = vsel %vm70_vm0, %v1937_v6, 0.0  ;;  %v5063_v23 = vpack.c.bf16 %v1985_v11, %v1983_v51  ;;  %v2152_v51 = vld [vmem:[%s6398_s12 + $0xb8] sm:$0xff] }
 0xc3a   :  { %1944 = vadd.xlane.f32.xlu0 %v1943_v8  ;;  %v1940_v9 = vsel %vm70_vm0, %v1936_v7, 0.0  ;;  %v2148_v8 = vld [vmem:[%s6398_s12 + $0x98] sm:$0xff] }
 0xc3b   :  { %1941 = vadd.xlane.f32.xlu1 %v1940_v9  ;;  %5064 = vmatprep.subr.bf16.mxu0 %v5063_v23  ;;  %v2135_v23 = vld [vmem:[%s6398_s12 + $0x30] sm:$0xff] }
 0xc3c   :  { %5066 = vmatpush1.bf16.msra.mxu0 %v5065_v25  ;;  %v5093_v13 = vpack.c.bf16 %v2136_v24, %v2135_v23  ;;  %v2153_v25 = vld [vmem:[%s6398_s12 + $0xc0] sm:$0xff] }
 0xc3d   :  { %5068 = vmatprep.subr.bf16.mxu0 %v5067_v28  ;;  %v5095_v28 = vpack.c.bf16 %v2154_v26, %v2153_v25 }
 0xc40   :  { %5070 = vmatpush1.bf16.msra.mxu0 %v5069_v31  ;;  %v2156_v31 = vld [vmem:[%s6398_s12 + $0xd8] sm:$0xff] }
 0xc41   :  { %5072 = vmatprep.subr.bf16.mxu0 %v5071_v35  ;;  %v5099_v34 = vpack.c.bf16 %v2156_v31, %v2155_v30  ;;  %v2139_v35 = vld [vmem:[%s6398_s12 + $0x50] sm:$0xff] }
 0xc42   :  { %v5101_v39 = vpack.c.bf16 %v2140_v36, %v2139_v35 }
 0xc44   :  { %5074 = vmatpush1.bf16.msra.mxu0 %v5073_v38  ;;  %v2158_v38 = vld [vmem:[%s6398_s12 + $0xe8] sm:$0xff] }
 0xc45   :  { %5076 = vmatprep.subr.bf16.mxu0 %v5075_v42  ;;  %v5103_v40 = vpack.c.bf16 %v2158_v38, %v2157_v37  ;;  %v2142_v42 = vld [vmem:[%s6398_s12 + $0x68] sm:$0xff] }
 0xc46   :  { %v5105_v45 = vpack.c.bf16 %v2142_v42, %v2141_v41  ;;  %v4518_v41 = vld [vmem:[%s6399_s13] ss:$0 sm:$0xff] }
 0xc48   :  { %5078 = vmatpush1.bf16.msra.mxu0 %v5077_v44  ;;  %v2160_v44 = vld [vmem:[%s6398_s12 + $0xf8] sm:$0xff] }
 0xc49   :  { %v5107_v46 = vpack.c.bf16 %v2160_v44, %v2159_v43 }
 0xcc7   :  { %v1945_v10 = vpop.xlane.xlu0 %1944 }
 0xcc8   :  { %v1947_v12 = vmul.f32 0.015625, %v1945_v10  ;;  %v1942_v14 = vpop.xlane.xlu1 %1941  ;;  %v2131_v10 = vld [vmem:[%s6398_s12 + $0x10] sm:$0xff] }
 0xcc9   :  { %v1946_v15 = vmul.f32 0.015625, %v1942_v14 }
 0xcca   :  { %v1949_v16 = vsub.f32 %v1937_v6, %v1947_v12  ;;  %v2132_v12 = vld [vmem:[%s6398_s12 + $0x18] sm:$0xff] }
 0xccb   :  { %v1948_v17 = vsub.f32 %v1936_v7, %v1946_v15  ;;  %v2147_v7 = vld [vmem:[%s6398_s12 + $0x90] sm:$0xff]  ;;  %v5085_v14 = vpack.c.bf16 %v2132_v12, %v2131_v10  ;;  %v2149_v15 = vld [vmem:[%s6398_s12 + $0xa0] sm:$0xff] }
 0xccc   :  { %v1951_v19 = vmul.f32 %v1949_v16, %v1949_v16  ;;  %v5083_v9 = vpack.c.bf16 %v2148_v8, %v2147_v7 }
 0xccd   :  { %v1950_v20 = vmul.f32 %v1948_v17, %v1948_v17 }
 0xcce   :  { %v1955_v21 = vsel %vm70_vm0, %v1951_v19, 0.0  ;;  %5084 = vmatprep.subr.bf16.mxu1 %v5083_v9  ;;  %v2133_v19 = vld [vmem:[%s6398_s12 + $0x20] sm:$0xff] }
 0xccf   :  { %1956 = vadd.xlane.f32.xlu1 %v1955_v21  ;;  %v1952_v54 = vsel %vm70_vm0, %v1950_v20, 0.0  ;;  %5086 = vmatpush3.bf16.msra.mxu1 %v5085_v14  ;;  %v2134_v20 = vld [vmem:[%s6398_s12 + $0x28] sm:$0xff] }
 0xcd0   :  { %1953 = vadd.xlane.f32.xlu0 %v1952_v54  ;;  %v5089_v21 = vpack.c.bf16 %v2134_v20, %v2133_v19  ;;  %v2151_v54 = vld [vmem:[%s6398_s12 + $0xb0] sm:$0xff] }
 0xcd1   :  { %v5091_v11 = vpack.c.bf16 %v2152_v51, %v2151_v54 }
 0xd5c   :  { %v1957_v5 = vpop.xlane.xlu1 %1956 }
 0xd5d   :  { %v1959_v50 = vmul.f32 0.015625, %v1957_v5  ;;  %v1954_v52 = vpop.xlane.xlu0 %1953  ;;  %v2003_v5 = vrot.slane %v1998_v63, %v5534_v57 }
 0xd5e   :  { %v1958_v1 = vmul.f32 0.015625, %v1954_v52 }
 0xd5f   :  { %v1961_v53 = vadd.f32 1e-12, %v1959_v50  ;;  %v2007_v50 = vrot.slane %v1998_v63, %v5539_v59 }
 0xd60   :  { %v1960_v55 = vadd.f32 1e-12, %v1958_v1 }
 0xd61   :  { %5250 = vrsqrt.f32 %v1961_v53 }
 0xd62   :  { %5252 = vrsqrt.f32 %v1960_v55 }
 0xd6b   :  { %v5251_v56 = vpop.eup %5250 }
 0xd6c   :  { %v5253_v58 = vpop.eup %5252  ;;  %v1965_v61 = vmul.f32 %v5251_v56, %v1949_v16  ;;  %v2150_v16 = vld [vmem:[%s6398_s12 + $0xa8] sm:$0xff] }
 0xd6d   :  { %v1964_v60 = vmul.f32 %v5253_v58, %v1948_v17  ;;  %v5087_v17 = vpack.c.bf16 %v2150_v16, %v2149_v15 }
 0xd6e   :  { %v1973_v4 = vmul.f32 %v4514_v3, %v1965_v61 }
 0xd6f   :  { %v1972_v0 = vmul.f32 %v4514_v3, %v1964_v60  ;;  %5088 = vmatprep.subr.bf16.mxu1 %v5087_v17 }
 0xd70   :  { %v5816_v6 = vadd.f32 %v4515_v62, %v1973_v4  ;;  %5090 = vmatpush3.bf16.msra.mxu1 %v5089_v21 }
 0xd71   :  { %v5811_v2 = vadd.f32 %v4515_v62, %v1972_v0  ;;  %5092 = vmatprep.subr.bf16.mxu1 %v5091_v11 }
 0xd73   :  { %4516 = vmatmul.mubr.msk.f32.vlgmr.msra.gmra.mrb[22].mxu0 %vm70_vm0, %v5811_v2 }
 0xd74   :  { %2086 = vmatprep.mubr.f32.mxu0 %v5338_v33  ;;  %5094 = vmatpush3.bf16.msra.mxu1 %v5093_v13 }
 0xd75   :  { %5096 = vmatprep.subr.bf16.mxu1 %v5095_v28 }
 0xd77   :  { %4517 = vmatmul.mubr.msk.f32.gmra.mrb[24].mxu0 %vm70_vm0, %v5816_v6 }
 0xd78   :  { %2389 = vmatprep.mubr.f32.mxu0 %v5338_v33  ;;  %5098 = vmatpush3.bf16.msra.mxu1 %v5097_v32 }
 0xd79   :  { %5100 = vmatprep.subr.bf16.mxu1 %v5099_v34 }
 0xd7c   :  { %5102 = vmatpush3.bf16.msra.mxu1 %v5101_v39 }
 0xd7d   :  { %5104 = vmatprep.subr.bf16.mxu1 %v5103_v40 }
 0xd80   :  { %5106 = vmatpush3.bf16.msra.mxu1 %v5105_v45 }
 0xd81   :  { %5108 = vmatprep.subr.bf16.mxu1 %v5107_v46 }
 0xd84   :  { %5110 = vmatpush3.bf16.msra.mxu1 %v5109_v49 }
 0xd85   :  { %4933 = vmatprep.subr.mxu1 %v5338_v33 }
 0xe46   :  { %v2082_v52 = vpop.f32.mrb[22].mxu0 }
 0xe47   :  { %v2083_v1 = vadd.f32 %v2082_v52, %v2003_v5  ;;  %v2084_v53 = vpop.f32.mrb[23].mxu0 }
 0xe48   :  { %v2085_v55 = vadd.f32 %v2084_v53, %v2007_v50 }
 0xe49   :  { %v2097_v56 = vmul.f32 0.044715, %v2083_v1  ;;  %v2093_v28 = vmul.f32 0.5, %v2083_v1 }
 0xe4a   :  { %v2098_v58 = vmul.f32 0.044715, %v2085_v55  ;;  %v2088_v3 = vpop.f32.mrb[24].mxu0  ;;  %v2094_v26 = vmul.f32 0.5, %v2085_v55 }
 0xe4b   :  { %v2101_v60 = vmul.f32 %v2097_v56, %v2083_v1  ;;  %v2089_v61 = vadd.f32 %v2088_v3, %v2003_v5  ;;  %v2090_v62 = vpop.f32.mrb[25].mxu0 }
 0xe4c   :  { %v2102_v0 = vmul.f32 %v2098_v58, %v2085_v55  ;;  %v2091_v4 = vadd.f32 %v2090_v62, %v2007_v50  ;;  %v4524_v62 = vld [vmem:[%s6421_s26 + $0x98] sm:$0xff] }
 0xe4d   :  { %v2105_v7 = vmul.f32 %v2101_v60, %v2083_v1  ;;  %v2099_v8 = vmul.f32 0.044715, %v2089_v61  ;;  %v2095_v37 = vmul.f32 0.5, %v2089_v61 }
 0xe4e   :  { %v2100_v9 = vmul.f32 0.044715, %v2091_v4  ;;  %v2106_v10 = vmul.f32 %v2102_v0, %v2085_v55  ;;  %v2096_v35 = vmul.f32 0.5, %v2091_v4 }
 0xe4f   :  { %v2109_v12 = vadd.f32 %v2105_v7, %v2083_v1  ;;  %v2103_v14 = vmul.f32 %v2099_v8, %v2089_v61  ;;  %v4523_v7 = vld [vmem:[%s6421_s26 + $0x90] sm:$0xff] }
 0xe50   :  { %v2104_v15 = vmul.f32 %v2100_v9, %v2091_v4  ;;  %v2110_v16 = vadd.f32 %v2106_v10, %v2085_v55  ;;  %v4526_v9 = vld [vmem:[%s6421_s26 + $0xa8] sm:$0xff]  ;;  %v4528_v10 = vld [vmem:[%s6421_s26 + $0xb8] sm:$0xff] }
 0xe51   :  { %v2113_v17 = vmul.f32 0.7978846, %v2109_v12  ;;  %v2107_v19 = vmul.f32 %v2103_v14, %v2089_v61  ;;  %v5115_v12 = vpack.c.bf16 %v4528_v10, %v4526_v9  ;;  %v4525_v14 = vld [vmem:[%s6421_s26 + $0xa0] sm:$0xff] }
 0xe52   :  { %v2114_v20 = vmul.f32 0.7978846, %v2110_v16  ;;  %v2108_v21 = vmul.f32 %v2104_v15, %v2091_v4  ;;  %v4527_v15 = vld [vmem:[%s6421_s26 + $0xb0] sm:$0xff] }
 0xe53   :  { %5254 = vtanh.f32 %v2113_v17  ;;  %v2111_v54 = vadd.f32 %v2107_v19, %v2089_v61  ;;  %v5117_v16 = vpack.c.bf16 %v4527_v15, %v4525_v14  ;;  %v4530_v17 = vld [vmem:[%s6421_s26 + $0xc8] sm:$0xff]  ;;  %v4532_v19 = vld [vmem:[%s6421_s26 + $0xd8] sm:$0xff] }
 0xe54   :  { %5256 = vtanh.f32 %v2114_v20  ;;  %v2112_v51 = vadd.f32 %v2108_v21, %v2091_v4  ;;  %v4521_v4 = vld [vmem:[%s6421_s26 + $0x80] sm:$0xff]  ;;  %v5119_v20 = vpack.c.bf16 %v4532_v19, %v4530_v17 }
 0xe55   :  { %v2115_v11 = vmul.f32 0.7978846, %v2111_v54  ;;  %v5113_v8 = vpack.c.bf16 %v4523_v7, %v4521_v4  ;;  %v4529_v21 = vld [vmem:[%s6421_s26 + $0xc0] sm:$0xff]  ;;  %v4531_v54 = vld [vmem:[%s6421_s26 + $0xd0] sm:$0xff] }
 0xe56   :  { %v2116_v23 = vmul.f32 0.7978846, %v2112_v51  ;;  %v5121_v51 = vpack.c.bf16 %v4531_v54, %v4529_v21 }
 0xe57   :  { %5258 = vtanh.f32 %v2115_v11  ;;  %v4534_v11 = vld [vmem:[%s6421_s26 + $0xe8] sm:$0xff] }
 0xe58   :  { %5260 = vtanh.f32 %v2116_v23  ;;  %v4536_v23 = vld [vmem:[%s6421_s26 + $0xf8] sm:$0xff] }
 0xe5d   :  { %v5255_v24 = vpop.eup %5254 }
 0xe5e   :  { %v5257_v13 = vpop.eup %5256  ;;  %v2121_v25 = vadd.f32 1.0, %v5255_v24  ;;  %v5123_v24 = vpack.c.bf16 %v4536_v23, %v4534_v11 }
 0xe5f   :  { %v2122_v27 = vadd.f32 1.0, %v5257_v13  ;;  %v4533_v13 = vld [vmem:[%s6421_s26 + $0xe0] sm:$0xff] }
 0xe60   :  { %v2125_v32 = vmul.f32 %v2121_v25, %v2093_v28  ;;  %v4535_v25 = vld [vmem:[%s6421_s26 + $0xf0] sm:$0xff] }
 0xe61   :  { %v5259_v29 = vpop.eup %5258  ;;  %v2126_v30 = vmul.f32 %v2122_v27, %v2094_v26  ;;  %v5125_v26 = vpack.c.bf16 %v4535_v25, %v4533_v13 }
 0xe62   :  { %v5261_v31 = vpop.eup %5260  ;;  %v2123_v34 = vadd.f32 1.0, %v5259_v29 }
 0xe63   :  { %2232 = vmatprep.mubr.f32.mxu1 %v2126_v30  ;;  %v2124_v36 = vadd.f32 1.0, %v5261_v31 }
 0xe64   :  { %2233 = vmatmul.mubr.f32.vlgmr.msra.gmra.mrb[16].mxu1 %v2125_v32  ;;  %v2127_v39 = vmul.f32 %v2123_v34, %v2095_v37  ;;  %v4520_v37 = vld [vmem:[%s6401_s15] ss:$0 sm:$0xff] }
 0xe65   :  { %v2128_v38 = vmul.f32 %v2124_v36, %v2096_v35  ;;  %v4519_v35 = vld [vmem:[%s6400_s14] ss:$0 sm:$0xff] }
 0xe67   :  { %2237 = vmatprep.mubr.f32.mxu1 %v2128_v38 }
 0xe68   :  { %2238 = vmatmul.mubr.f32.gmra.mrb[18].mxu1 %v2127_v39 }
 0xe69   :  { %4935 = vmatprep.mubr.msk.f32.mxu1 %vm5339_vm1, %v5338_v33 }
 0xf37   :  { %v4723_v40 = vpop.f32.mrb[16].mxu1 }
 0xf38   :  { %v4724_v42 = vpop.f32.mrb[17].mxu1 }
 0xf39   :  { %v4725_v43 = vadd.f32 %v4724_v42, %v4723_v40 }
 0xf3b   :  { %v2235_v44 = vadd.f32 %v4725_v43, %v4518_v41  ;;  %v4726_v45 = vpop.f32.mrb[18].mxu1 }
 0xf3c   :  { %v4727_v46 = vpop.f32.mrb[19].mxu1 }
 0xf3d   :  { %v4728_v47 = vadd.f32 %v4727_v46, %v4726_v45  ;;  %v2243_v48 = vadd.f32 %v2235_v44, %v5811_v2  ;;  %v4537_v44 = vld [vmem:[%s6391_s5 + $0x2] sm:$0x3]  ;;  %s6425_s5 = smov 96  }
 0xf3e   :  { %v2312_v45 = vrot.slane %v4537_v44, %v5534_v57  ;;  %v2316_v46 = vrot.slane %v4537_v44, %v5539_v59 }
 0xf3f   :  { %v2240_v49 = vadd.f32 %v4728_v47, %v4518_v41  ;;  %v2247_v63 = vsel %vm70_vm0, %v2243_v48, 0.0 }
 0xf40   :  { %2248 = vadd.xlane.f32.xlu0 %v2247_v63 }
 0xf41   :  { %v2244_v5 = vadd.f32 %v2240_v49, %v5816_v6  ;;  %v4522_v6 = vld [vmem:[%s6421_s26 + $0x88] sm:$0xff] }
 0xf42   :  { %v5111_v0 = vpack.c.bf16 %v4524_v62, %v4522_v6 }
 0xf43   :  { %v2250_v50 = vsel %vm70_vm0, %v2244_v5, 0.0 }
 0xf44   :  { %2251 = vadd.xlane.f32.xlu1 %v2250_v50  ;;  %5112 = vmatprep.subr.bf16.mxu0 %v5111_v0 }
 0xf45   :  { %5114 = vmatpush1.bf16.msra.mxu0 %v5113_v8 }
 0xf46   :  { %5116 = vmatprep.subr.bf16.mxu0 %v5115_v12 }
 0xf49   :  { %5118 = vmatpush1.bf16.msra.mxu0 %v5117_v16 }
 0xf4a   :  { %5120 = vmatprep.subr.bf16.mxu0 %v5119_v20 }
 0xf4d   :  { %5122 = vmatpush1.bf16.msra.mxu0 %v5121_v51 }
 0xf4e   :  { %5124 = vmatprep.subr.bf16.mxu0 %v5123_v24 }
 0xf51   :  { %5126 = vmatpush1.bf16.msra.mxu0 %v5125_v26 }
 0xf52   :  { %4923 = vmatprep.subr.mxu0 %v5338_v33 }
 0xfcd   :  { %v2249_v52 = vpop.xlane.xlu0 %2248 }
 0xfce   :  { %v2253_v1 = vmul.f32 0.015625, %v2249_v52 }
 0xfd0   :  { %v2255_v53 = vsub.f32 %v2243_v48, %v2253_v1 }
 0xfd1   :  { %v2252_v55 = vpop.xlane.xlu1 %2251 }
 0xfd2   :  { %v2254_v56 = vmul.f32 0.015625, %v2252_v55  ;;  %v2257_v58 = vmul.f32 %v2255_v53, %v2255_v53 }
 0xfd4   :  { %v2256_v3 = vsub.f32 %v2244_v5, %v2254_v56  ;;  %v2259_v60 = vsel %vm70_vm0, %v2257_v58, 0.0 }
 0xfd5   :  { %2260 = vadd.xlane.f32.xlu0 %v2259_v60 }
 0xfd6   :  { %v2258_v2 = vmul.f32 %v2256_v3, %v2256_v3 }
 0xfd8   :  { %v2262_v61 = vsel %vm70_vm0, %v2258_v2, 0.0 }
 0xfd9   :  { %2263 = vadd.xlane.f32.xlu1 %v2262_v61 }
0x1062   :  { %v2261_v27 = vpop.xlane.xlu0 %2260 }
0x1063   :  { %v2265_v28 = vmul.f32 0.015625, %v2261_v27 }
0x1065   :  { %v2267_v29 = vadd.f32 1e-12, %v2265_v28 }
0x1066   :  { %v2264_v30 = vpop.xlane.xlu1 %2263 }
0x1067   :  { %5262 = vrsqrt.f32 %v2267_v29  ;;  %v2266_v31 = vmul.f32 0.015625, %v2264_v30 }
0x1069   :  { %v2268_v32 = vadd.f32 1e-12, %v2266_v31 }
0x106b   :  { %5264 = vrsqrt.f32 %v2268_v32 }
0x1071   :  { %v5263_v34 = vpop.eup %5262 }
0x1072   :  { %v2271_v36 = vmul.f32 %v5263_v34, %v2255_v53 }
0x1074   :  { %v2279_v38 = vmul.f32 %v4519_v35, %v2271_v36 }
0x1075   :  { %v5265_v39 = vpop.eup %5264 }
0x1076   :  { %v5977_v40 = vadd.f32 %v4520_v37, %v2279_v38  ;;  %v2272_v41 = vmul.f32 %v5265_v39, %v2256_v3 }
0x1078   :  { %4538 = vmatmul.mubr.msk.f32.vlgmr.msra.gmra.mrb[26].mxu0 %vm70_vm0, %v5977_v40  ;;  %v2280_v42 = vmul.f32 %v4519_v35, %v2272_v41 }
0x1079   :  { %2395 = vmatprep.mubr.f32.mxu0 %v5338_v33 }
0x107a   :  { %v5982_v43 = vadd.f32 %v4520_v37, %v2280_v42 }
0x107c   :  { %4539 = vmatmul.mubr.msk.f32.gmra.mrb[28].mxu0 %vm70_vm0, %v5982_v43 }
0x107d   :  { %4925 = vmatprep.mubr.msk.f32.mxu0 %vm5339_vm1, %v5338_v33 }
0x114b   :  { %v2391_v47 = vpop.f32.mrb[26].mxu0 }
0x114c   :  { %v5993_v48 = vadd.f32 %v2391_v47, %v2312_v45  ;;  %v2393_v49 = vpop.f32.mrb[27].mxu0 }
0x114d   :  { %v5995_v63 = vadd.f32 %v2393_v49, %v2316_v46 }
0x114e   :  { %2412 = vrot.lane.b32.xlu0 %v5993_v48, %s5340_s24 }
0x114f   :  { %v2397_v5 = vpop.f32.mrb[28].mxu0  ;;  %4934 = vmatpush3.msra.mxu1 %v5995_v63 }
0x1150   :  { %v6000_v50 = vadd.f32 %v2397_v5, %v2312_v45  ;;  %v2399_v52 = vpop.f32.mrb[29].mxu0  ;;  %4943 = vmatprep.subr.mxu1 %v5338_v33 }
0x1151   :  { %v6003_v1 = vadd.f32 %v2399_v52, %v2316_v46 }
0x1152   :  { %2489 = vrot.lane.b32.xlu1 %v6000_v50, %s5340_s24  ;;  %s6426_s24 = smov 16  }
0x11c0   :  { %v2413_v53 = vpop.permute.xlu0 %2412 }
0x11c1   :  { %4924 = vmatpush3.xpose.msk.msra.mxu0 %vm260_vm2, %v2413_v53 }
0x11c2   :  { %4928 = vmatprep.subr.mxu0 %v5338_v33 }
0x11c4   :  { %v2490_v55 = vpop.permute.xlu1 %2489  ;;  %4926 = vmatmul.mubr.msk.f32.vlgmr.msra.gmra.mrb[30].mxu0 %vm260_vm2, %v5993_v48 }
0x11c5   :  { %4929 = vmatpush3.xpose.msk.msra.mxu0 %vm260_vm2, %v2490_v55  ;;  %4930 = vmatprep.mubr.msk.f32.mxu0 %vm5339_vm1, %v5338_v33 }
0x11c6   :  { %4938 = vmatprep.subr.mxu0 %v5338_v33 }
0x11c8   :  { %4931 = vmatmul.mubr.msk.f32.vlgmr.msra.gmra.mrb[32].mxu0 %vm260_vm2, %v6000_v50 }
0x11c9   :  { %4939 = vmatpush3.msra.mxu0 %v6003_v1  ;;  %4940 = vmatprep.mubr.msk.f32.mxu0 %vm5339_vm1, %v5338_v33 }
0x11ca   :  { %4948 = vmatprep.subr.mxu0 %v5338_v33 }
0x1297   :  { %v2484_v56 = vpop.f32.mrb[30].mxu0 }
0x1298   :  { %v4927_v58 = vpop.f32.mrb[31].mxu0  ;;  %v2565_v62 = vmul.f32 0.25, %v2484_v56 }
0x129a   :  { %v2567_v0 = vadd.f32 %v2565_v62, %v5582_v18 }
0x129b   :  { %v2561_v3 = vpop.f32.mrb[32].mxu0 }
0x129c   :  { %v2566_v60 = vmul.f32 0.25, %v2561_v3  ;;  %v4932_v2 = vpop.f32.mrb[33].mxu0  ;;  %v2569_v4 = vsel %vm426_vm3, %v2567_v0, -inf }
0x129e   :  { %v2568_v61 = vadd.f32 %v2566_v60, %v5585_v22 }
0x12a0   :  { %v2572_v6 = vsel %vm426_vm3, %v2568_v61, -inf }
0x12a1   :  { %2573 = vmax.xlane.f32.xlu1 %v2572_v6 }
0x12b2   :  { %2815 = vrot.lane.b32.xlu1 %v6000_v50, %s5342_s25 }
0x12d6   :  { %2570 = vmax.xlane.f32.xlu1 %v2569_v4 }
0x12e7   :  { %2737 = vrot.lane.b32.xlu1 %v5993_v48, %s5342_s25 }
0x132e   :  { %v2574_v7 = vpop.xlane.xlu1 %2573 }
0x132f   :  { %v2576_v8 = vsub.f32 %v2568_v61, %v2574_v7 }
0x1331   :  { %v2579_v9 = vmul.f32 1.442695, %v2576_v8 }
0x1332   :  { %v2816_v14 = vpop.permute.xlu1 %2815 }
0x1333   :  { %5266 = vpow2.f32 %v2579_v9 }
0x133d   :  { %v5267_v10 = vpop.eup %5266 }
0x133e   :  { %v2584_v12 = vsel %vm426_vm3, %v5267_v10, 0.0 }
0x133f   :  { %2585 = vadd.xlane.f32.xlu0 %v2584_v12  ;;  %v4543_v12 = vld [vmem:[%s6392_s6 + $0x58] sm:$0xff] }
0x1355   :  { %2817 = vrot.lane.b32.xlu0 %v6000_v50, %s5341_s2 }
0x1363   :  { %v2571_v15 = vpop.xlane.xlu1 %2570 }
0x1364   :  { %v2575_v16 = vsub.f32 %v2567_v0, %v2571_v15  ;;  %v4540_v15 = vld [vmem:[%s6392_s6 + $0x40] sm:$0xff] }
0x1366   :  { %v2577_v17 = vmul.f32 1.442695, %v2575_v16  ;;  %v4541_v16 = vld [vmem:[%s6392_s6 + $0x48] sm:$0xff] }
0x1367   :  { %v2738_v26 = vpop.permute.xlu1 %2737 }
0x1368   :  { %5268 = vpow2.f32 %v2577_v17  ;;  %v5131_v17 = vpack.c.bf16 %v4541_v16, %v4540_v15 }
0x1372   :  { %v5269_v19 = vpop.eup %5268 }
0x1373   :  { %v2581_v20 = vsel %vm426_vm3, %v5269_v19, 0.0 }
0x1374   :  { %2582 = vadd.xlane.f32.xlu0 %v2581_v20 }
0x138a   :  { %2739 = vrot.lane.b32.xlu0 %v5993_v48, %s5341_s2  ;;  %s6427_s2 = smov 80  }
0x13cc   :  { %v2586_v21 = vpop.xlane.xlu0 %2585 }
0x13cd   :  { %5270 = vrcp.f32 %v2586_v21 }
0x13d0   :  { %v2818_v11 = vpop.permute.xlu0 %2817 }
0x13d7   :  { %v5271_v54 = vpop.eup %5270 }
0x13d8   :  { %v2590_v51 = vmul.f32 %v5271_v54, %v5267_v10  ;;  %v4542_v10 = vld [vmem:[%s6392_s6 + $0x50] sm:$0xff] }
0x13da   :  { %4941 = vmatmul.mubr.msk.f32.vlgmr.msra.gmra.mrb[34].mxu0 %vm426_vm3, %v2590_v51 }
0x13db   :  { %4949 = vmatpush3.xpose.msk.msra.mxu0 %vm260_vm2, %v2818_v11  ;;  %4950 = vmatprep.mubr.msk.f32.mxu0 %vm5339_vm1, %v5338_v33 }
0x13dc   :  { %4958 = vmatprep.subr.mxu0 %v5338_v33 }
0x13de   :  { %4951 = vmatmul.mubr.msk.f32.vlgmr.msra.gmra.mrb[36].mxu0 %vm260_vm2, %v2816_v14  ;;  %v5127_v14 = vpack.c.bf16 %v4543_v12, %v4542_v10 }
0x13df   :  { %4960 = vmatprep.mubr.msk.f32.mxu0 %vm5339_vm1, %v5338_v33 }
0x1401   :  { %v2583_v23 = vpop.xlane.xlu0 %2582 }
0x1402   :  { %5272 = vrcp.f32 %v2583_v23 }
0x1405   :  { %v2740_v25 = vpop.permute.xlu0 %2739 }
0x140c   :  { %v5273_v24 = vpop.eup %5272 }
0x140d   :  { %v2589_v13 = vmul.f32 %v5273_v24, %v5269_v19 }
0x140f   :  { %4936 = vmatmul.mubr.msk.f32.vlgmr.msra.gmra.mrb[20].mxu1 %vm426_vm3, %v2589_v13 }
0x1410   :  { %4944 = vmatpush3.xpose.msk.msra.mxu1 %vm260_vm2, %v2740_v25  ;;  %4945 = vmatprep.mubr.msk.f32.mxu1 %vm5339_vm1, %v5338_v33 }
0x1411   :  { %4953 = vmatprep.subr.mxu1 %v5338_v33 }
0x1413   :  { %4946 = vmatmul.mubr.msk.f32.vlgmr.msra.gmra.mrb[22].mxu1 %vm260_vm2, %v2738_v26 }
0x1414   :  { %4955 = vmatprep.mubr.msk.f32.mxu1 %vm5339_vm1, %v5338_v33 }
0x14ad   :  { %v6051_v27 = vpop.f32.mrb[34].mxu0 }
0x14ae   :  { %v4942_v28 = vpop.f32.mrb[35].mxu0 }
0x14b1   :  { %v2889_v29 = vpop.f32.mrb[36].mxu0 }
0x14b2   :  { %v2894_v30 = vmul.f32 0.25, %v2889_v29  ;;  %v4952_v31 = vpop.f32.mrb[37].mxu0 }
0x14b4   :  { %v2896_v32 = vadd.f32 %v2894_v30, %v5585_v22 }
0x14b6   :  { %v2900_v34 = vsel %vm426_vm3, %v2896_v32, -inf }
0x14b7   :  { %2901 = vmax.xlane.f32.xlu1 %v2900_v34 }
0x14c8   :  { %3237 = vrot.lane.b32.xlu1 %v5993_v48, %s5344_s4 }
0x14cc   :  { %3235 = vrot.lane.b32.xlu1 %v5993_v48, %s6425_s5 }
0x14d0   :  { %3315 = vrot.lane.b32.xlu1 %v6000_v50, %s5344_s4 }
0x14e2   :  { %v6061_v35 = vpop.f32.mrb[20].mxu1 }
0x14e3   :  { %v4937_v36 = vpop.f32.mrb[21].mxu1 }
0x14e6   :  { %v2811_v37 = vpop.f32.mrb[22].mxu1 }
0x14e7   :  { %v4947_v38 = vpop.f32.mrb[23].mxu1  ;;  %v2893_v39 = vmul.f32 0.25, %v2811_v37 }
0x14e9   :  { %v2895_v41 = vadd.f32 %v2893_v39, %v5582_v18 }
0x14eb   :  { %v2897_v42 = vsel %vm426_vm3, %v2895_v41, -inf }
0x14f4   :  { %2898 = vmax.xlane.f32.xlu1 %v2897_v42 }
0x1544   :  { %v2902_v44 = vpop.xlane.xlu1 %2901 }
0x1545   :  { %v2904_v45 = vsub.f32 %v2896_v32, %v2902_v44  ;;  %v4544_v44 = vld [vmem:[%s6392_s6 + $0x60] sm:$0xff] }
0x1547   :  { %v2907_v46 = vmul.f32 1.442695, %v2904_v45  ;;  %v4545_v45 = vld [vmem:[%s6392_s6 + $0x68] sm:$0xff] }
0x1548   :  { %v3238_v5 = vpop.permute.xlu1 %3237 }
0x1549   :  { %5274 = vpow2.f32 %v2907_v46 }
0x154c   :  { %v3236_v52 = vpop.permute.xlu1 %3235 }
0x1550   :  { %v3316_v53 = vpop.permute.xlu1 %3315 }
0x1553   :  { %v5275_v47 = vpop.eup %5274 }
0x1554   :  { %v2912_v49 = vsel %vm426_vm3, %v5275_v47, 0.0 }
0x1555   :  { %2913 = vadd.xlane.f32.xlu0 %v2912_v49 }
0x156b   :  { %2997 = vrot.lane.b32.xlu0 %v6003_v1, %s5342_s25 }
0x156f   :  { %3313 = vrot.lane.b32.xlu0 %v6000_v50, %s6425_s5 }
0x1581   :  { %v2899_v55 = vpop.xlane.xlu1 %2898 }
0x1582   :  { %v2903_v56 = vsub.f32 %v2895_v41, %v2899_v55 }
0x1584   :  { %v2905_v58 = vmul.f32 1.442695, %v2903_v56 }
0x1586   :  { %5276 = vpow2.f32 %v2905_v58 }
0x1590   :  { %v5277_v3 = vpop.eup %5276 }
0x1591   :  { %v2909_v60 = vsel %vm426_vm3, %v5277_v3, 0.0 }
0x1592   :  { %2910 = vadd.xlane.f32.xlu0 %v2909_v60 }
0x15a8   :  { %2920 = vrot.lane.b32.xlu0 %v5995_v63, %s5342_s25 }
0x15ac   :  { %3493 = vrot.lane.b32.xlu0 %v6003_v1, %s6425_s5 }
0x15b0   :  { %3654 = vrot.lane.b32.xlu0 %v5993_v48, %s6426_s24 }
0x15b4   :  { %3732 = vrot.lane.b32.xlu0 %v6000_v50, %s6426_s24 }
0x15b8   :  { %3652 = vrot.lane.b32.xlu0 %v5993_v48, %s6427_s2 }
0x15e2   :  { %v2914_v2 = vpop.xlane.xlu0 %2913 }
0x15e3   :  { %5278 = vrcp.f32 %v2914_v2 }
0x15e6   :  { %v2998_v61 = vpop.permute.xlu0 %2997 }
0x15e7   :  { %4959 = vmatpush3.msra.mxu0 %v2998_v61 }
0x15e8   :  { %4977 = vmatprep.subr.mxu0 %v5338_v33 }
0x15ea   :  { %v3314_v48 = vpop.permute.xlu0 %3313 }
0x15ed   :  { %v5279_v6 = vpop.eup %5278 }
0x15ee   :  { %v2918_v62 = vmul.f32 %v5279_v6, %v5275_v47  ;;  %v5135_v47 = vpack.c.bf16 %v4545_v45, %v4544_v44 }
0x15f0   :  { %4961 = vmatmul.mubr.msk.f32.vlgmr.msra.gmra.mrb[38].mxu0 %vm426_vm3, %v2918_v62 }
0x15f1   :  { %4978 = vmatpush3.xpose.msk.msra.mxu0 %vm260_vm2, %v3238_v5  ;;  %4979 = vmatprep.mubr.msk.f32.mxu0 %vm5339_vm1, %v5338_v33 }
0x15f2   :  { %4982 = vmatprep.subr.mxu0 %v5338_v33 }
0x15f4   :  { %4980 = vmatmul.mubr.msk.f32.vlgmr.msra.gmra.mrb[40].mxu0 %vm260_vm2, %v3236_v52 }
0x15f5   :  { %4983 = vmatpush3.xpose.msk.msra.mxu0 %vm260_vm2, %v3316_v53  ;;  %4984 = vmatprep.mubr.msk.f32.mxu0 %vm5339_vm1, %v5338_v33 }
0x15f6   :  { %4992 = vmatprep.subr.mxu0 %v5338_v33 }
0x15f8   :  { %4985 = vmatmul.mubr.msk.f32.vlgmr.msra.gmra.mrb[42].mxu0 %vm260_vm2, %v3314_v48 }
0x15f9   :  { %4994 = vmatprep.mubr.msk.f32.mxu0 %vm5339_vm1, %v5338_v33 }
0x161f   :  { %v2911_v0 = vpop.xlane.xlu0 %2910 }
0x1620   :  { %5280 = vrcp.f32 %v2911_v0 }
0x1623   :  { %v2921_v4 = vpop.permute.xlu0 %2920 }
0x1624   :  { %4954 = vmatpush3.msra.mxu1 %v2921_v4 }
0x1625   :  { %5128 = vmatprep.subr.bf16.mxu1 %v5127_v14 }
0x1627   :  { %v3494_v7 = vpop.permute.xlu0 %3493 }
0x1628   :  { %4993 = vmatpush3.msra.mxu0 %v3494_v7 }
0x1629   :  { %5004 = vmatprep.subr.mxu0 %v5338_v33 }
0x162a   :  { %v5281_v8 = vpop.eup %5280 }
0x162b   :  { %v2917_v9 = vmul.f32 %v5281_v8, %v5277_v3  ;;  %v3655_v5 = vpop.permute.xlu0 %3654 }
0x162d   :  { %4956 = vmatmul.mubr.msk.f32.vlgmr.msra.gmra.mrb[24].mxu1 %vm426_vm3, %v2917_v9 }
0x162e   :  { %5130 = vmatpush3.bf16.msra.mxu1 %v5127_v14 }
0x162f   :  { %5132 = vmatprep.subr.bf16.mxu1 %v5131_v17  ;;  %v3733_v55 = vpop.permute.xlu0 %3732 }
0x1633   :  { %v3653_v58 = vpop.permute.xlu0 %3652 }
0x16c3   :  { %v3069_v19 = vpop.f32.mrb[38].mxu0 }
0x16c4   :  { %v4962_v20 = vpop.f32.mrb[39].mxu0 }
0x16c7   :  { %v3309_v21 = vpop.f32.mrb[40].mxu0 }
0x16c8   :  { %v3391_v54 = vmul.f32 0.25, %v3309_v21  ;;  %v4981_v51 = vpop.f32.mrb[41].mxu0 }
0x16ca   :  { %v3393_v11 = vadd.f32 %v3391_v54, %v5582_v18 }
0x16cb   :  { %v3387_v23 = vpop.f32.mrb[42].mxu0 }
0x16cc   :  { %v3392_v24 = vmul.f32 0.25, %v3387_v23  ;;  %v4986_v13 = vpop.f32.mrb[43].mxu0  ;;  %v3395_v25 = vsel %vm426_vm3, %v3393_v11, -inf }
0x16cd   :  { %3396 = vmax.xlane.f32.xlu1 %v3395_v25 }
0x16ce   :  { %v3394_v26 = vadd.f32 %v3392_v24, %v5585_v22 }
0x16d0   :  { %v3398_v28 = vsel %vm426_vm3, %v3394_v26, -inf }
0x16d1   :  { %3399 = vmax.xlane.f32.xlu1 %v3398_v28 }
0x1700   :  { %v2992_v29 = vpop.f32.mrb[24].mxu1 }
0x1701   :  { %v4957_v30 = vpop.f32.mrb[25].mxu1  ;;  %4967 = vmatprep.mubr.msk.f32.mxu1 %vm260_vm2, %v2992_v29  ;;  %v4547_v29 = vld [vmem:[%s6392_s6 + $0x78] sm:$0xff] }
0x1702   :  { %4968 = vmatmul.mubr.msk.f32.vlgmr.msra.gmra.mrb[26].mxu1 %vm260_vm2, %v3069_v19 }
0x1703   :  { %4974 = vmatprep.mubr.msk.f32.mxu1 %vm260_vm2, %v6061_v35  ;;  %5134 = vmatpush3.bf16.msra.mxu1 %v5131_v17 }
0x1704   :  { %4987 = vmatprep.subr.mxu1 %v5338_v33 }
0x170a   :  { %4975 = vmatmul.mubr.msk.f32.vlgmr.msra.gmra.mrb[26].mxu1 %vm260_vm2, %v6051_v27 }
0x170b   :  { %4989 = vmatprep.mubr.msk.f32.mxu1 %vm5339_vm1, %v5338_v33 }
0x175a   :  { %v3397_v31 = vpop.xlane.xlu1 %3396 }
0x175b   :  { %v3401_v32 = vsub.f32 %v3393_v11, %v3397_v31 }
0x175d   :  { %v3403_v34 = vmul.f32 1.442695, %v3401_v32 }
0x175e   :  { %v3400_v36 = vpop.xlane.xlu1 %3399 }
0x175f   :  { %5282 = vpow2.f32 %v3403_v34  ;;  %v3402_v37 = vsub.f32 %v3394_v26, %v3400_v36 }
0x1761   :  { %v3405_v38 = vmul.f32 1.442695, %v3402_v37  ;;  %v4581_v37 = vld [vmem:[%s6393_s7 + $0x1] ss:$0 sm:$0xff] }
0x1763   :  { %5284 = vpow2.f32 %v3405_v38 }
0x1769   :  { %v5283_v39 = vpop.eup %5282 }
0x176a   :  { %v3407_v35 = vsel %vm426_vm3, %v5283_v39, 0.0 }
0x176b   :  { %3408 = vadd.xlane.f32.xlu1 %v3407_v35 }
0x176d   :  { %v5285_v41 = vpop.eup %5284 }
0x176e   :  { %v3410_v42 = vsel %vm426_vm3, %v5285_v41, 0.0 }
0x176f   :  { %3411 = vadd.xlane.f32.xlu1 %v3410_v42 }
0x1780   :  { %3417 = vrot.lane.b32.xlu1 %v5995_v63, %s6425_s5 }
0x1784   :  { %3730 = vrot.lane.b32.xlu1 %v6000_v50, %s6427_s2 }
0x17f8   :  { %v3409_v27 = vpop.xlane.xlu1 %3408 }
0x17f9   :  { %5286 = vrcp.f32 %v3409_v27 }
0x17fc   :  { %v3412_v46 = vpop.xlane.xlu1 %3411 }
0x17fd   :  { %5288 = vrcp.f32 %v3412_v46 }
0x1800   :  { %v3418_v49 = vpop.permute.xlu1 %3417 }
0x1801   :  { %4988 = vmatpush3.msra.mxu1 %v3418_v49 }
0x1802   :  { %5136 = vmatprep.subr.bf16.mxu1 %v5135_v47 }
0x1803   :  { %v5287_v52 = vpop.eup %5286 }
0x1804   :  { %v3415_v53 = vmul.f32 %v5287_v52, %v5283_v39  ;;  %v3731_v6 = vpop.permute.xlu1 %3730 }
0x1806   :  { %4990 = vmatmul.mubr.msk.f32.vlgmr.msra.gmra.mrb[28].mxu1 %vm426_vm3, %v3415_v53 }
0x1807   :  { %v5289_v50 = vpop.eup %5288  ;;  %5138 = vmatpush3.bf16.msra.mxu1 %v5135_v47 }
0x1808   :  { %v3416_v56 = vmul.f32 %v5289_v50, %v5285_v41  ;;  %5009 = vmatprep.subr.mxu1 %v5338_v33 }
0x180a   :  { %4995 = vmatmul.mubr.msk.f32.vlgmr.msra.gmra.mrb[44].mxu0 %vm426_vm3, %v3416_v56 }
0x180b   :  { %5005 = vmatpush3.xpose.msk.msra.mxu0 %vm260_vm2, %v3655_v5  ;;  %5006 = vmatprep.mubr.msk.f32.mxu0 %vm5339_vm1, %v5338_v33 }
0x180c   :  { %5014 = vmatprep.subr.mxu0 %v5338_v33 }
0x180e   :  { %5007 = vmatmul.mubr.msk.f32.vlgmr.msra.gmra.mrb[46].mxu0 %vm260_vm2, %v3653_v58  ;;  %v4589_v58 = vld [vmem:[%s6396_s10 + $0x98] sm:$0xff] }
0x180f   :  { %5016 = vmatprep.mubr.msk.f32.mxu0 %vm5339_vm1, %v5338_v33 }
0x18d9   :  { %v3489_v3 = vpop.f32.mrb[28].mxu1 }
0x18da   :  { %v4991_v60 = vpop.f32.mrb[29].mxu1  ;;  %5001 = vmatprep.mubr.msk.f32.mxu1 %vm260_vm2, %v3489_v3 }
0x18db   :  { %v4586_v60 = vld [vmem:[%s6396_s10 + $0x80] sm:$0xff] }
0x18dd   :  { %v3565_v2 = vpop.f32.mrb[44].mxu0 }
0x18de   :  { %v4996_v61 = vpop.f32.mrb[45].mxu0  ;;  %5002 = vmatmul.mubr.msk.f32.vlgmr.msra.gmra.mrb[26].mxu1 %vm260_vm2, %v3565_v2  ;;  %v4588_v2 = vld [vmem:[%s6396_s10 + $0x90] sm:$0xff] }
0x18df   :  { %5010 = vmatpush3.xpose.msk.msra.mxu1 %vm260_vm2, %v3733_v55  ;;  %5011 = vmatprep.mubr.msk.f32.mxu1 %vm5339_vm1, %v5338_v33  ;;  %v5145_v61 = vpack.c.bf16 %v4588_v2, %v4586_v60  ;;  %v4630_v60 = vld [vmem:[%s6398_s12 + $0x1c8] sm:$0xff]  ;;  %v4613_v2 = vld [vmem:[%s6398_s12 + $0x140] sm:$0xff] }
0x18e0   :  { %5019 = vmatprep.subr.mxu1 %v5338_v33 }
0x18e1   :  { %v3726_v62 = vpop.f32.mrb[46].mxu0 }
0x18e2   :  { %v3808_v48 = vmul.f32 0.25, %v3726_v62  ;;  %v5008_v0 = vpop.f32.mrb[47].mxu0  ;;  %5012 = vmatmul.mubr.msk.f32.vlgmr.msra.gmra.mrb[30].mxu1 %vm260_vm2, %v3731_v6  ;;  %v4591_v6 = vld [vmem:[%s6396_s10 + $0xa8] sm:$0xff]  ;;  %v4593_v62 = vld [vmem:[%s6396_s10 + $0xb8] sm:$0xff] }
0x18e3   :  { %5021 = vmatprep.mubr.msk.f32.mxu1 %vm5339_vm1, %v5338_v33  ;;  %v4590_v0 = vld [vmem:[%s6396_s10 + $0xa0] sm:$0xff] }
0x18e4   :  { %v3810_v4 = vadd.f32 %v3808_v48, %v5582_v18  ;;  %v5147_v48 = vpack.c.bf16 %v4593_v62, %v4591_v6  ;;  %v4614_v6 = vld [vmem:[%s6398_s12 + $0x148] sm:$0xff]  ;;  %v4631_v62 = vld [vmem:[%s6398_s12 + $0x1d0] sm:$0xff] }
0x18e6   :  { %v3812_v7 = vsel %vm426_vm3, %v3810_v4, -inf }
0x18e7   :  { %3813 = vmax.xlane.f32.xlu0 %v3812_v7 }
0x1974   :  { %v3814_v8 = vpop.xlane.xlu0 %3813 }
0x1975   :  { %v3818_v9 = vsub.f32 %v3810_v4, %v3814_v8  ;;  %v4592_v4 = vld [vmem:[%s6396_s10 + $0xb0] sm:$0xff]  ;;  %v4595_v8 = vld [vmem:[%s6396_s10 + $0xc8] sm:$0xff] }
0x1976   :  { %v5149_v7 = vpack.c.bf16 %v4592_v4, %v4590_v0  ;;  %v5177_v0 = vpack.c.bf16 %v4614_v6, %v4613_v2 }
0x1977   :  { %v3820_v10 = vmul.f32 1.442695, %v3818_v9  ;;  %v4597_v9 = vld [vmem:[%s6396_s10 + $0xd8] sm:$0xff] }
0x1979   :  { %5290 = vpow2.f32 %v3820_v10  ;;  %v5151_v10 = vpack.c.bf16 %v4597_v9, %v4595_v8  ;;  %v4616_v8 = vld [vmem:[%s6398_s12 + $0x158] sm:$0xff]  ;;  %v4633_v9 = vld [vmem:[%s6398_s12 + $0x1e0] sm:$0xff] }
0x1983   :  { %v5291_v12 = vpop.eup %5290 }
0x1984   :  { %v3824_v14 = vsel %vm426_vm3, %v5291_v12, 0.0 }
0x1985   :  { %3825 = vadd.xlane.f32.xlu0 %v3824_v14  ;;  %v4596_v14 = vld [vmem:[%s6396_s10 + $0xd0] sm:$0xff] }
0x19b5   :  { %v3804_v15 = vpop.f32.mrb[30].mxu1 }
0x19b6   :  { %v3809_v16 = vmul.f32 0.25, %v3804_v15  ;;  %v5013_v17 = vpop.f32.mrb[31].mxu1 }
0x19b7   :  { %v4601_v17 = vld [vmem:[%s6396_s10 + $0xf8] sm:$0xff] }
0x19b8   :  { %v3811_v19 = vadd.f32 %v3809_v16, %v5585_v22  ;;  %v4599_v16 = vld [vmem:[%s6396_s10 + $0xe8] sm:$0xff] }
0x19ba   :  { %v3815_v20 = vsel %vm426_vm3, %v3811_v19, -inf }
0x19bb   :  { %3816 = vmax.xlane.f32.xlu1 %v3815_v20  ;;  %v5155_v20 = vpack.c.bf16 %v4601_v17, %v4599_v16  ;;  %v4618_v16 = vld [vmem:[%s6398_s12 + $0x168] sm:$0xff]  ;;  %v4635_v17 = vld [vmem:[%s6398_s12 + $0x1f0] sm:$0xff] }
0x19cc   :  { %3910 = vrot.lane.b32.xlu1 %v6003_v1, %s6427_s2 }
0x1a12   :  { %v3826_v22 = vpop.xlane.xlu0 %3825 }
0x1a48   :  { %v3817_v18 = vpop.xlane.xlu1 %3816 }
0x1a49   :  { %v3819_v21 = vsub.f32 %v3811_v19, %v3817_v18  ;;  %v4598_v19 = vld [vmem:[%s6396_s10 + $0xe0] sm:$0xff]  ;;  %v4600_v18 = vld [vmem:[%s6396_s10 + $0xf0] sm:$0xff] }
0x1a4b   :  { %v3822_v54 = vmul.f32 1.442695, %v3819_v21  ;;  %v5157_v21 = vpack.c.bf16 %v4600_v18, %v4598_v19  ;;  %v4636_v19 = vld [vmem:[%s6398_s12 + $0x1f8] sm:$0xff] }
0x1a4c   :  { %v3911_v51 = vpop.permute.xlu1 %3910  ;;  %v5187_v18 = vpack.c.bf16 %v4636_v19, %v4635_v17 }
0x1a4d   :  { %5292 = vpow2.f32 %v3822_v54  ;;  %5020 = vmatpush3.msra.mxu1 %v3911_v51  ;;  %v4621_v54 = vld [vmem:[%s6398_s12 + $0x180] sm:$0xff]  ;;  %v4622_v51 = vld [vmem:[%s6398_s12 + $0x188] sm:$0xff] }
0x1a4e   :  { %5294 = vrcp.f32 %v3826_v22  ;;  %v4606_v22 = vld [vmem:[%s6398_s12 + $0x108] sm:$0xff] }
0x1a57   :  { %v5293_v11 = vpop.eup %5292 }
0x1a58   :  { %v3827_v23 = vsel %vm426_vm3, %v5293_v11, 0.0  ;;  %v5295_v13 = vpop.eup %5294 }
0x1a59   :  { %3828 = vadd.xlane.f32.xlu0 %v3827_v23  ;;  %v3832_v25 = vmul.f32 %v5295_v13, %v5291_v12  ;;  %v4594_v12 = vld [vmem:[%s6396_s10 + $0xc0] sm:$0xff]  ;;  %v5159_v23 = vpack.c.bf16 %v4622_v51, %v4621_v54  ;;  %v4620_v54 = vld [vmem:[%s6398_s12 + $0x178] sm:$0xff] }
0x1a5a   :  { %v5153_v15 = vpack.c.bf16 %v4596_v14, %v4594_v12 }
0x1a6f   :  { %3834 = vrot.lane.b32.xlu0 %v5995_v63, %s6427_s2  ;;  %v4546_v63 = vld [vmem:[%s6392_s6 + $0x70] sm:$0xff] }
0x1a70   :  { %v5139_v30 = vpack.c.bf16 %v4547_v29, %v4546_v63 }
0x1a72   :  { %5140 = vmatprep.subr.bf16.mxu1 %v5139_v30 }
0x1ae6   :  { %v3829_v24 = vpop.xlane.xlu0 %3828 }
0x1ae7   :  { %5296 = vrcp.f32 %v3829_v24 }
0x1aea   :  { %v3835_v1 = vpop.permute.xlu0 %3834 }
0x1aeb   :  { %5015 = vmatpush3.msra.mxu0 %v3835_v1 }
0x1aec   :  { %5017 = vmatmul.mubr.msk.f32.vlgmr.msra.gmra.mrb[48].mxu0 %vm426_vm3, %v3832_v25 }
0x1aed   :  { %4227 = vmatprep.mubr.f32.mxu0 %v5338_v33 }
0x1af1   :  { %v5297_v26 = vpop.eup %5296 }
0x1af2   :  { %v3833_v28 = vmul.f32 %v5297_v26, %v5293_v11  ;;  %v4605_v11 = vld [vmem:[%s6398_s12 + $0x100] sm:$0xff] }
0x1af3   :  { %v5161_v24 = vpack.c.bf16 %v4606_v22, %v4605_v11  ;;  %v4602_v11 = vld [vmem:[%s6397_s11 + $0x2] sm:$0x3] }
0x1af4   :  { %5022 = vmatmul.mubr.msk.f32.vlgmr.msra.gmra.mrb[32].mxu1 %vm426_vm3, %v3833_v28  ;;  %v4154_v22 = vrot.slane %v4602_v11, %v5539_v59 }
0x1af5   :  { %5142 = vmatpush3.bf16.msra.mxu1 %v5139_v30 }
0x1af6   :  { %5160 = vmatprep.subr.bf16.mxu1 %v5159_v23  ;;  %v4150_v23 = vrot.slane %v4602_v11, %v5534_v57 }
0x1bbf   :  { %v3906_v31 = vpop.f32.mrb[48].mxu0 }
0x1bc0   :  { %v5018_v32 = vpop.f32.mrb[49].mxu0  ;;  %5028 = vmatprep.mubr.msk.f32.mxu1 %vm260_vm2, %v3906_v31  ;;  %v4584_v31 = vld [vmem:[%s6394_s8 + $0x1] ss:$0 sm:$0xff] }
0x1bc7   :  { %v3982_v34 = vpop.f32.mrb[32].mxu1 }
0x1bc8   :  { %v5023_v36 = vpop.f32.mrb[33].mxu1  ;;  %5029 = vmatmul.mubr.msk.f32.vlgmr.msra.gmra.mrb[26].mxu1 %vm260_vm2, %v3982_v34 }
0x1bc9   :  { %5162 = vmatpush3.bf16.msra.mxu1 %v5161_v24  ;;  %v4585_v36 = vld [vmem:[%s6395_s9 + $0x1] ss:$0 sm:$0xff] }
0x1c9b   :  { %v5030_v38 = vpop.f32.mrb[26].mxu1 }
0x1c9c   :  { %v4078_v39 = vadd.f32 %v5030_v38, %v4581_v37  ;;  %v4058_v35 = vpop.f32.mrb[27].mxu1 }
0x1c9d   :  { %v4077_v41 = vadd.f32 %v4581_v37, %v4058_v35 }
0x1c9e   :  { %v4080_v42 = vadd.f32 %v4078_v39, %v5982_v43 }
0x1c9f   :  { %v4079_v27 = vadd.f32 %v4077_v41, %v5977_v40  ;;  %v4587_v40 = vld [vmem:[%s6396_s10 + $0x88] sm:$0xff]  ;;  %v4623_v41 = vld [vmem:[%s6398_s12 + $0x190] sm:$0xff] }
0x1ca0   :  { %v4088_v44 = vsel %vm70_vm0, %v4080_v42, 0.0  ;;  %v5143_v3 = vpack.c.bf16 %v4589_v58, %v4587_v40  ;;  %v4612_v40 = vld [vmem:[%s6398_s12 + $0x138] sm:$0xff] }
0x1ca1   :  { %4089 = vadd.xlane.f32.xlu0 %v4088_v44  ;;  %v4085_v45 = vsel %vm70_vm0, %v4079_v27, 0.0  ;;  %v4607_v44 = vld [vmem:[%s6398_s12 + $0x110] sm:$0xff] }
0x1ca2   :  { %4086 = vadd.xlane.f32.xlu1 %v4085_v45  ;;  %5144 = vmatprep.subr.bf16.mxu0 %v5143_v3  ;;  %v4629_v3 = vld [vmem:[%s6398_s12 + $0x1c0] sm:$0xff] }
0x1ca3   :  { %5146 = vmatpush1.bf16.msra.mxu0 %v5145_v61  ;;  %v5175_v61 = vpack.c.bf16 %v4630_v60, %v4629_v3 }
0x1ca4   :  { %5148 = vmatprep.subr.bf16.mxu0 %v5147_v48  ;;  %v4632_v48 = vld [vmem:[%s6398_s12 + $0x1d8] sm:$0xff] }
0x1ca5   :  { %v5179_v4 = vpack.c.bf16 %v4632_v48, %v4631_v62 }
0x1ca7   :  { %5150 = vmatpush1.bf16.msra.mxu0 %v5149_v7  ;;  %v4615_v7 = vld [vmem:[%s6398_s12 + $0x150] sm:$0xff] }
0x1ca8   :  { %5152 = vmatprep.subr.bf16.mxu0 %v5151_v10  ;;  %v4634_v10 = vld [vmem:[%s6398_s12 + $0x1e8] sm:$0xff]  ;;  %v5181_v12 = vpack.c.bf16 %v4616_v8, %v4615_v7  ;;  %v4638_v8 = vld [vmem:[%s6399_s13 + $0x1] ss:$0 sm:$0xff] }
0x1ca9   :  { %v5183_v14 = vpack.c.bf16 %v4634_v10, %v4633_v9 }
0x1cab   :  { %5154 = vmatpush1.bf16.msra.mxu0 %v5153_v15  ;;  %v4617_v15 = vld [vmem:[%s6398_s12 + $0x160] sm:$0xff] }
0x1cac   :  { %5156 = vmatprep.subr.bf16.mxu0 %v5155_v20  ;;  %v5185_v20 = vpack.c.bf16 %v4618_v16, %v4617_v15 }
0x1caf   :  { %5158 = vmatpush1.bf16.msra.mxu0 %v5157_v21  ;;  %v4619_v21 = vld [vmem:[%s6398_s12 + $0x170] sm:$0xff] }
0x1cb0   :  { %v5189_v51 = vpack.c.bf16 %v4620_v54, %v4619_v21 }
0x1d2e   :  { %v4090_v46 = vpop.xlane.xlu0 %4089 }
0x1d2f   :  { %v4092_v47 = vmul.f32 0.015625, %v4090_v46  ;;  %v4087_v49 = vpop.xlane.xlu1 %4086  ;;  %v4625_v46 = vld [vmem:[%s6398_s12 + $0x1a0] sm:$0xff] }
0x1d30   :  { %v4091_v5 = vmul.f32 0.015625, %v4087_v49 }
0x1d31   :  { %v4094_v52 = vsub.f32 %v4080_v42, %v4092_v47  ;;  %v4624_v42 = vld [vmem:[%s6398_s12 + $0x198] sm:$0xff]  ;;  %v4626_v47 = vld [vmem:[%s6398_s12 + $0x1a8] sm:$0xff] }
0x1d32   :  { %v4093_v53 = vsub.f32 %v4079_v27, %v4091_v5  ;;  %v5163_v27 = vpack.c.bf16 %v4624_v42, %v4623_v41  ;;  %v5167_v49 = vpack.c.bf16 %v4626_v47, %v4625_v46  ;;  %v4609_v5 = vld [vmem:[%s6398_s12 + $0x120] sm:$0xff] }
0x1d33   :  { %v4096_v50 = vmul.f32 %v4094_v52, %v4094_v52 }
0x1d34   :  { %v4095_v55 = vmul.f32 %v4093_v53, %v4093_v53  ;;  %5164 = vmatprep.subr.bf16.mxu1 %v5163_v27 }
0x1d35   :  { %v4100_v56 = vsel %vm70_vm0, %v4096_v50, 0.0  ;;  %v4627_v50 = vld [vmem:[%s6398_s12 + $0x1b0] sm:$0xff] }
0x1d36   :  { %4101 = vadd.xlane.f32.xlu1 %v4100_v56  ;;  %v4097_v43 = vsel %vm70_vm0, %v4095_v55, 0.0  ;;  %v4628_v55 = vld [vmem:[%s6398_s12 + $0x1b8] sm:$0xff] }
0x1d37   :  { %4098 = vadd.xlane.f32.xlu0 %v4097_v43  ;;  %v5171_v56 = vpack.c.bf16 %v4628_v55, %v4627_v50  ;;  %v4611_v43 = vld [vmem:[%s6398_s12 + $0x130] sm:$0xff] }
0x1d38   :  { %v5173_v58 = vpack.c.bf16 %v4612_v40, %v4611_v43 }
0x1dc3   :  { %v4102_v13 = vpop.xlane.xlu1 %4101 }
0x1dc4   :  { %v4104_v25 = vmul.f32 0.015625, %v4102_v13  ;;  %v4099_v1 = vpop.xlane.xlu0 %4098 }
0x1dc5   :  { %v4103_v26 = vmul.f32 0.015625, %v4099_v1 }
0x1dc6   :  { %v4106_v28 = vadd.f32 1e-12, %v4104_v25 }
0x1dc7   :  { %v4105_v63 = vadd.f32 1e-12, %v4103_v26 }
0x1dc8   :  { %5298 = vrsqrt.f32 %v4106_v28 }
0x1dc9   :  { %5300 = vrsqrt.f32 %v4105_v63 }
0x1dd2   :  { %v5299_v29 = vpop.eup %5298 }
0x1dd3   :  { %v5301_v30 = vpop.eup %5300  ;;  %v4110_v34 = vmul.f32 %v5299_v29, %v4094_v52  ;;  %v4610_v52 = vld [vmem:[%s6398_s12 + $0x128] sm:$0xff] }
0x1dd4   :  { %v4109_v32 = vmul.f32 %v5301_v30, %v4093_v53  ;;  %v5169_v53 = vpack.c.bf16 %v4610_v52, %v4609_v5 }
0x1dd5   :  { %v4118_v39 = vmul.f32 %v4584_v31, %v4110_v34 }
0x1dd6   :  { %v4117_v37 = vmul.f32 %v4584_v31, %v4109_v32 }
0x1dd7   :  { %v6254_v35 = vadd.f32 %v4585_v36, %v4118_v39 }
0x1dd8   :  { %v6249_v38 = vadd.f32 %v4585_v36, %v4117_v37 }
0x1dda   :  { %4603 = vmatmul.mubr.msk.f32.vlgmr.msra.gmra.mrb[50].mxu0 %vm70_vm0, %v6249_v38 }
0x1ddb   :  { %4233 = vmatprep.mubr.f32.mxu0 %v5338_v33  ;;  %v4608_v33 = vld [vmem:[%s6398_s12 + $0x118] sm:$0xff] }
0x1ddc   :  { %v5165_v45 = vpack.c.bf16 %v4608_v33, %v4607_v44 }
0x1dde   :  { %4604 = vmatmul.mubr.msk.f32.gmra.mrb[52].mxu0 %vm70_vm0, %v6254_v35  ;;  %5166 = vmatpush3.bf16.msra.mxu1 %v5165_v45 }
0x1ddf   :  { %5168 = vmatprep.subr.bf16.mxu1 %v5167_v49 }
0x1de2   :  { %5170 = vmatpush3.bf16.msra.mxu1 %v5169_v53 }
0x1de3   :  { %5172 = vmatprep.subr.bf16.mxu1 %v5171_v56 }
0x1de6   :  { %5174 = vmatpush3.bf16.msra.mxu1 %v5173_v58 }
0x1de7   :  { %5176 = vmatprep.subr.bf16.mxu1 %v5175_v61 }
0x1dea   :  { %5178 = vmatpush3.bf16.msra.mxu1 %v5177_v0 }
0x1deb   :  { %5180 = vmatprep.subr.bf16.mxu1 %v5179_v4 }
0x1dee   :  { %5182 = vmatpush3.bf16.msra.mxu1 %v5181_v12 }
0x1def   :  { %5184 = vmatprep.subr.bf16.mxu1 %v5183_v14 }
0x1df2   :  { %5186 = vmatpush3.bf16.msra.mxu1 %v5185_v20 }
0x1df3   :  { %5188 = vmatprep.subr.bf16.mxu1 %v5187_v18 }
0x1df6   :  { %5190 = vmatpush3.bf16.msra.mxu1 %v5189_v51 }
0x1ead   :  { %v4229_v24 = vpop.f32.mrb[50].mxu0 }
0x1eae   :  { %v4230_v13 = vadd.f32 %v4229_v24, %v4150_v23  ;;  %v4231_v25 = vpop.f32.mrb[51].mxu0 }
0x1eaf   :  { %v4232_v1 = vadd.f32 %v4231_v25, %v4154_v22 }
0x1eb0   :  { %v4244_v26 = vmul.f32 0.044715, %v4230_v13  ;;  %v4240_v40 = vmul.f32 0.5, %v4230_v13 }
0x1eb1   :  { %v4245_v28 = vmul.f32 0.044715, %v4232_v1  ;;  %v4235_v63 = vpop.f32.mrb[52].mxu0  ;;  %v4241_v56 = vmul.f32 0.5, %v4232_v1 }
0x1eb2   :  { %v4248_v29 = vmul.f32 %v4244_v26, %v4230_v13  ;;  %v4236_v30 = vadd.f32 %v4235_v63, %v4150_v23  ;;  %v4237_v31 = vpop.f32.mrb[53].mxu0 }
0x1eb3   :  { %v4249_v32 = vmul.f32 %v4245_v28, %v4232_v1  ;;  %v4238_v34 = vadd.f32 %v4237_v31, %v4154_v22  ;;  %v4441_v31 = vld [vmem:[%s6403_s17] sm:$0x3] }
0x1eb4   :  { %v4252_v36 = vmul.f32 %v4248_v29, %v4230_v13  ;;  %v4246_v37 = vmul.f32 0.044715, %v4236_v30  ;;  %v4242_v48 = vmul.f32 0.5, %v4236_v30 }
0x1eb5   :  { %v4247_v39 = vmul.f32 0.044715, %v4238_v34  ;;  %v4253_v41 = vmul.f32 %v4249_v32, %v4232_v1  ;;  %v4243_v6 = vmul.f32 0.5, %v4238_v34 }
0x1eb6   :  { %v4256_v42 = vadd.f32 %v4252_v36, %v4230_v13  ;;  %v4250_v57 = vmul.f32 %v4246_v37, %v4236_v30  ;;  %v4443_v36 = vld [vmem:[%s6404_s18] sm:$0x3]  ;;  %s5348_s18 = smov [#allocation2]  }
0x1eb7   :  { %v4251_v27 = vmul.f32 %v4247_v39, %v4238_v34  ;;  %v4257_v59 = vadd.f32 %v4253_v41, %v4232_v1  ;;  %v4445_v39 = vld [vmem:[%s6405_s19] sm:$0x3]  ;;  %s4468_s19 = sshll.u32 %s5348_s18, 4  ;;  %s4469_s19 = int_to_ptr.vmem [resolvable:$true] %s4468_s19 }
0x1eb8   :  { %v4260_v44 = vmul.f32 0.7978846, %v4256_v42  ;;  %v4254_v33 = vmul.f32 %v4250_v57, %v4236_v30  ;;  %p5319_p1 = scmp.lt.s32.totalorder %s4469_s19, %s4469_s19 }
0x1eb9   :  { %v4261_v45 = vmul.f32 0.7978846, %v4257_v59  ;;  %v4255_v46 = vmul.f32 %v4251_v27, %v4238_v34  ;;  %v4641_v27 = vld [vmem:[%s6400_s14 + $0x1] ss:$0 sm:$0xff]  ;;  %s5314_s14 = scalar_lea.vmem %s4469_s19, 32 }
0x1eba   :  { %5302 = vtanh.f32 %v4260_v44  ;;  %v4258_v47 = vadd.f32 %v4254_v33, %v4236_v30  ;;  %v4440_v30 = vld [vmem:[%s6402_s16] sm:$0x3]  ;;  %p5315_p0 = scmp.ne.s32.totalorder %s4469_s19, %s5314_s14  ;;  %p5320_p2 = scmp.lt.s32.totalorder %s5314_s14, %s5314_s14 }
0x1ebb   :  { %5304 = vtanh.f32 %v4261_v45  ;;  %v4259_v49 = vadd.f32 %v4255_v46, %v4238_v34  ;;  %v4442_v34 = vadd.f32 %v4441_v31, %v4440_v30  ;;  %v4642_v46 = vld [vmem:[%s6401_s15 + $0x1] ss:$0 sm:$0xff] }
0x1ebc   :  { %v4262_v5 = vmul.f32 0.7978846, %v4258_v47  ;;  %p5321_p3 = por %p5320_p2, %p5319_p1 }
0x1ebd   :  { %v4263_v52 = vmul.f32 0.7978846, %v4259_v49  ;;  %v4444_v37 = vadd.f32 %v4443_v36, %v4442_v34 }
0x1ebe   :  { %5306 = vtanh.f32 %v4262_v5  ;;  %p5322_p4 = pnand %p5321_p3, %p5315_p0 }
0x1ebf   :  { %5308 = vtanh.f32 %v4263_v52  ;;  %v4446_v57 = vadd.f32 %v4445_v39, %v4444_v37 }
0x1ec1   :  { %v4447_v45 = vmul.f32 0.25, %v4446_v57 }
0x1ec3   :  { %v4449_v49 = vrot.slane %v4447_v45, 1 }
0x1ec4   :  { %v5303_v53 = vpop.eup %5302 }
0x1ec5   :  { %v5305_v50 = vpop.eup %5304  ;;  %v4268_v55 = vadd.f32 1.0, %v5303_v53 }
0x1ec6   :  { %v4269_v43 = vadd.f32 1.0, %v5305_v50 }
0x1ec7   :  { %v4272_v2 = vmul.f32 %v4268_v55, %v4240_v40 }
0x1ec8   :  { %v5307_v58 = vpop.eup %5306  ;;  %v4273_v3 = vmul.f32 %v4269_v43, %v4241_v56 }
0x1ec9   :  { %v5309_v60 = vpop.eup %5308  ;;  %v4270_v61 = vadd.f32 1.0, %v5307_v58 }
0x1eca   :  { %4381 = vmatprep.mubr.f32.mxu1 %v4273_v3  ;;  %v4271_v62 = vadd.f32 1.0, %v5309_v60 }
0x1ecb   :  { %4382 = vmatmul.mubr.f32.vlgmr.msra.gmra.mrb[34].mxu1 %v4272_v2  ;;  %v4274_v4 = vmul.f32 %v4270_v61, %v4242_v48 }
0x1ecc   :  { %v4275_v0 = vmul.f32 %v4271_v62, %v4243_v6 }
0x1ece   :  { %4386 = vmatprep.mubr.f32.mxu1 %v4275_v0 }
0x1ecf   :  { %4387 = vmatmul.mubr.f32.gmra.mrb[36].mxu1 %v4274_v4 }
0x1f9e   :  { %v4809_v7 = vpop.f32.mrb[34].mxu1 }
0x1f9f   :  { %v4810_v9 = vpop.f32.mrb[35].mxu1 }
0x1fa0   :  { %v4811_v10 = vadd.f32 %v4810_v9, %v4809_v7 }
0x1fa2   :  { %v4384_v12 = vadd.f32 %v4811_v10, %v4638_v8  ;;  %v4812_v14 = vpop.f32.mrb[36].mxu1 }
0x1fa3   :  { %v4813_v15 = vpop.f32.mrb[37].mxu1 }
0x1fa4   :  { %v4814_v16 = vadd.f32 %v4813_v15, %v4812_v14  ;;  %v4392_v17 = vadd.f32 %v4384_v12, %v6249_v38 }
0x1fa6   :  { %v4389_v19 = vadd.f32 %v4814_v16, %v4638_v8  ;;  %v4398_v20 = vsel %vm70_vm0, %v4392_v17, 0.0 }
0x1fa7   :  { %4399 = vadd.xlane.f32.xlu1 %v4398_v20 }
0x1fa8   :  { %v4393_v18 = vadd.f32 %v4389_v19, %v6254_v35 }
0x1faa   :  { %v4401_v21 = vsel %vm70_vm0, %v4393_v18, 0.0 }
0x1fab   :  { %4402 = vadd.xlane.f32.xlu0 %v4401_v21 }
0x2034   :  { %v4400_v54 = vpop.xlane.xlu1 %4399 }
0x2035   :  { %v4404_v51 = vmul.f32 0.015625, %v4400_v54 }
0x2037   :  { %v4406_v11 = vsub.f32 %v4392_v17, %v4404_v51 }
0x2038   :  { %v4403_v23 = vpop.xlane.xlu0 %4402 }
0x2039   :  { %v4405_v22 = vmul.f32 0.015625, %v4403_v23  ;;  %v4408_v24 = vmul.f32 %v4406_v11, %v4406_v11 }
0x203b   :  { %v4407_v13 = vsub.f32 %v4393_v18, %v4405_v22  ;;  %v4410_v25 = vsel %vm70_vm0, %v4408_v24, 0.0 }
0x203c   :  { %4411 = vadd.xlane.f32.xlu1 %v4410_v25 }
0x203d   :  { %v4409_v38 = vmul.f32 %v4407_v13, %v4407_v13 }
0x203f   :  { %v4413_v1 = vsel %vm70_vm0, %v4409_v38, 0.0 }
0x2040   :  { %4414 = vadd.xlane.f32.xlu0 %v4413_v1 }
0x20c9   :  { %v4412_v26 = vpop.xlane.xlu1 %4411 }
0x20ca   :  { %v4416_v28 = vmul.f32 0.015625, %v4412_v26 }
0x20cc   :  { %v4418_v35 = vadd.f32 1e-12, %v4416_v28 }
0x20cd   :  { %v4415_v63 = vpop.xlane.xlu0 %4414 }
0x20ce   :  { %5310 = vrsqrt.f32 %v4418_v35  ;;  %v4417_v29 = vmul.f32 0.015625, %v4415_v63 }
0x20d0   :  { %v4419_v32 = vadd.f32 1e-12, %v4417_v29 }
0x20d2   :  { %5312 = vrsqrt.f32 %v4419_v32 }
0x20d8   :  { %v5311_v41 = vpop.eup %5310 }
0x20d9   :  { %v4422_v42 = vmul.f32 %v5311_v41, %v4406_v11 }
0x20db   :  { %v4430_v33 = vmul.f32 %v4641_v27, %v4422_v42 }
0x20dc   :  { %v5313_v59 = vpop.eup %5312 }
0x20dd   :  { %v4423_v44 = vmul.f32 %v5313_v59, %v4407_v13  ;;  %v4438_v5 = vadd.f32 %v4642_v46, %v4430_v33 }
0x20df   :  { %v4431_v47 = vmul.f32 %v4641_v27, %v4423_v44  ;;  %v4452_v50 = vadd.f32 %v4447_v45, %v4438_v5 }
0x20e1   :  { %v4439_v52 = vadd.f32 %v4642_v46, %v4431_v47 }
0x20e3   :  { %v4453_v53 = vadd.f32 %v4449_v49, %v4439_v52 }
0x20e5   :  { %v4456_v55 = vrot.slane %v4453_v53, 7 }
0x20e7   :  { %v4458_v56 = vsel %vm4457_vm4, %v4456_v55, %v4452_v50 }
0x20e8   :  { %4461 = vst.msk [vmem:[#allocation2] sm:$0x3] %vm4460_vm5, %v4458_v56 }
0x20e9   :  { %5325 = shalt.err (!%p5322_p4)
}
0x20ea   :  { %s5326_s29 = scalar_lea.hbm %s6406_s20, 32 }
0x20eb   :  { %p5327_p5 = scmp.ne.s32.totalorder %s6406_s20, %s5326_s29  ;;  %p5330_p6 = scmp.lt.u32.totalorder %s5326_s29, %s6406_s20 }
0x20ed   :  { %p5332_p7 = pnand %p5330_p6, %p5327_p5 }
0x20ef   :  { %5335 = shalt.err (!%p5332_p7)
}
0x20f0   :  { %4471 = dma.vmem_to_hbm [thread:$0]  %s4469_s19, 32, %s6406_s20, [#allocation3]  }
0x20f1   :  { %5336 = dma.done.wait [#allocation3], 32  }
0x20f2   :  { %5337 = vsyncadd [#allocation3], 4294967264 }
0x20f3   :  { %4475 = vsyncpa [#allocation3], 1 }

</bundles_post_ra>
